<compile_context>
chip_gen: v5e
topology: v5e:2x2
jax: 0.10.0
libtpu: 0.0.40
codegen_flags: <defaults>
</compile_context>

<pallas_src>
import functools

import jax
import jax.numpy as jnp
from jax import lax
from jax.experimental import pallas as pl
from jax.experimental.pallas import tpu as pltpu


def _projection_kernel(emb_ref, att_ref, w_ref, rbias_ref, out_ref, *, n_base, eps):
    emb = emb_ref[...].astype(jnp.float32)        # [tb, D]
    att = att_ref[...].astype(jnp.float32)        # [tb, n_base]
    d = emb.shape[-1]

    # Fused LHS: X[:, r*D:(r+1)*D] = att[:, r] * emb   -> [tb, n_base*D]
    # (concat along the lane axis; each piece is a natural [tb, D] tile)
    x = jnp.concatenate([att[:, r:r + 1] * emb for r in range(n_base)], axis=1)

    # Bias folded into the accumulator init: acc = att @ rel_bias   [tb, D]
    acc = jnp.dot(att, rbias_ref[...].astype(jnp.float32),
                  preferred_element_type=jnp.float32)

    # One MXU pass with K = n_base*D, bf16 inputs, f32 accumulation.
    acc = acc + jnp.dot(x.astype(jnp.bfloat16), w_ref[...],
                        preferred_element_type=jnp.float32)

    # One-pass LayerNorm over last dim, no affine (var = E[x^2] - mean^2).
    inv_d = 1.0 / d
    mean = jnp.sum(acc, axis=-1, keepdims=True) * inv_d
    ex2 = jnp.sum(acc * acc, axis=-1, keepdims=True) * inv_d
    var = ex2 - mean * mean
    out_ref[...] = ((acc - mean) * lax.rsqrt(var + eps)).astype(out_ref.dtype)


def projection_net_forward(emb, proj_ids, rel_att, rel_base, rel_bias,
                           *, batch_tile=128, eps=1e-5):
    """Pallas implementation of projection_net.forward."""
    B, D = emb.shape
    n_base = rel_base.shape[0]

    # Glue in plain JAX: relation-attention gather + constant-weight prep.
    att = rel_att[proj_ids].astype(jnp.float32)                  # [B, n_base]
    w = rel_base.reshape(n_base * D, D).astype(jnp.bfloat16)     # [n_base*D, D]
    rbias = rel_bias.astype(jnp.float32)                         # [n_base, D]

    # Pad batch to a multiple of the tile so the grid has no ragged step.
    pad = (-B) % batch_tile
    if pad:
        emb = jnp.pad(emb, ((0, pad), (0, 0)))
        att = jnp.pad(att, ((0, pad), (0, 0)))
    Bp = B + pad
    grid = (Bp // batch_tile,)

    kernel = functools.partial(_projection_kernel, n_base=n_base, eps=eps)

    def build(single_buffer_weights):
        # Constant (grid-invariant) weight blocks don't need double buffering;
        # single-buffering halves their VMEM footprint (matters on v7x when
        # D / n_base grow).
        wkw = dict(pipeline_mode=pl.Buffered(1)) if single_buffer_weights else {}
        return pl.pallas_call(
            kernel,
            out_shape=jax.ShapeDtypeStruct((Bp, D), emb.dtype),
            grid_spec=pltpu.PrefetchScalarGridSpec(
                num_scalar_prefetch=0,
                grid=grid,
                in_specs=[
                    pl.BlockSpec((batch_tile, D), lambda i: (i, 0)),       # emb tile
                    pl.BlockSpec((batch_tile, n_base), lambda i: (i, 0)),  # att tile
                    pl.BlockSpec((n_base * D, D), lambda i: (0, 0), **wkw),   # W (full)
                    pl.BlockSpec((n_base, D), lambda i: (0, 0), **wkw),       # rel_bias
                ],
                out_specs=pl.BlockSpec((batch_tile, D), lambda i: (i, 0)),
            ),
            compiler_params=pltpu.CompilerParams(
                dimension_semantics=("parallel",)),
        )

    try:
        out = build(True)(emb, att, w, rbias)
        out = jax.block_until_ready(out)
    except Exception:
        # Fallback if this JAX version rejects pipeline_mode / Buffered(1).
        out = build(False)(emb, att, w, rbias)

    return out[:B] if pad else out


def projection_net_reference(emb, proj_ids, rel_att, rel_base, rel_bias, eps=1e-5):
    """Pure-JAX f32 reference mirroring the PyTorch forward."""
    att = rel_att[proj_ids]                                      # [B, R]
    project_r = jnp.einsum('br,rio->bio', att, rel_base)         # [B, D, D]
    bias = jnp.einsum('br,ri->bi', att, rel_bias)                # [B, D]
    out = jnp.einsum('bio,bi->bo', project_r, emb) + bias        # [B, D]
    mean = jnp.mean(out, axis=-1, keepdims=True)
    var = jnp.mean((out - mean) ** 2, axis=-1, keepdims=True)
    return (out - mean) / jnp.sqrt(var + eps)


if __name__ == "__main__":
    # Shapes implied by the module (D lane-aligned); batch sized so the grid
    # has 2 parallel steps (pipelining; both v7x TensorCores get work).
    entity_dim = 128     # hidden_dim
    n_relation = 16
    rel_num_base = 4
    batch = 256

    key = jax.random.PRNGKey(0)
    k_att, k_base, k_bias, k_emb, k_ids = jax.random.split(key, 5)

    # Deterministic synthetic parameters (shapes match __init__; the exact
    # init distribution of the checkpoint is irrelevant for this test).
    rel_att = jax.random.normal(k_att, (n_relation, rel_num_base), jnp.float32) * 0.3
    rel_base = jax.random.normal(k_base, (rel_num_base, entity_dim, entity_dim),
                                 jnp.float32) * (1.0 / jnp.sqrt(entity_dim))
    rel_bias = jax.random.normal(k_bias, (rel_num_base, entity_dim), jnp.float32) * 0.1

    emb = jax.random.normal(k_emb, (batch, entity_dim), jnp.float32)
    proj_ids = jax.random.randint(k_ids, (batch,), 0, n_relation)

    out = projection_net_forward(emb, proj_ids, rel_att, rel_base, rel_bias)
    out = jax.block_until_ready(out)

    ref = projection_net_reference(emb, proj_ids, rel_att, rel_base, rel_bias)
    assert out.shape == (batch, entity_dim)
    # bf16 MXU inputs (f32 accumulation) -> slightly looser tolerance vs f32 ref.
    assert jnp.allclose(out, ref, atol=3e-2, rtol=3e-2), "mismatch vs reference"

    print("KERNEL_OK")
</pallas_src>

<mosaic_0001>
module attributes {stable_mosaic.version = 11 : i64} {
  func.func @_projection_kernel(%arg0: i32, %arg1: memref<128x128xf32, #tpu.memory_space<vmem>>, %arg2: memref<128x4xf32, #tpu.memory_space<vmem>>, %arg3: memref<512x128xbf16, #tpu.memory_space<vmem>>, %arg4: memref<4x128xf32, #tpu.memory_space<vmem>>, %arg5: memref<128x128xf32, #tpu.memory_space<vmem>>) attributes {dimension_semantics = [#tpu.dimension_semantics<parallel>], iteration_bounds = array<i64: 2>, scalar_prefetch = 0 : i64, scratch_operands = 0 : i64, tpu.core_type = #tpu.core_type<tc>, window_params = [{transform_indices = @transform_0, window_bounds = array<i64: 128, 128>}, {transform_indices = @transform_1, window_bounds = array<i64: 128, 4>}, {pipeline_mode = #tpu.pipeline_mode<synchronous>, transform_indices = @transform_2, window_bounds = array<i64: 512, 128>}, {pipeline_mode = #tpu.pipeline_mode<synchronous>, transform_indices = @transform_3, window_bounds = array<i64: 4, 128>}, {transform_indices = @transform_4, window_bounds = array<i64: 128, 128>}]} {
    %c0 = arith.constant 0 : index
    %c0_0 = arith.constant 0 : index
    %0 = vector.load %arg1[%c0, %c0_0] : memref<128x128xf32, #tpu.memory_space<vmem>>, vector<128x128xf32>
    %c0_1 = arith.constant 0 : index
    %c0_2 = arith.constant 0 : index
    %1 = vector.load %arg2[%c0_1, %c0_2] : memref<128x4xf32, #tpu.memory_space<vmem>>, vector<128x4xf32>
    %2 = vector.extract_strided_slice %1 {offsets = [0, 0], sizes = [128, 1], strides = [1, 1]} : vector<128x4xf32> to vector<128x1xf32>
    %3 = vector.broadcast %2 : vector<128x1xf32> to vector<128x128xf32>
    %4 = arith.mulf %3, %0 : vector<128x128xf32>
    %5 = vector.extract_strided_slice %1 {offsets = [0, 1], sizes = [128, 1], strides = [1, 1]} : vector<128x4xf32> to vector<128x1xf32>
    %6 = vector.broadcast %5 : vector<128x1xf32> to vector<128x128xf32>
    %7 = arith.mulf %6, %0 : vector<128x128xf32>
    %8 = vector.extract_strided_slice %1 {offsets = [0, 2], sizes = [128, 1], strides = [1, 1]} : vector<128x4xf32> to vector<128x1xf32>
    %9 = vector.broadcast %8 : vector<128x1xf32> to vector<128x128xf32>
    %10 = arith.mulf %9, %0 : vector<128x128xf32>
    %11 = vector.extract_strided_slice %1 {offsets = [0, 3], sizes = [128, 1], strides = [1, 1]} : vector<128x4xf32> to vector<128x1xf32>
    %12 = vector.broadcast %11 : vector<128x1xf32> to vector<128x128xf32>
    %13 = arith.mulf %12, %0 : vector<128x128xf32>
    %14 = tpu.concatenate %4, %7, %10, %13 in 1 : vector<128x128xf32>, vector<128x128xf32>, vector<128x128xf32>, vector<128x128xf32> -> vector<128x512xf32>
    %c0_3 = arith.constant 0 : index
    %c0_4 = arith.constant 0 : index
    %15 = vector.load %arg4[%c0_3, %c0_4] : memref<4x128xf32, #tpu.memory_space<vmem>>, vector<4x128xf32>
    %cst = arith.constant dense<0.000000e+00> : vector<128x128xf32>
    %16 = tpu.matmul %1, %15, %cst {dimension_numbers = #tpu.dot_dimension_numbers<[1], [0], [0], [1], [0, 0, 1, 1], [], []>} : vector<128x4xf32>, vector<4x128xf32>, vector<128x128xf32> -> vector<128x128xf32>
    %17 = arith.truncf %14 : vector<128x512xf32> to vector<128x512xbf16>
    %c0_5 = arith.constant 0 : index
    %c0_6 = arith.constant 0 : index
    %18 = vector.load %arg3[%c0_5, %c0_6] : memref<512x128xbf16, #tpu.memory_space<vmem>>, vector<512x128xbf16>
    %cst_7 = arith.constant dense<0.000000e+00> : vector<128x128xf32>
    %19 = tpu.matmul %17, %18, %cst_7 {dimension_numbers = #tpu.dot_dimension_numbers<[1], [0], [0], [1], [0, 0, 1, 1], [], []>} : vector<128x512xbf16>, vector<512x128xbf16>, vector<128x128xf32> -> vector<128x128xf32>
    %20 = arith.addf %16, %19 : vector<128x128xf32>
    %cst_8 = arith.constant dense<0.000000e+00> : vector<128xf32>
    %21 = vector.multi_reduction <add>, %20, %cst_8 [1] : vector<128x128xf32> to vector<128xf32>
    %22 = vector.shape_cast %21 : vector<128xf32> to vector<128x1xf32>
    %cst_9 = arith.constant 7.812500e-03 : f32
    %23 = vector.broadcast %cst_9 : f32 to vector<128x1xf32>
    %24 = arith.mulf %22, %23 : vector<128x1xf32>
    %25 = arith.mulf %20, %20 : vector<128x128xf32>
    %cst_10 = arith.constant dense<0.000000e+00> : vector<128xf32>
    %26 = vector.multi_reduction <add>, %25, %cst_10 [1] : vector<128x128xf32> to vector<128xf32>
    %27 = vector.shape_cast %26 : vector<128xf32> to vector<128x1xf32>
    %cst_11 = arith.constant 7.812500e-03 : f32
    %28 = vector.broadcast %cst_11 : f32 to vector<128x1xf32>
    %29 = arith.mulf %27, %28 : vector<128x1xf32>
    %30 = arith.mulf %24, %24 : vector<128x1xf32>
    %31 = arith.subf %29, %30 : vector<128x1xf32>
    %32 = vector.broadcast %24 : vector<128x1xf32> to vector<128x128xf32>
    %33 = arith.subf %20, %32 : vector<128x128xf32>
    %cst_12 = arith.constant 9.99999974E-6 : f32
    %34 = vector.broadcast %cst_12 : f32 to vector<128x1xf32>
    %35 = arith.addf %31, %34 : vector<128x1xf32>
    %36 = math.rsqrt %35 : vector<128x1xf32>
    %37 = vector.broadcast %36 : vector<128x1xf32> to vector<128x128xf32>
    %38 = arith.mulf %33, %37 : vector<128x128xf32>
    %c0_13 = arith.constant 0 : index
    %c0_14 = arith.constant 0 : index
    %39 = vector.load %arg5[%c0_13, %c0_14] : memref<128x128xf32, #tpu.memory_space<vmem>>, vector<128x128xf32>
    tpu.vector_store %arg5[%c0_13, %c0_14], %38 {strides = array<i32>} : memref<128x128xf32, #tpu.memory_space<vmem>>, vector<128x128xf32>,
    return
  }
  func.func @transform_0(%arg0: i32) -> (i32, i32) {
    %c0_i32 = arith.constant 0 : i32
    %c0_i32_0 = arith.constant 0 : i32
    return %arg0, %c0_i32 : i32, i32
  }
  func.func @transform_1(%arg0: i32) -> (i32, i32) {
    %c0_i32 = arith.constant 0 : i32
    %c0_i32_0 = arith.constant 0 : i32
    return %arg0, %c0_i32 : i32, i32
  }
  func.func @transform_2(%arg0: i32) -> (i32, i32) {
    %c0_i32 = arith.constant 0 : i32
    %c0_i32_0 = arith.constant 0 : i32
    %c0_i32_1 = arith.constant 0 : i32
    return %c0_i32, %c0_i32_0 : i32, i32
  }
  func.func @transform_3(%arg0: i32) -> (i32, i32) {
    %c0_i32 = arith.constant 0 : i32
    %c0_i32_0 = arith.constant 0 : i32
    %c0_i32_1 = arith.constant 0 : i32
    return %c0_i32, %c0_i32_0 : i32, i32
  }
  func.func @transform_4(%arg0: i32) -> (i32, i32) {
    %c0_i32 = arith.constant 0 : i32
    %c0_i32_0 = arith.constant 0 : i32
    return %arg0, %c0_i32 : i32, i32
  }
}

module attributes {stable_mosaic.version = 11 : i64} {
  func.func @_projection_kernel(%arg0: i32, %arg1: memref<128x128xf32, #tpu.memory_space<vmem>>, %arg2: memref<128x4xf32, #tpu.memory_space<vmem>>, %arg3: memref<512x128xbf16, #tpu.memory_space<vmem>>, %arg4: memref<4x128xf32, #tpu.memory_space<vmem>>, %arg5: memref<128x128xf32, #tpu.memory_space<vmem>>) attributes {dimension_semantics = [#tpu.dimension_semantics<parallel>], iteration_bounds = array<i64: 2>, scalar_prefetch = 0 : i64, scratch_operands = 0 : i64, tpu.core_type = #tpu.core_type<tc>, window_params = [{transform_indices = @transform_0, window_bounds = array<i64: 128, 128>}, {transform_indices = @transform_1, window_bounds = array<i64: 128, 4>}, {pipeline_mode = #tpu.pipeline_mode<synchronous>, transform_indices = @transform_2, window_bounds = array<i64: 512, 128>}, {pipeline_mode = #tpu.pipeline_mode<synchronous>, transform_indices = @transform_3, window_bounds = array<i64: 4, 128>}, {transform_indices = @transform_4, window_bounds = array<i64: 128, 128>}]} {
    %c0 = arith.constant 0 : index
    %c0_0 = arith.constant 0 : index
    %0 = vector.load %arg1[%c0, %c0_0] : memref<128x128xf32, #tpu.memory_space<vmem>>, vector<128x128xf32>
    %c0_1 = arith.constant 0 : index
    %c0_2 = arith.constant 0 : index
    %1 = vector.load %arg2[%c0_1, %c0_2] : memref<128x4xf32, #tpu.memory_space<vmem>>, vector<128x4xf32>
    %2 = vector.extract_strided_slice %1 {offsets = [0, 0], sizes = [128, 1], strides = [1, 1]} : vector<128x4xf32> to vector<128x1xf32>
    %3 = vector.broadcast %2 : vector<128x1xf32> to vector<128x128xf32>
    %4 = arith.mulf %3, %0 : vector<128x128xf32>
    %5 = vector.extract_strided_slice %1 {offsets = [0, 1], sizes = [128, 1], strides = [1, 1]} : vector<128x4xf32> to vector<128x1xf32>
    %6 = vector.broadcast %5 : vector<128x1xf32> to vector<128x128xf32>
    %7 = arith.mulf %6, %0 : vector<128x128xf32>
    %8 = vector.extract_strided_slice %1 {offsets = [0, 2], sizes = [128, 1], strides = [1, 1]} : vector<128x4xf32> to vector<128x1xf32>
    %9 = vector.broadcast %8 : vector<128x1xf32> to vector<128x128xf32>
    %10 = arith.mulf %9, %0 : vector<128x128xf32>
    %11 = vector.extract_strided_slice %1 {offsets = [0, 3], sizes = [128, 1], strides = [1, 1]} : vector<128x4xf32> to vector<128x1xf32>
    %12 = vector.broadcast %11 : vector<128x1xf32> to vector<128x128xf32>
    %13 = arith.mulf %12, %0 : vector<128x128xf32>
    %14 = tpu.concatenate %4, %7, %10, %13 in 1 : vector<128x128xf32>, vector<128x128xf32>, vector<128x128xf32>, vector<128x128xf32> -> vector<128x512xf32>
    %c0_3 = arith.constant 0 : index
    %c0_4 = arith.constant 0 : index
    %15 = vector.load %arg4[%c0_3, %c0_4] : memref<4x128xf32, #tpu.memory_space<vmem>>, vector<4x128xf32>
    %cst = arith.constant dense<0.000000e+00> : vector<128x128xf32>
    %16 = tpu.matmul %1, %15, %cst {dimension_numbers = #tpu.dot_dimension_numbers<[1], [0], [0], [1], [0, 0, 1, 1], [], []>} : vector<128x4xf32>, vector<4x128xf32>, vector<128x128xf32> -> vector<128x128xf32>
    %17 = arith.truncf %14 : vector<128x512xf32> to vector<128x512xbf16>
    %c0_5 = arith.constant 0 : index
    %c0_6 = arith.constant 0 : index
    %18 = vector.load %arg3[%c0_5, %c0_6] : memref<512x128xbf16, #tpu.memory_space<vmem>>, vector<512x128xbf16>
    %cst_7 = arith.constant dense<0.000000e+00> : vector<128x128xf32>
    %19 = tpu.matmul %17, %18, %cst_7 {dimension_numbers = #tpu.dot_dimension_numbers<[1], [0], [0], [1], [0, 0, 1, 1], [], []>} : vector<128x512xbf16>, vector<512x128xbf16>, vector<128x128xf32> -> vector<128x128xf32>
    %20 = arith.addf %16, %19 : vector<128x128xf32>
    %cst_8 = arith.constant dense<0.000000e+00> : vector<128xf32>
    %21 = vector.multi_reduction <add>, %20, %cst_8 [1] : vector<128x128xf32> to vector<128xf32>
    %22 = vector.shape_cast %21 : vector<128xf32> to vector<128x1xf32>
    %cst_9 = arith.constant 7.812500e-03 : f32
    %23 = vector.broadcast %cst_9 : f32 to vector<128x1xf32>
    %24 = arith.mulf %22, %23 : vector<128x1xf32>
    %25 = arith.mulf %20, %20 : vector<128x128xf32>
    %cst_10 = arith.constant dense<0.000000e+00> : vector<128xf32>
    %26 = vector.multi_reduction <add>, %25, %cst_10 [1] : vector<128x128xf32> to vector<128xf32>
    %27 = vector.shape_cast %26 : vector<128xf32> to vector<128x1xf32>
    %cst_11 = arith.constant 7.812500e-03 : f32
    %28 = vector.broadcast %cst_11 : f32 to vector<128x1xf32>
    %29 = arith.mulf %27, %28 : vector<128x1xf32>
    %30 = arith.mulf %24, %24 : vector<128x1xf32>
    %31 = arith.subf %29, %30 : vector<128x1xf32>
    %32 = vector.broadcast %24 : vector<128x1xf32> to vector<128x128xf32>
    %33 = arith.subf %20, %32 : vector<128x128xf32>
    %cst_12 = arith.constant 9.99999974E-6 : f32
    %34 = vector.broadcast %cst_12 : f32 to vector<128x1xf32>
    %35 = arith.addf %31, %34 : vector<128x1xf32>
    %36 = math.rsqrt %35 : vector<128x1xf32>
    %37 = vector.broadcast %36 : vector<128x1xf32> to vector<128x128xf32>
    %38 = arith.mulf %33, %37 : vector<128x128xf32>
    %c0_13 = arith.constant 0 : index
    %c0_14 = arith.constant 0 : index
    %39 = vector.load %arg5[%c0_13, %c0_14] : memref<128x128xf32, #tpu.memory_space<vmem>>, vector<128x128xf32>
    tpu.vector_store %arg5[%c0_13, %c0_14], %38 {strides = array<i32>} : memref<128x128xf32, #tpu.memory_space<vmem>>, vector<128x128xf32>,
    return
  }
  func.func @transform_0(%arg0: i32) -> (i32, i32) {
    %c0_i32 = arith.constant 0 : i32
    %c0_i32_0 = arith.constant 0 : i32
    return %arg0, %c0_i32 : i32, i32
  }
  func.func @transform_1(%arg0: i32) -> (i32, i32) {
    %c0_i32 = arith.constant 0 : i32
    %c0_i32_0 = arith.constant 0 : i32
    return %arg0, %c0_i32 : i32, i32
  }
  func.func @transform_2(%arg0: i32) -> (i32, i32) {
    %c0_i32 = arith.constant 0 : i32
    %c0_i32_0 = arith.constant 0 : i32
    %c0_i32_1 = arith.constant 0 : i32
    return %c0_i32, %c0_i32_0 : i32, i32
  }
  func.func @transform_3(%arg0: i32) -> (i32, i32) {
    %c0_i32 = arith.constant 0 : i32
    %c0_i32_0 = arith.constant 0 : i32
    %c0_i32_1 = arith.constant 0 : i32
    return %c0_i32, %c0_i32_0 : i32, i32
  }
  func.func @transform_4(%arg0: i32) -> (i32, i32) {
    %c0_i32 = arith.constant 0 : i32
    %c0_i32_0 = arith.constant 0 : i32
    return %arg0, %c0_i32 : i32, i32
  }
}

</mosaic_0001>

<bundles_post_ra>
// kernel: tpu_custom_call.1
= control target key start
LH: loop header
LB: loop body
LE: loop exit
PB: predicated region body
PF: predicated region fallthrough
CT: control target
= control target key end

     0   :  { %9 = vsyncpa [#allocation3], 0  ;;  %s2759_s0 = inlined_call_operand.vmem [shape: f32[256,128], index: 0, kind: input, shape index: {}]   ;;  %s2760_s1 = inlined_call_operand.vmem [shape: f32[256,4], index: 1, kind: input, shape index: {}]   ;;  %s2761_s2 = inlined_call_operand.hbm [shape: bf16[512,128], index: 2, kind: input, shape index: {}]   ;;  %s2762_s3 = inlined_call_operand.vmem [shape: f32[4,128], index: 3, kind: input, shape index: {}]   ;;  %s2763_s4 = inlined_call_operand.hbm [shape: f32[256,128], index: 4, kind: output, shape index: {}]  }
   0x1   :  { %10 = vsyncpa [#allocation4], 0 }
   0x2   :  { %12 = vsyncpa [#allocation4 + $0x1], 0  ;;  %s2146_s15 = smov 0   ;;  %s2148_s16 = smov 0  }
   0x3   :  { %s2150_s17 = smov 0   ;;  %s2152_s18 = smov 0  }
   0x4 LB: > { %s2167_s19 = sadd.s32 4294967295, %s2110_s18   ;;  %s1663_s20 = sadd.s32 4294967294, %s2110_s18   ;;  %s2110_s18 = sphi %s2152_s18, %s2769_s18   ;;  %s2106_s17 = sphi %s2150_s17, %s2768_s17   ;;  %s2102_s16 = sphi %s2148_s16, %s2767_s16   ;;  %s2098_s15 = sphi %s2146_s15, %s2766_s15  }
   0x5   : > { %s2171_s21 = sadd.s32 1, %s2110_s18   ;;  %s119_s22 = sadd.s32 1, %s2106_s17 }
   0x6   : > { %s116_s23 = ssub.s32 %s2110_s18, %s2171_s21  ;;  %p129_p0 = scmp.ne.s32.totalorder %s2106_s17, %s2102_s16 }
   0x7   : > { %p117_p1 = scmp.eq.s32.totalorder %s116_s23, 0  ;;  %p130_p2 = scmp.eq.s32.totalorder %s2167_s19, 1 }
   0x8   : > { %p135_p3 = scmp.ne.s32.totalorder %s2102_s16, %s2098_s15  ;;  %p136_p4 = scmp.eq.s32.totalorder %s1663_s20, 1 }
   0x9   : > { %s2182_s24 = scalar_select %p117_p1, %s2106_s17, %s119_s22  }
   0xa   : > { %p2184_p5 = por %p130_p2, %p129_p0  ;;  %p2188_p6 = por %p136_p4, %p135_p3 }
   0xb   : > { %p1664_p7 = scmp.ge.s32.totalorder %s2110_s18, 1  ;;  %p143_p8 = scmp.lt.s32.totalorder %s2110_s18, 3 }
   0xc   : > { %p1895_p9 = scmp.eq.s32.totalorder %s2167_s19, 0  ;;  %s154_s29 = sshll.u32 %s2761_s2, 4  ;;  %s155_s29 = int_to_ptr.hbm [resolvable:$true] %s154_s29 }
   0xd   : > { %p144_p10 = pnand %p1664_p7, %p143_p8  ;;  %s2112_s30 = smov [#allocation2]  }
   0xe   : > { %s156_s5 = sshll.u32 %s2112_s30, 4  ;;  %s2113_s6 = smov 64   ;;  %s157_s5 = int_to_ptr.vmem [resolvable:$true] %s156_s5 }
   0xf   : > { %p1887_p11 = pneg %p144_p10  ;;  %s2114_s7 = smov 4  }
  0x10   : > { %193 = sbr.rel (%p144_p10) target bundleno = 640 (0x280), region = 36 }
  0x11   : > { %p1888_p12 = pnand %p1895_p9, %p1887_p11 }
  0x13   : > { %1890 = dma.hbm_to_vmem [thread:$0]  (!%p1888_p12), %s155_s29, 4096, %s157_s5, [#allocation3], %s2113_s6, %s2113_s6, %s2114_s7  }
  0x15   : > { %2089 = dma.done.wait (%p1895_p9), [#allocation3], 4096  }
  0x16   : > { %2091 = vsyncadd (%p1895_p9), [#allocation3], 4294963200  ;;  %s1670_s8 = sshll.u32 %s2167_s19, 4  ;;  %v2115_v0 = vmov 0   ;;  %v2116_v17 = vmov 1   ;;  %v1831_v18 = vld [vmem:[#allocation2 + $0x38] sm:$0xff] }
  0x17   : > { %1941 = vset.pattern.permute.xlu2 %v2115_v0  ;;  %1940 = vset.pattern.permute.xlu1 %v2115_v0  ;;  %p226_p13 = scmp.lt.s32.totalorder %s1670_s8, 31  ;;  %v1830_v19 = vld [vmem:[#allocation2 + $0x30] sm:$0xff]  ;;  %v1829_v20 = vld [vmem:[#allocation2 + $0x28] sm:$0xff]  ;;  %v2117_v21 = vmov 2   ;;  %v2118_v22 = vmov 3   ;;  %v1828_v23 = vld [vmem:[#allocation2 + $0x20] sm:$0xff] }
  0x18   : > { %1939 = vset.pattern.permute.xlu0 %v2115_v0  ;;  %1857 = vmatpush.bf16.msra.mxu1 %v1831_v18  ;;  %v1827_v24 = vld [vmem:[#allocation2 + $0x18] sm:$0xff]  ;;  %v1826_v25 = vld [vmem:[#allocation2 + $0x10] sm:$0xff]  ;;  %v1825_v26 = vld [vmem:[#allocation2 + $0x8] sm:$0xff]  ;;  %vm1124_vm0 = vcmask 1043456   ;;  %vm1091_vm1 = vcmask 31744   ;;  %s222_s27 = sand.u32 1, %s2102_s16  }
  0x19   : > { %s2771_s8 = smov (!%p226_p13, %s1670_s8), 31  ;;  %895 = vmatpush.bf16.msra.mxu0 %v1831_v18  ;;  %1858 = vmatpush.bf16.msra.mxu2 %v1831_v18  ;;  %v1824_v27 = vld [vmem:[#allocation2] sm:$0xff]  ;;  %v1839_v32 = vld [vmem:[#allocation2 + $0x78] sm:$0xff]  ;;  %v1838_v36 = vld [vmem:[#allocation2 + $0x70] sm:$0xff]  ;;  %s1669_s28 = sshll.u32 %s222_s27, 7 }
  0x1a   : > { %s1671_s9 = sshll.u32 %s2771_s8, 3  ;;  %1859 = vmatpush.bf16.msra.mxu3 %v1831_v18  ;;  %v1837_v38 = vld [vmem:[#allocation2 + $0x68] sm:$0xff]  ;;  %v1836_v39 = vld [vmem:[#allocation2 + $0x60] sm:$0xff]  ;;  %v1847_v40 = vld [vmem:[#allocation2 + $0xb8] sm:$0xff]  ;;  %s2670_s29 = scalar_lea.vmem [#allocation5], %s1669_s28 }
  0x1b   : > { %s2213_s12 = scalar_lea.vmem %s2760_s1, %s1671_s9  ;;  %s2312_s20 = scalar_lea.vmem %s2759_s0, %s1671_s9  ;;  %v1835_v43 = vld [vmem:[#allocation2 + $0x58] sm:$0xff]  ;;  %v1846_v45 = vld [vmem:[#allocation2 + $0xb0] sm:$0xff]  ;;  %v1845_v48 = vld [vmem:[#allocation2 + $0xa8] sm:$0xff] }
  0x1c   : > { %v2216_v1 = vld [vmem:[%s2213_s12 + $0x20] sm:$0xff]  ;;  %v2219_v2 = vld [vmem:[%s2213_s12 + $0x10] sm:$0xff]  ;;  %v2228_v4 = vld [vmem:[%s2213_s12 + $0x28] sm:$0xff]  ;;  %1860 = vmatpush.bf16.msra.mxu1 %v1830_v19  ;;  %s1856_s30 = sshll.u32 %s2167_s19, 7  ;;  %s1574_s19 = sshll.u32 %s2670_s29, 4  ;;  %s1575_s19 = int_to_ptr.vmem [resolvable:$true] %s1574_s19 }
  0x1d   : > { %v2222_v3 = vld [vmem:[%s2213_s12] sm:$0xff]  ;;  %292 = vperm.xlu2 %1941, %v2216_v1   ;;  %282 = vperm.xlu1 %1940, %v2219_v2   ;;  %v2231_v5 = vld [vmem:[%s2213_s12 + $0x18] sm:$0xff]  ;;  %v2234_v6 = vld [vmem:[%s2213_s12 + $0x8] sm:$0xff]  ;;  %s1573_s7 = scalar_lea.hbm %s2763_s4, %s1856_s30  ;;  %s1562_s9 = scalar_lea.sflag [#allocation4], %s222_s27 }
  0x1e   : > { %272 = vperm.xlu0 %1939, %v2222_v3   ;;  %v2240_v7 = vld [vmem:[%s2213_s12 + $0x40] sm:$0xff]  ;;  %v2243_v8 = vld [vmem:[%s2213_s12 + $0x38] sm:$0xff]  ;;  %v2246_v9 = vld [vmem:[%s2213_s12 + $0x30] sm:$0xff]  ;;  %896 = vmatpush.bf16.msra.mxu0 %v1830_v19  ;;  %s1576_s8 = sshll.u32 %s1573_s7, 4  ;;  %s2064_s14 = scalar_lea.hbm %s2763_s4, 256  ;;  %s1577_s8 = int_to_ptr.hbm [resolvable:$true] %s1576_s8 }
  0x1f   : > { %v2252_v10 = vld [vmem:[%s2213_s12 + $0x58] sm:$0xff]  ;;  %v2255_v11 = vld [vmem:[%s2213_s12 + $0x50] sm:$0xff]  ;;  %v2258_v12 = vld [vmem:[%s2213_s12 + $0x48] sm:$0xff]  ;;  %1861 = vmatpush.bf16.msra.mxu2 %v1830_v19  ;;  %1862 = vmatpush.bf16.msra.mxu3 %v1830_v19  ;;  %s2058_s10 = sshra.s32 %s1577_s8, 4  ;;  %s2059_s10 = int_to_ptr.hbm [resolvable:$true] %s2058_s10 }
  0x20   : > { %v2264_v13 = vld [vmem:[%s2213_s12 + $0x70] sm:$0xff]  ;;  %v2267_v14 = vld [vmem:[%s2213_s12 + $0x68] sm:$0xff]  ;;  %v2270_v15 = vld [vmem:[%s2213_s12 + $0x60] sm:$0xff]  ;;  %1863 = vmatpush.bf16.msra.mxu1 %v1829_v20  ;;  %s2060_s11 = scalar_lea.hbm %s2059_s10, 128  ;;  %p2065_p3 = scmp.lt.s32.totalorder %s2059_s10, %s2763_s4 }
  0x21   : > { %v2276_v16 = vld [vmem:[%s2213_s12 + $0x78] sm:$0xff]  ;;  %v2317_v29 = vld [vmem:[%s2312_s20 + $0x20] sm:$0xff]  ;;  %v2324_v30 = vld [vmem:[%s2312_s20 + $0x28] sm:$0xff]  ;;  %p2061_p0 = scmp.ne.s32.totalorder %s2059_s10, %s2060_s11  ;;  %p2066_p4 = scmp.lt.s32.totalorder %s2064_s14, %s2060_s11 }
  0x22   : > { %897 = vmatpush.bf16.msra.mxu0 %v1829_v20  ;;  %v2346_v46 = vld [vmem:[%s2312_s20] sm:$0xff]  ;;  %v1834_v47 = vld [vmem:[#allocation2 + $0x50] sm:$0xff]  ;;  %v2351_v49 = vld [vmem:[%s2312_s20 + $0x8] sm:$0xff] }
  0x23   : > { %1864 = vmatpush.bf16.msra.mxu2 %v1829_v20  ;;  %1865 = vmatpush.bf16.msra.mxu3 %v1829_v20  ;;  %v1833_v54 = vld [vmem:[#allocation2 + $0x48] sm:$0xff]  ;;  %v1855_v55 = vld [vmem:[#allocation2 + $0xf8] sm:$0xff]  ;;  %v1844_v58 = vld [vmem:[#allocation2 + $0xa0] sm:$0xff]  ;;  %p2062_p1 = pnand %p2061_p0, %p2184_p5  ;;  %p2067_p7 = por %p2066_p4, %p2065_p3 }
  0x24   : > { %1866 = vmatpush.bf16.msra.mxu1 %v1828_v23  ;;  %v1854_v59 = vld [vmem:[#allocation2 + $0xf0] sm:$0xff]  ;;  %v2362_v60 = vld [vmem:[%s2312_s20 + $0x38] sm:$0xff]  ;;  %v1832_v61 = vld [vmem:[#allocation2 + $0x40] sm:$0xff] }
  0x25   : > { %297 = vperm.xlu2 %1941, %v2228_v4   ;;  %287 = vperm.xlu1 %1940, %v2231_v5   ;;  %v2365_v62 = vld [vmem:[%s2312_s20 + $0x30] sm:$0xff]  ;;  %v1843_v63 = vld [vmem:[#allocation2 + $0x98] sm:$0xff]  ;;  %v1853_v0 = vld [vmem:[#allocation2 + $0xe8] sm:$0xff]  ;;  %p2063_p2 = pneg %p2062_p1 }
  0x26   : > { %277 = vperm.xlu0 %1939, %v2234_v6   ;;  %898 = vmatpush.bf16.msra.mxu0 %v1828_v23 }
  0x27   : > { %1867 = vmatpush.bf16.msra.mxu2 %v1828_v23  ;;  %1868 = vmatpush.bf16.msra.mxu3 %v1828_v23  ;;  %p2068_p8 = pnand %p2067_p7, %p2063_p2 }
  0x28   : > { %1869 = vmatpush.bf16.msra.mxu1 %v1827_v24 }
  0x2a   : > { %899 = vmatpush.bf16.msra.mxu0 %v1827_v24 }
  0x2b   : > { %1870 = vmatpush.bf16.msra.mxu2 %v1827_v24  ;;  %1871 = vmatpush.bf16.msra.mxu3 %v1827_v24 }
  0x2c   : > { %1872 = vmatpush.bf16.msra.mxu1 %v1826_v25 }
  0x2d   : > { %312 = vperm.xlu2 %1941, %v2240_v7   ;;  %307 = vperm.xlu1 %1940, %v2243_v8  }
  0x2e   : > { %302 = vperm.xlu0 %1939, %v2246_v9   ;;  %900 = vmatpush.bf16.msra.mxu0 %v1826_v25 }
  0x2f   : > { %1873 = vmatpush.bf16.msra.mxu2 %v1826_v25  ;;  %1874 = vmatpush.bf16.msra.mxu3 %v1826_v25 }
  0x30   : > { %1875 = vmatpush.bf16.msra.mxu1 %v1825_v26 }
  0x32   : > { %901 = vmatpush.bf16.msra.mxu0 %v1825_v26 }
  0x33   : > { %1876 = vmatpush.bf16.msra.mxu2 %v1825_v26  ;;  %1877 = vmatpush.bf16.msra.mxu3 %v1825_v26  ;;  %v1842_v26 = vld [vmem:[#allocation2 + $0x90] sm:$0xff] }
  0x34   : > { %1878 = vmatpush.bf16.msra.mxu1 %v1824_v27 }
  0x35   : > { %327 = vperm.xlu2 %1941, %v2252_v10   ;;  %322 = vperm.xlu1 %1940, %v2255_v11  }
  0x36   : > { %317 = vperm.xlu0 %1939, %v2258_v12   ;;  %902 = vmatpush.bf16.msra.mxu0 %v1824_v27 }
  0x37   : > { %1879 = vmatpush.bf16.msra.mxu2 %v1824_v27  ;;  %1880 = vmatpush.bf16.msra.mxu3 %v1824_v27  ;;  %v2377_v27 = vld [vmem:[%s2312_s20 + $0x18] sm:$0xff] }
  0x38   : > { %944 = vmatpush.bf16.msrb.mxu1 %v1839_v32  ;;  %v2383_v32 = vld [vmem:[%s2312_s20 + $0x10] sm:$0xff] }
  0x3b   : > { %993 = vmatpush.bf16.msrb.mxu2 %v1847_v40  ;;  %1042 = vmatpush.bf16.msrb.mxu3 %v1855_v55  ;;  %v1849_v55 = vld [vmem:[#allocation2 + $0xc8] sm:$0xff] }
  0x3c   : > { %945 = vmatpush.bf16.msrb.mxu1 %v1838_v36 }
  0x3d   : > { %342 = vperm.xlu2 %1941, %v2264_v13   ;;  %337 = vperm.xlu1 %1940, %v2267_v14  }
  0x3e   : > { %332 = vperm.xlu0 %1939, %v2270_v15  }
  0x3f   : > { %994 = vmatpush.bf16.msrb.mxu2 %v1846_v45  ;;  %1043 = vmatpush.bf16.msrb.mxu3 %v1854_v59 }
  0x40   : > { %946 = vmatpush.bf16.msrb.mxu1 %v1837_v38 }
  0x43   : > { %995 = vmatpush.bf16.msrb.mxu2 %v1845_v48  ;;  %1044 = vmatpush.bf16.msrb.mxu3 %v1853_v0  ;;  %v1848_v0 = vld [vmem:[#allocation2 + $0xc0] sm:$0xff] }
  0x44   : > { %947 = vmatpush.bf16.msrb.mxu1 %v1836_v39 }
  0x45   : > { %1943 = vset.pattern.permute.xlu2 %v2116_v17  ;;  %1942 = vset.pattern.permute.xlu1 %v2116_v17 }
  0x46   : > { %347 = vperm.xlu0 %1939, %v2276_v16   ;;  %371 = vperm.xlu2 %1943, %v2234_v6  }
  0x47   : > { %367 = vperm.xlu1 %1942, %v2222_v3   ;;  %996 = vmatpush.bf16.msrb.mxu2 %v1844_v58 }
  0x48   : > { %948 = vmatpush.bf16.msrb.mxu1 %v1835_v43 }
  0x4b   : > { %997 = vmatpush.bf16.msrb.mxu2 %v1843_v63  ;;  %v2419_v63 = vld [vmem:[%s2312_s20 + $0x50] sm:$0xff] }
  0x4c   : > { %949 = vmatpush.bf16.msrb.mxu1 %v1834_v47 }
  0x4e   : > { %1944 = vset.pattern.permute.xlu0 %v2116_v17  ;;  %383 = vperm.xlu2 %1943, %v2216_v1  }
  0x4f   : > { %379 = vperm.xlu1 %1942, %v2231_v5   ;;  %375 = vperm.xlu0 %1944, %v2219_v2  }
  0x50   : > { %950 = vmatpush.bf16.msrb.mxu1 %v1833_v54  ;;  %998 = vmatpush.bf16.msrb.mxu2 %v1842_v26 }
  0x54   : > { %951 = vmatpush.bf16.msrb.mxu1 %v1832_v61 }
  0x56   : > { %1946 = vset.pattern.permute.xlu2 %v2117_v21 }
  0x57   : > { %1945 = vset.pattern.permute.xlu1 %v2117_v21  ;;  %1947 = vset.pattern.permute.xlu0 %v2118_v22 }
  0x58   : > { %451 = vperm.xlu2 %1946, %v2234_v6   ;;  %447 = vperm.xlu1 %1945, %v2222_v3  }
  0x59   : > { %527 = vperm.xlu0 %1947, %v2222_v3  }
  0x60   : > { %455 = vperm.xlu2 %1946, %v2219_v2   ;;  %1948 = vset.pattern.permute.xlu1 %v2118_v22 }
  0x61   : > { %539 = vperm.xlu0 %1947, %v2231_v5   ;;  %531 = vperm.xlu1 %1948, %v2234_v6  }
  0x68   : > { %1950 = vset.pattern.permute.xlu2 %v2118_v22 }
  0x69   : > { %543 = vperm.xlu0 %1947, %v2216_v1   ;;  %535 = vperm.xlu2 %1950, %v2219_v2  }
  0x6a   : > { %1949 = vset.pattern.permute.xlu1 %v2117_v21 }
  0x6b   : > { %459 = vperm.xlu1 %1949, %v2231_v5  }
  0x71   : > { %1954 = vset.pattern.permute.xlu0 %v2117_v21  ;;  %1951 = vset.pattern.permute.xlu2 %v2117_v21 }
  0x72   : > { %471 = vperm.xlu0 %1954, %v2246_v9   ;;  %467 = vperm.xlu2 %1951, %v2228_v4  }
  0x73   : > { %463 = vperm.xlu1 %1949, %v2216_v1  }
  0x77   : > { %v293_v28 = vpop.permute.xlu2 %292 }
  0x78   : > { %v354_v31 = vmul.f32 %v293_v28, %v2317_v29  ;;  %v1852_v28 = vld [vmem:[#allocation2 + $0xe0] sm:$0xff] }
  0x79   : > { %1045 = vmatpush.bf16.msrb.mxu3 %v1852_v28 }
  0x7a   : > { %1959 = vset.pattern.permute.xlu0 %v2116_v17  ;;  %1953 = vset.pattern.permute.xlu2 %v2116_v17 }
  0x7b   : > { %1952 = vset.pattern.permute.xlu1 %v2118_v22  ;;  %395 = vperm.xlu0 %1959, %v2243_v8  }
  0x7c   : > { %387 = vperm.xlu2 %1953, %v2228_v4   ;;  %547 = vperm.xlu1 %1952, %v2228_v4  }
  0x7f   : > { %v298_v33 = vpop.permute.xlu2 %297 }
  0x80   : > { %v355_v34 = vmul.f32 %v298_v33, %v2324_v30  ;;  %v2386_v33 = vld [vmem:[%s2312_s20 + $0x48] sm:$0xff] }
  0x82   : > { %v615_v35 = vpack.c.bf16 %v355_v34, %v354_v31  ;;  %v2380_v31 = vld [vmem:[%s2312_s20 + $0x40] sm:$0xff]  ;;  %v1841_v34 = vld [vmem:[#allocation2 + $0x88] sm:$0xff] }
  0x83   : > { %399 = vperm.xlu0 %1959, %v2240_v7   ;;  %999 = vmatpush.bf16.msrb.mxu2 %v1841_v34 }
  0x84   : > { %1955 = vset.pattern.permute.xlu1 %v2117_v21  ;;  %1956 = vset.pattern.permute.xlu2 %v2118_v22 }
  0x85   : > { %475 = vperm.xlu1 %1955, %v2243_v8   ;;  %551 = vperm.xlu2 %1956, %v2246_v9  }
  0x86   : > { %913 = vmatmul.bf16.vlgmr.msra.gmra.mxu1 %v615_v35  ;;  %v1851_v35 = vld [vmem:[#allocation2 + $0xd8] sm:$0xff] }
  0x87   : > { %v2333_v37 = vpop.permute.xlu2 %312  ;;  %1046 = vmatpush.bf16.msrb.mxu3 %v1851_v35 }
  0x88   : > { %v358_v43 = vmul.f32 %v2333_v37, %v2380_v31  ;;  %v606_v37 = vld [vmem:[%s2762_s3] sm:$0xf] }
  0x89   : > { %1802 = vmatpush.msk.msrb.mxu0 %vm1124_vm0, %v606_v37 }
  0x8b   : > { %1966 = vset.pattern.permute.xlu0 %v2117_v21 }
  0x8c   : > { %491 = vperm.xlu0 %1966, %v2252_v10  }
  0x8d   : > { %1957 = vset.pattern.permute.xlu1 %v2118_v22  ;;  %1958 = vset.pattern.permute.xlu2 %v2116_v17 }
  0x8e   : > { %555 = vperm.xlu1 %1957, %v2243_v8   ;;  %391 = vperm.xlu2 %1958, %v2246_v9  }
  0x8f   : > { %v2341_v41 = vpop.permute.xlu2 %327  ;;  %v2343_v42 = vpop.permute.xlu1 %282 }
  0x90   : > { %v273_v44 = vpop.permute.xlu0 %272 }
  0x91   : > { %v350_v50 = vmul.f32 %v273_v44, %v2346_v46  ;;  %v352_v44 = vmul.f32 %v2343_v42, %v2383_v32  ;;  %v2408_v42 = vld [vmem:[%s2312_s20 + $0x60] sm:$0xff] }
  0x94   : > { %495 = vperm.xlu0 %1966, %v2270_v15  }
  0x96   : > { %1960 = vset.pattern.permute.xlu1 %v2117_v21  ;;  %1961 = vset.pattern.permute.xlu2 %v2117_v21 }
  0x97   : > { %479 = vperm.xlu1 %1960, %v2240_v7   ;;  %v288_v51 = vpop.permute.xlu1 %287  ;;  %483 = vperm.xlu2 %1961, %v2258_v12   ;;  %v2357_v52 = vpop.permute.xlu2 %342 }
  0x98   : > { %v278_v53 = vpop.permute.xlu0 %277  ;;  %v353_v36 = vmul.f32 %v288_v51, %v2377_v27  ;;  %v1850_v51 = vld [vmem:[#allocation2 + $0xd0] sm:$0xff] }
  0x99   : > { %v351_v56 = vmul.f32 %v278_v53, %v2351_v49  ;;  %v2402_v53 = vld [vmem:[%s2312_s20 + $0x68] sm:$0xff]  ;;  %1047 = vmatpush.bf16.msrb.mxu3 %v1850_v51 }
  0x9a   : > { %v611_v47 = vpack.c.bf16 %v353_v36, %v352_v44 }
  0x9b   : > { %v607_v57 = vpack.c.bf16 %v351_v56, %v350_v50  ;;  %v1840_v50 = vld [vmem:[#allocation2 + $0x80] sm:$0xff] }
  0x9c   : > { %1973 = vset.pattern.permute.xlu0 %v2118_v22  ;;  %1000 = vmatpush.bf16.msrb.mxu2 %v1840_v50 }
  0x9d   : > { %903 = vmatmul.bf16.vlgmr.msra.gmra.mxu0 %v607_v57  ;;  %579 = vperm.xlu0 %1973, %v2267_v14  }
  0x9e   : > { %1048 = vmatpush.bf16.msrb.mxu3 %v1849_v55 }
  0x9f   : > { %1962 = vset.pattern.permute.xlu1 %v2118_v22  ;;  %v308_v18 = vpop.permute.xlu1 %307  ;;  %1963 = vset.pattern.permute.xlu2 %v2118_v22 }
  0xa0   : > { %559 = vperm.xlu1 %1962, %v2240_v7   ;;  %v357_v19 = vmul.f32 %v308_v18, %v2362_v60  ;;  %v303_v20 = vpop.permute.xlu0 %302  ;;  %v2372_v23 = vpop.permute.xlu2 %371  ;;  %563 = vperm.xlu2 %1963, %v2258_v12   ;;  %v2422_v18 = vld [vmem:[%s2312_s20 + $0x58] sm:$0xff] }
  0xa1   : > { %v356_v24 = vmul.f32 %v303_v20, %v2365_v62  ;;  %v431_v20 = vmul.f32 %v2372_v23, %v2351_v49  ;;  %v2436_v23 = vld [vmem:[%s2312_s20 + $0x78] sm:$0xff] }
  0xa2   : > { %1049 = vmatpush.bf16.msrb.mxu3 %v1848_v0 }
  0xa3   : > { %v619_v25 = vpack.c.bf16 %v357_v19, %v356_v24  ;;  %v361_v24 = vmul.f32 %v2341_v41, %v2422_v18 }
  0xa5   : > { %918 = vmatmul.bf16.gmra.mxu1 %v619_v25  ;;  %583 = vperm.xlu0 %1973, %v2264_v13  }
  0xa7   : > { %v323_v38 = vpop.permute.xlu1 %322 }
  0xa8   : > { %1964 = vset.pattern.permute.xlu1 %v2116_v17  ;;  %v318_v39 = vpop.permute.xlu0 %317  ;;  %v2391_v40 = vpop.permute.xlu2 %383  ;;  %1965 = vset.pattern.permute.xlu2 %v2117_v21  ;;  %v360_v19 = vmul.f32 %v323_v38, %v2419_v63  ;;  %v2439_v38 = vld [vmem:[%s2312_s20 + $0x70] sm:$0xff] }
  0xa9   : > { %403 = vperm.xlu1 %1964, %v2258_v12   ;;  %v359_v45 = vmul.f32 %v318_v39, %v2386_v33  ;;  %487 = vperm.xlu2 %1965, %v2255_v11   ;;  %v364_v39 = vmul.f32 %v2357_v52, %v2439_v38 }
  0xaa   : > { %v627_v35 = vpack.c.bf16 %v361_v24, %v360_v19 }
  0xab   : > { %v623_v48 = vpack.c.bf16 %v359_v45, %v358_v43 }
  0xad   : > { %908 = vmatmul.bf16.gmra.mxu0 %v611_v47  ;;  %923 = vmatmul.bf16.vlgmr.msra.gmra.mxu2 %v623_v48 }
  0xae   : > { %1980 = vset.pattern.permute.xlu0 %v2116_v17 }
  0xaf   : > { %v338_v54 = vpop.permute.xlu1 %337  ;;  %427 = vperm.xlu0 %1980, %v2276_v16  }
  0xb0   : > { %v363_v56 = vmul.f32 %v338_v54, %v2402_v53  ;;  %v333_v57 = vpop.permute.xlu0 %332 }
  0xb1   : > { %1967 = vset.pattern.permute.xlu1 %v2118_v22  ;;  %v362_v58 = vmul.f32 %v333_v57, %v2408_v42  ;;  %1968 = vset.pattern.permute.xlu2 %v2118_v22 }
  0xb2   : > { %567 = vperm.xlu1 %1967, %v2255_v11   ;;  %v452_v59 = vpop.permute.xlu2 %451  ;;  %571 = vperm.xlu2 %1968, %v2252_v10  }
  0xb3   : > { %v631_v61 = vpack.c.bf16 %v363_v56, %v362_v58  ;;  %v511_v52 = vmul.f32 %v452_v59, %v2351_v49 }
  0xb5   : > { %933 = vmatmul.bf16.vlgmr.msra.gmra.mxu3 %v631_v61 }
  0xb7   : > { %1981 = vset.pattern.permute.xlu0 %v2118_v22 }
  0xb8   : > { %v348_v25 = vpop.permute.xlu0 %347 }
  0xb9   : > { %v368_v26 = vpop.permute.xlu1 %367  ;;  %v365_v41 = vmul.f32 %v348_v25, %v2436_v23 }
  0xba   : > { %1969 = vset.pattern.permute.xlu1 %v2116_v17  ;;  %v430_v28 = vmul.f32 %v368_v26, %v2346_v46  ;;  %v456_v34 = vpop.permute.xlu2 %455  ;;  %1970 = vset.pattern.permute.xlu2 %v2116_v17 }
  0xbb   : > { %407 = vperm.xlu1 %1969, %v2255_v11   ;;  %411 = vperm.xlu2 %1970, %v2252_v10   ;;  %v635_v47 = vpack.c.bf16 %v365_v41, %v364_v39 }
  0xbc   : > { %v608_v36 = vpack.c.bf16 %v431_v20, %v430_v28 }
  0xbd   : > { %928 = vmatmul.bf16.gmra.mxu2 %v627_v35  ;;  %1803 = vmatmul.msk.f32.vlgmr.msrb.gmra.mxu0 %vm1091_vm1, %v2222_v3 }
  0xbe   : > { %952 = vmatmul.bf16.vlgmr.msrb.gmra.mxu1 %v608_v36 }
  0xc1   : > { %v380_v43 = vpop.permute.xlu1 %379  ;;  %v376_v44 = vpop.permute.xlu0 %375 }
  0xc2   : > { %v433_v48 = vmul.f32 %v380_v43, %v2377_v27  ;;  %v432_v3 = vmul.f32 %v376_v44, %v2383_v32 }
  0xc3   : > { %1971 = vset.pattern.permute.xlu1 %v2117_v21  ;;  %v536_v45 = vpop.permute.xlu2 %535  ;;  %1972 = vset.pattern.permute.xlu2 %v2118_v22 }
  0xc4   : > { %499 = vperm.xlu1 %1971, %v2267_v14   ;;  %575 = vperm.xlu2 %1972, %v2270_v15   ;;  %v612_v55 = vpack.c.bf16 %v433_v48, %v432_v3 }
  0xc5   : > { %938 = vmatmul.bf16.gmra.mxu3 %v635_v47  ;;  %1804 = vmatmul.msk.f32.gmra.mxu0 %vm1091_vm1, %v2234_v6 }
  0xca   : > { %v448_v50 = vpop.permute.xlu1 %447 }
  0xcb   : > { %v510_v51 = vmul.f32 %v448_v50, %v2346_v46  ;;  %v528_v37 = vpop.permute.xlu0 %527 }
  0xcc   : > { %1974 = vset.pattern.permute.xlu1 %v2116_v17  ;;  %v468_v54 = vpop.permute.xlu2 %467  ;;  %1975 = vset.pattern.permute.xlu2 %v2116_v17  ;;  %v590_v6 = vmul.f32 %v528_v37, %v2346_v46 }
  0xcd   : > { %v609_v56 = vpack.c.bf16 %v511_v52, %v510_v51  ;;  %415 = vperm.xlu1 %1974, %v2270_v15   ;;  %419 = vperm.xlu2 %1975, %v2267_v14  }
  0xce   : > { %957 = vmatmul.bf16.gmra.mxu1 %v612_v55  ;;  %1805 = vmatmul.msk.f32.gmra.mxu0 %vm1091_vm1, %v2219_v2  ;;  %v434_v2 = vmul.f32 %v2391_v40, %v2317_v29 }
  0xcf   : > { %1001 = vmatmul.bf16.vlgmr.msrb.gmra.mxu2 %v609_v56 }
  0xd3   : > { %v532_v57 = vpop.permute.xlu1 %531  ;;  %v540_v58 = vpop.permute.xlu0 %539 }
  0xd4   : > { %v591_v59 = vmul.f32 %v532_v57, %v2351_v49  ;;  %v593_v40 = vmul.f32 %v540_v58, %v2377_v27 }
  0xd5   : > { %1976 = vset.pattern.permute.xlu1 %v2117_v21  ;;  %1977 = vset.pattern.permute.xlu2 %v2117_v21  ;;  %v512_v21 = vmul.f32 %v456_v34, %v2383_v32 }
  0xd6   : > { %v610_v61 = vpack.c.bf16 %v591_v59, %v590_v6  ;;  %v388_v0 = vpop.permute.xlu2 %387  ;;  %503 = vperm.xlu1 %1976, %v2264_v13   ;;  %507 = vperm.xlu2 %1977, %v2276_v16  }
  0xd7   : > { %v435_v19 = vmul.f32 %v388_v0, %v2324_v30  ;;  %1806 = vmatmul.msk.f32.gmra.mxu0 %vm1091_vm1, %v2231_v5  ;;  %v592_v5 = vmul.f32 %v536_v45, %v2383_v32 }
  0xd8   : > { %1050 = vmatmul.bf16.vlgmr.msrb.gmra.mxu3 %v610_v61 }
  0xd9   : > { %v616_v49 = vpack.c.bf16 %v435_v19, %v434_v2 }
  0xdb   : > { %v544_v46 = vpop.permute.xlu0 %543 }
  0xdd   : > { %v460_v20 = vpop.permute.xlu1 %459 }
  0xde   : > { %v513_v24 = vmul.f32 %v460_v20, %v2377_v27  ;;  %1978 = vset.pattern.permute.xlu1 %v2118_v22  ;;  %962 = vmatmul.bf16.gmra.mxu1 %v616_v49  ;;  %v614_v22 = vpack.c.bf16 %v593_v40, %v592_v5 }
  0xdf   : > { %587 = vperm.xlu1 %1978, %v2276_v16   ;;  %v552_v25 = vpop.permute.xlu2 %551  ;;  %1979 = vset.pattern.permute.xlu2 %v2116_v17  ;;  %v515_v17 = vmul.f32 %v468_v54, %v2324_v30 }
  0xe0   : > { %v613_v26 = vpack.c.bf16 %v513_v24, %v512_v21  ;;  %423 = vperm.xlu2 %1979, %v2264_v13   ;;  %1807 = vmatmul.msk.f32.gmra.mxu0 %vm1091_vm1, %v2216_v1 }
  0xe2   : > { %1006 = vmatmul.bf16.gmra.mxu2 %v613_v26 }
  0xe4   : > { %v472_v28 = vpop.permute.xlu0 %471 }
  0xe5   : > { %v464_v34 = vpop.permute.xlu1 %463  ;;  %v516_v48 = vmul.f32 %v472_v28, %v2365_v62 }
  0xe6   : > { %v514_v36 = vmul.f32 %v464_v34, %v2317_v29 }
  0xe8   : > { %1055 = vmatmul.bf16.gmra.mxu3 %v614_v22  ;;  %1808 = vmatmul.msk.f32.gmra.mxu0 %vm1091_vm1, %v2228_v4  ;;  %v392_v35 = vpop.permute.xlu2 %391  ;;  %v617_v43 = vpack.c.bf16 %v515_v17, %v514_v36  ;;  %v594_v4 = vmul.f32 %v544_v46, %v2317_v29  ;;  %v596_v29 = vmul.f32 %v552_v25, %v2365_v62 }
  0xe9   : > { %v436_v41 = vmul.f32 %v392_v35, %v2365_v62 }
  0xed   : > { %v396_v1 = vpop.permute.xlu0 %395 }
  0xee   : > { %v437_v32 = vmul.f32 %v396_v1, %v2362_v60  ;;  %v548_v39 = vpop.permute.xlu1 %547 }
  0xef   : > { %v595_v44 = vmul.f32 %v548_v39, %v2324_v30 }
  0xf0   : > { %v620_v27 = vpack.c.bf16 %v437_v32, %v436_v41  ;;  %1809 = vmatmul.msk.f32.gmra.mxu0 %vm1091_vm1, %v2246_v9 }
  0xf1   : > { %v618_v45 = vpack.c.bf16 %v595_v44, %v594_v4  ;;  %v484_v52 = vpop.permute.xlu2 %483 }
  0xf2   : > { %967 = vmatmul.bf16.gmra.mxu1 %v620_v27  ;;  %1011 = vmatmul.bf16.gmra.mxu2 %v617_v43  ;;  %v519_v54 = vmul.f32 %v484_v52, %v2386_v33 }
  0xf5   : > { %v400_v56 = vpop.permute.xlu0 %399 }
  0xf7   : > { %v476_v47 = vpop.permute.xlu1 %475 }
  0xf8   : > { %1060 = vmatmul.bf16.gmra.mxu3 %v618_v45  ;;  %1810 = vmatmul.msk.f32.gmra.mxu0 %vm1091_vm1, %v2243_v8  ;;  %v517_v3 = vmul.f32 %v476_v47, %v2362_v60 }
  0xfa   : > { %v621_v51 = vpack.c.bf16 %v517_v3, %v516_v48  ;;  %v564_v37 = vpop.permute.xlu2 %563 }
  0xfe   : > { %v492_v59 = vpop.permute.xlu0 %491 }
  0xff   : > { %v521_v0 = vmul.f32 %v492_v59, %v2422_v18 }
 0x100   : > { %v556_v50 = vpop.permute.xlu1 %555  ;;  %1811 = vmatmul.msk.f32.gmra.mxu0 %vm1091_vm1, %v2240_v7  ;;  %v599_v7 = vmul.f32 %v564_v37, %v2386_v33 }
 0x101   : > { %v597_v9 = vmul.f32 %v556_v50, %v2362_v60 }
 0x102   : > { %1016 = vmatmul.bf16.gmra.mxu2 %v621_v51 }
 0x103   : > { %v622_v30 = vpack.c.bf16 %v597_v9, %v596_v29  ;;  %v488_v6 = vpop.permute.xlu2 %487  ;;  %v2517_v20 = vpop.f32.mrf.mxu1 }
 0x104   : > { %v520_v61 = vmul.f32 %v488_v6, %v2419_v63 }
 0x106   : > { %v629_v49 = vpack.c.bf16 %v521_v0, %v520_v61  ;;  %v496_v25 = vpop.permute.xlu0 %495 }
 0x108   : > { %1065 = vmatmul.bf16.gmra.mxu3 %v622_v30  ;;  %1812 = vmatmul.msk.f32.gmra.mxu0 %vm1091_vm1, %v2258_v12 }
 0x109   : > { %v480_v8 = vpop.permute.xlu1 %479 }
 0x10a   : > { %v518_v55 = vmul.f32 %v480_v8, %v2380_v31 }
 0x10b   : > { %v2526_v28 = vpop.f32.mrf.mxu1 }
 0x10c   : > { %v625_v57 = vpack.c.bf16 %v519_v54, %v518_v55  ;;  %v572_v12 = vpop.permute.xlu2 %571 }
 0x10f   : > { %v580_v22 = vpop.permute.xlu0 %579 }
 0x110   : > { %1813 = vmatmul.msk.f32.gmra.mxu0 %vm1091_vm1, %v2255_v11  ;;  %v438_v11 = vmul.f32 %v400_v56, %v2380_v31 }
 0x112   : > { %v560_v60 = vpop.permute.xlu1 %559  ;;  %1021 = vmatmul.bf16.gmra.mxu2 %v625_v57 }
 0x113   : > { %v598_v62 = vmul.f32 %v560_v60, %v2380_v31 }
 0x115   : > { %v626_v58 = vpack.c.bf16 %v599_v7, %v598_v62  ;;  %v412_v21 = vpop.permute.xlu2 %411 }
 0x117   : > { %v584_v47 = vpop.permute.xlu0 %583 }
 0x118   : > { %1070 = vmatmul.bf16.gmra.mxu3 %v626_v58  ;;  %1814 = vmatmul.msk.f32.gmra.mxu0 %vm1091_vm1, %v2252_v10  ;;  %v601_v10 = vmul.f32 %v572_v12, %v2422_v18  ;;  %v604_v59 = vmul.f32 %v584_v47, %v2439_v38 }
 0x11a   : > { %v2521_v5 = vpop.f32.mrf.mxu0 }
 0x11b   : > { %v404_v19 = vpop.permute.xlu1 %403 }
 0x11c   : > { %v439_v2 = vmul.f32 %v404_v19, %v2386_v33  ;;  %v441_v33 = vmul.f32 %v412_v21, %v2422_v18 }
 0x11e   : > { %v624_v46 = vpack.c.bf16 %v439_v2, %v438_v11  ;;  %v576_v40 = vpop.permute.xlu2 %575 }
 0x11f   : > { %v602_v41 = vmul.f32 %v576_v40, %v2408_v42 }
 0x120   : > { %972 = vmatmul.bf16.gmra.mxu1 %v624_v46  ;;  %1815 = vmatmul.msk.f32.gmra.mxu0 %vm1091_vm1, %v2270_v15 }
 0x121   : > { %v428_v37 = vpop.permute.xlu0 %427 }
 0x122   : > { %1026 = vmatmul.bf16.gmra.mxu2 %v629_v49  ;;  %v906_v36 = vpop.f32.mrf.mxu0  ;;  %v2535_v32 = vpop.f32.mrf.mxu1  ;;  %v445_v7 = vmul.f32 %v428_v37, %v2436_v23 }
 0x124   : > { %v568_v24 = vpop.permute.xlu1 %567 }
 0x125   : > { %v600_v26 = vmul.f32 %v568_v24, %v2419_v63 }
 0x127   : > { %v630_v31 = vpack.c.bf16 %v601_v10, %v600_v26  ;;  %v420_v1 = vpop.permute.xlu2 %419 }
 0x128   : > { %1816 = vmatmul.msk.f32.gmra.mxu0 %vm1091_vm1, %v2267_v14  ;;  %v603_v14 = vmul.f32 %v580_v22, %v2402_v53  ;;  %v443_v45 = vmul.f32 %v420_v1, %v2402_v53 }
 0x129   : > { %1075 = vmatmul.bf16.gmra.mxu3 %v630_v31 }
 0x12a   : > { %v634_v18 = vpack.c.bf16 %v603_v14, %v602_v41  ;;  %v909_v4 = vpop.f32.mrf.mxu0  ;;  %v2546_v52 = vpop.f32.mrf.mxu1 }
 0x12d   : > { %v408_v15 = vpop.permute.xlu1 %407 }
 0x12e   : > { %v440_v34 = vmul.f32 %v408_v15, %v2419_v63  ;;  %v522_v63 = vmul.f32 %v496_v25, %v2408_v42 }
 0x130   : > { %v2529_v35 = vpop.f32.mrf.mxu2  ;;  %v628_v17 = vpack.c.bf16 %v441_v33, %v440_v34  ;;  %1817 = vmatmul.msk.f32.gmra.mxu0 %vm1091_vm1, %v2264_v13  ;;  %v508_v3 = vpop.permute.xlu2 %507 }
 0x131   : > { %v525_v30 = vmul.f32 %v508_v3, %v2436_v23 }
 0x132   : > { %977 = vmatmul.bf16.gmra.mxu1 %v628_v17 }
 0x136   : > { %v500_v39 = vpop.permute.xlu1 %499 }
 0x137   : > { %v523_v27 = vmul.f32 %v500_v39, %v2402_v53 }
 0x138   : > { %v2539_v43 = vpop.f32.mrf.mxu2  ;;  %v2541_v44 = vpop.f32.mrf.mxu3  ;;  %1818 = vmatmul.msk.f32.gmra.mxu0 %vm1091_vm1, %v2276_v16 }
 0x139   : > { %1080 = vmatmul.bf16.gmra.mxu3 %v634_v18  ;;  %v633_v13 = vpack.c.bf16 %v523_v27, %v522_v63  ;;  %v911_v16 = vpop.f32.mrf.mxu0 }
 0x13a   : > { %v424_v56 = vpop.permute.xlu2 %423 }
 0x13b   : > { %1031 = vmatmul.bf16.gmra.mxu2 %v633_v13  ;;  %v953_v8 = vpop.f32.mrf.mxu1  ;;  %v444_v57 = vmul.f32 %v424_v56, %v2439_v38 }
 0x13c   : > { %v954_v46 = vadd.f32 %v953_v8, %v2521_v5 }
 0x13d   : > { %v636_v62 = vpack.c.bf16 %v445_v7, %v444_v57 }
 0x13f   : > { %v416_v48 = vpop.permute.xlu1 %415 }
 0x140   : > { %v442_v50 = vmul.f32 %v416_v48, %v2408_v42  ;;  %v2549_v51 = vpop.f32.mrf.mxu3  ;;  %v2551_v9 = vpop.f32.mrf.mxu2 }
 0x141   : > { %v1145_v60 = vpop.f32.mrf.mxu0 }
 0x142   : > { %v632_v29 = vpack.c.bf16 %v443_v45, %v442_v50 }
 0x143   : > { %v955_v12 = vpop.f32.mrf.mxu1 }
 0x144   : > { %982 = vmatmul.bf16.gmra.mxu1 %v632_v29 }
 0x148   : > { %v504_v54 = vpop.permute.xlu1 %503  ;;  %v2555_v55 = vpop.f32.mrf.mxu3 }
 0x149   : > { %v524_v53 = vmul.f32 %v504_v54, %v2439_v38  ;;  %v2557_v6 = vpop.f32.mrf.mxu2  ;;  %v1148_v2 = vpop.f32.mrf.mxu0  ;;  %v956_v38 = vadd.f32 %v955_v12, %v906_v36 }
 0x14b   : > { %v637_v42 = vpack.c.bf16 %v525_v30, %v524_v53  ;;  %v958_v24 = vpop.f32.mrf.mxu1 }
 0x14c   : > { %v959_v17 = vadd.f32 %v958_v24, %v909_v4 }
 0x14d   : > { %1036 = vmatmul.bf16.gmra.mxu2 %v637_v42 }
 0x150   : > { %v2563_v0 = vpop.f32.mrf.mxu3 }
 0x151   : > { %v588_v58 = vpop.permute.xlu1 %587  ;;  %v1151_v31 = vpop.f32.mrf.mxu0 }
 0x152   : > { %v605_v61 = vmul.f32 %v588_v58, %v2436_v23  ;;  %v1002_v19 = vpop.f32.mrf.mxu2 }
 0x153   : > { %v1003_v49 = vadd.f32 %v1002_v19, %v954_v46  ;;  %v960_v22 = vpop.f32.mrf.mxu1 }
 0x154   : > { %987 = vmatmul.bf16.gmra.mxu1 %v636_v62  ;;  %v638_v11 = vpack.c.bf16 %v605_v61, %v604_v59  ;;  %v961_v27 = vadd.f32 %v960_v22, %v911_v16 }
 0x156   : > { %1085 = vmatmul.bf16.gmra.mxu3 %v638_v11 }
 0x159   : > { %v1154_v18 = vpop.f32.mrf.mxu0 }
 0x15a   : > { %v1004_v25 = vpop.f32.mrf.mxu2 }
 0x15b   : > { %v1051_v10 = vpop.f32.mrf.mxu3  ;;  %v1005_v33 = vadd.f32 %v1004_v25, %v956_v38  ;;  %v963_v45 = vpop.f32.mrf.mxu1 }
 0x15c   : > { %v1052_v21 = vadd.f32 %v1051_v10, %v1003_v49  ;;  %v964_v30 = vadd.f32 %v963_v45, %v2517_v20 }
 0x15e   : > { %v2566_v26 = vadd.f32 %v1145_v60, %v1052_v21 }
 0x160   : > { %1193 = vadd.xlane.f32.xlu1 %v2566_v26  ;;  %v1241_v23 = vmul.f32 %v2566_v26, %v2566_v26 }
 0x161   : > { %v1157_v50 = vpop.f32.mrf.mxu0 }
 0x162   : > { %1257 = vadd.xlane.f32.xlu2 %v1241_v23 }
 0x163   : > { %v1053_v15 = vpop.f32.mrf.mxu3  ;;  %v965_v16 = vpop.f32.mrf.mxu1 }
 0x164   : > { %v1054_v40 = vadd.f32 %v1053_v15, %v1005_v33  ;;  %v966_v7 = vadd.f32 %v965_v16, %v2526_v28 }
 0x165   : > { %v1007_v34 = vpop.f32.mrf.mxu2 }
 0x166   : > { %v2571_v5 = vadd.f32 %v1148_v2, %v1054_v40  ;;  %v1008_v14 = vadd.f32 %v1007_v34, %v959_v17 }
 0x168   : > { %v1242_v41 = vmul.f32 %v2571_v5, %v2571_v5 }
 0x169   : > { %v1160_v57 = vpop.f32.mrf.mxu0 }
 0x16a   : > { %1259 = vadd.xlane.f32.xlu0 %v1242_v41  ;;  %1195 = vadd.xlane.f32.xlu2 %v2571_v5 }
 0x16b   : > { %v1056_v36 = vpop.f32.mrf.mxu3 }
 0x16c   : > { %v1057_v1 = vadd.f32 %v1056_v36, %v1008_v14 }
 0x16d   : > { %v1009_v39 = vpop.f32.mrf.mxu2 }
 0x16e   : > { %v2576_v63 = vadd.f32 %v1151_v31, %v1057_v1  ;;  %v1010_v47 = vadd.f32 %v1009_v39, %v961_v27 }
 0x16f   : > { %v968_v62 = vpop.f32.mrf.mxu1 }
 0x170   : > { %v1243_v13 = vmul.f32 %v2576_v63, %v2576_v63  ;;  %v969_v19 = vadd.f32 %v968_v62, %v2535_v32 }
 0x171   : > { %v1163_v11 = vpop.f32.mrf.mxu0 }
 0x172   : > { %1197 = vadd.xlane.f32.xlu0 %v2576_v63  ;;  %1261 = vadd.xlane.f32.xlu1 %v1243_v13 }
 0x173   : > { %v1058_v4 = vpop.f32.mrf.mxu3 }
 0x174   : > { %v1059_v48 = vadd.f32 %v1058_v4, %v1010_v47 }
 0x175   : > { %v1012_v3 = vpop.f32.mrf.mxu2 }
 0x176   : > { %v2581_v29 = vadd.f32 %v1154_v18, %v1059_v48  ;;  %v1013_v37 = vadd.f32 %v1012_v3, %v964_v30 }
 0x177   : > { %v970_v10 = vpop.f32.mrf.mxu1 }
 0x178   : > { %1199 = vadd.xlane.f32.xlu2 %v2581_v29  ;;  %v1244_v42 = vmul.f32 %v2581_v29, %v2581_v29  ;;  %v971_v25 = vadd.f32 %v970_v10, %v2546_v52 }
 0x179   : > { %v1166_v31 = vpop.f32.mrf.mxu0 }
 0x17b   : > { %v1061_v8 = vpop.f32.mrf.mxu3 }
 0x17c   : > { %v1062_v54 = vadd.f32 %v1061_v8, %v1013_v37 }
 0x17d   : > { %v1014_v53 = vpop.f32.mrf.mxu2 }
 0x17e   : > { %v2585_v56 = vadd.f32 %v1157_v50, %v1062_v54  ;;  %v1015_v60 = vadd.f32 %v1014_v53, %v966_v7 }
 0x180   : > { %1201 = vadd.xlane.f32.xlu1 %v2585_v56  ;;  %1263 = vadd.xlane.f32.xlu2 %v1244_v42  ;;  %v1245_v20 = vmul.f32 %v2585_v56, %v2585_v56 }
 0x181   : > { %v1169_v41 = vpop.f32.mrf.mxu0 }
 0x182   : > { %1265 = vadd.xlane.f32.xlu0 %v1245_v20 }
 0x183   : > { %v1063_v58 = vpop.f32.mrf.mxu3 }
 0x184   : > { %v1064_v59 = vadd.f32 %v1063_v58, %v1015_v60 }
 0x185   : > { %v1017_v12 = vpop.f32.mrf.mxu2 }
 0x186   : > { %v2593_v61 = vadd.f32 %v1160_v57, %v1064_v59  ;;  %v1018_v2 = vadd.f32 %v1017_v12, %v969_v19 }
 0x188   : > { %1203 = vadd.xlane.f32.xlu2 %v2593_v61  ;;  %v1246_v28 = vmul.f32 %v2593_v61, %v2593_v61 }
 0x189   : > { %v1172_v4 = vpop.f32.mrf.mxu0 }
 0x18a   : > { %1267 = vadd.xlane.f32.xlu1 %v1246_v28 }
 0x18b   : > { %v1066_v46 = vpop.f32.mrf.mxu3 }
 0x18c   : > { %v1067_v49 = vadd.f32 %v1066_v46, %v1018_v2 }
 0x18d   : > { %v1019_v24 = vpop.f32.mrf.mxu2 }
 0x18e   : > { %v2599_v21 = vadd.f32 %v1163_v11, %v1067_v49  ;;  %v1020_v32 = vadd.f32 %v1019_v24, %v971_v25 }
 0x190   : > { %v1247_v38 = vmul.f32 %v2599_v21, %v2599_v21 }
 0x192   : > { %1205 = vadd.xlane.f32.xlu1 %v2599_v21  ;;  %1269 = vadd.xlane.f32.xlu2 %v1247_v38 }
 0x193   : > { %v1068_v23 = vpop.f32.mrf.mxu3 }
 0x194   : > { %v1069_v33 = vadd.f32 %v1068_v23, %v1020_v32 }
 0x195   : > { %v1022_v34 = vpop.f32.mrf.mxu2 }
 0x196   : > { %v2605_v15 = vadd.f32 %v1166_v31, %v1069_v33 }
 0x198   : > { %v1248_v40 = vmul.f32 %v2605_v15, %v2605_v15 }
 0x19a   : > { %1271 = vadd.xlane.f32.xlu0 %v1248_v40  ;;  %1207 = vadd.xlane.f32.xlu2 %v2605_v15 }
 0x19b   : > { %v1071_v52 = vpop.f32.mrf.mxu3 }
 0x19d   : > { %v973_v22 = vpop.f32.mrf.mxu1  ;;  %v1024_v18 = vpop.f32.mrf.mxu2 }
 0x19e   : > { %v974_v17 = vadd.f32 %v973_v22, %v2529_v35 }
 0x1a0   : > { %v1023_v14 = vadd.f32 %v1022_v34, %v974_v17 }
 0x1a2   : > { %v1072_v36 = vadd.f32 %v1071_v52, %v1023_v14 }
 0x1a3   : > { %v1073_v39 = vpop.f32.mrf.mxu3 }
 0x1a4   : > { %v2611_v1 = vadd.f32 %v1169_v41, %v1072_v36 }
 0x1a5   : > { %v975_v27 = vpop.f32.mrf.mxu1  ;;  %v1027_v3 = vpop.f32.mrf.mxu2 }
 0x1a6   : > { %v976_v13 = vadd.f32 %v975_v27, %v2539_v43  ;;  %1209 = vadd.xlane.f32.xlu0 %v2611_v1  ;;  %v1249_v45 = vmul.f32 %v2611_v1, %v2611_v1  ;;  %v1175_v43 = vpop.f32.mrf.mxu0 }
 0x1a8   : > { %v1025_v47 = vadd.f32 %v1024_v18, %v976_v13  ;;  %1273 = vadd.xlane.f32.xlu1 %v1249_v45 }
 0x1aa   : > { %v1074_v48 = vadd.f32 %v1073_v39, %v1025_v47 }
 0x1ac   : > { %v2617_v35 = vadd.f32 %v1172_v4, %v1074_v48  ;;  %v1076_v30 = vpop.f32.mrf.mxu3 }
 0x1ad   : > { %v1029_v20 = vpop.f32.mrf.mxu2 }
 0x1ae   : > { %v1250_v50 = vmul.f32 %v2617_v35, %v2617_v35 }
 0x1af   : > { %v978_v37 = vpop.f32.mrf.mxu1 }
 0x1b0   : > { %v979_v16 = vadd.f32 %v978_v37, %v2551_v9  ;;  %1211 = vadd.xlane.f32.xlu1 %v2617_v35  ;;  %1275 = vadd.xlane.f32.xlu2 %v1250_v50  ;;  %v1178_v9 = vpop.f32.mrf.mxu0 }
 0x1b2   : > { %v1028_v8 = vadd.f32 %v1027_v3, %v979_v16 }
 0x1b4   : > { %v1077_v54 = vadd.f32 %v1076_v30, %v1028_v8  ;;  %v1078_v60 = vpop.f32.mrf.mxu3 }
 0x1b6   : > { %v2623_v53 = vadd.f32 %v1175_v43, %v1077_v54 }
 0x1b7   : > { %v980_v42 = vpop.f32.mrf.mxu1 }
 0x1b8   : > { %v981_v57 = vadd.f32 %v980_v42, %v2557_v6  ;;  %1213 = vadd.xlane.f32.xlu2 %v2623_v53  ;;  %v1251_v7 = vmul.f32 %v2623_v53, %v2623_v53  ;;  %v1181_v46 = vpop.f32.mrf.mxu0 }
 0x1ba   : > { %v1030_v62 = vadd.f32 %v1029_v20, %v981_v57  ;;  %1277 = vadd.xlane.f32.xlu0 %v1251_v7 }
 0x1bc   : > { %v1079_v58 = vadd.f32 %v1078_v60, %v1030_v62  ;;  %v1081_v11 = vpop.f32.mrf.mxu3 }
 0x1be   : > { %v2629_v59 = vadd.f32 %v1178_v9, %v1079_v58  ;;  %v1032_v19 = vpop.f32.mrf.mxu2 }
 0x1c0   : > { %v1252_v12 = vmul.f32 %v2629_v59, %v2629_v59  ;;  %v1184_v33 = vpop.f32.mrf.mxu0 }
 0x1c1   : > { %v983_v28 = vpop.f32.mrf.mxu1 }
 0x1c2   : > { %v984_v6 = vadd.f32 %v983_v28, %v2541_v44  ;;  %1215 = vadd.xlane.f32.xlu0 %v2629_v59  ;;  %1279 = vadd.xlane.f32.xlu1 %v1252_v12 }
 0x1c4   : > { %v1033_v2 = vadd.f32 %v1032_v19, %v984_v6  ;;  %v1083_v44 = vpop.f32.mrf.mxu3 }
 0x1c6   : > { %v1082_v49 = vadd.f32 %v1081_v11, %v1033_v2  ;;  %v1034_v32 = vpop.f32.mrf.mxu2 }
 0x1c8   : > { %v2635_v10 = vadd.f32 %v1181_v46, %v1082_v49  ;;  %v1187_v18 = vpop.f32.mrf.mxu0 }
 0x1c9   : > { %v985_v24 = vpop.f32.mrf.mxu1 }
 0x1ca   : > { %v986_v25 = vadd.f32 %v985_v24, %v2549_v51  ;;  %1217 = vadd.xlane.f32.xlu1 %v2635_v10  ;;  %v1253_v38 = vmul.f32 %v2635_v10, %v2635_v10 }
 0x1cc   : > { %v1035_v23 = vadd.f32 %v1034_v32, %v986_v25  ;;  %1281 = vadd.xlane.f32.xlu2 %v1253_v38 }
 0x1ce   : > { %v1084_v31 = vadd.f32 %v1083_v44, %v1035_v23 }
 0x1d0   : > { %v2641_v34 = vadd.f32 %v1184_v33, %v1084_v31  ;;  %v1037_v51 = vpop.f32.mrf.mxu2  ;;  %v1190_v42 = vpop.f32.mrf.mxu0 }
 0x1d1   : > { %v988_v40 = vpop.f32.mrf.mxu1 }
 0x1d2   : > { %v989_v22 = vadd.f32 %v988_v40, %v2555_v55  ;;  %v1254_v9 = vmul.f32 %v2641_v34, %v2641_v34 }
 0x1d3   : > { %v1194_v52 = vpop.xlane.xlu1 %1193 }
 0x1d4   : > { %v1225_v17 = vmul.f32 0.0078125, %v1194_v52  ;;  %1219 = vadd.xlane.f32.xlu2 %v2641_v34  ;;  %v1038_v27 = vadd.f32 %v1037_v51, %v989_v22 }
 0x1d5   : > { %v1258_v41 = vpop.xlane.xlu2 %1257 }
 0x1d6   : > { %v1305_v14 = vmul.f32 %v1225_v17, %v1225_v17  ;;  %v1289_v36 = vmul.f32 0.0078125, %v1258_v41  ;;  %v1337_v23 = vsub.f32 %v2566_v26, %v1225_v17 }
 0x1d8   : > { %v1321_v39 = vsub.f32 %v1289_v36, %v1305_v14  ;;  %v1039_v37 = vpop.f32.mrf.mxu2 }
 0x1d9   : > { %v990_v13 = vpop.f32.mrf.mxu1  ;;  %v1086_v45 = vpop.f32.mrf.mxu3 }
 0x1da   : > { %v1353_v47 = vadd.f32 1e-05, %v1321_v39  ;;  %v1087_v4 = vadd.f32 %v1086_v45, %v1038_v27  ;;  %v991_v48 = vadd.f32 %v990_v13, %v2563_v0 }
 0x1dc   : > { %1982 = vrsqrt.f32 %v1353_v47  ;;  %v2646_v3 = vadd.f32 %v1187_v18, %v1087_v4  ;;  %v1040_v8 = vadd.f32 %v1039_v37, %v991_v48  ;;  %vm1375_vm3 = vweird.f32 %v1353_v47 }
 0x1dd   : > { %v1260_v55 = vpop.xlane.xlu0 %1259  ;;  %v1196_v50 = vpop.xlane.xlu2 %1195 }
 0x1de   : > { %1221 = vadd.xlane.f32.xlu0 %v2646_v3  ;;  %v2649_v30 = vmul.f32 0.0078125, %v1196_v50  ;;  %v1290_v16 = vmul.f32 0.0078125, %v1260_v55  ;;  %v1255_v31 = vmul.f32 %v2646_v3, %v2646_v3 }
 0x1e0   : > { %v1306_v43 = vmul.f32 %v2649_v30, %v2649_v30  ;;  %v1338_v4 = vsub.f32 %v2571_v5, %v2649_v30 }
 0x1e1   : > { %v1088_v54 = vpop.f32.mrf.mxu3 }
 0x1e2   : > { %v1983_v57 = vpop.eup %1982  ;;  %v1322_v7 = vsub.f32 %v1290_v16, %v1306_v43  ;;  %v1089_v0 = vadd.f32 %v1088_v54, %v1040_v8 }
 0x1e3   : > { %v1370_v20 = vmul.f32 %v1983_v57, %v1353_v47  ;;  %vm1376_vm2 = vweird.f32 %v1983_v57 }
 0x1e4   : > { %v1354_v60 = vadd.f32 1e-05, %v1322_v7  ;;  %v2653_v62 = vadd.f32 %v1190_v42, %v1089_v0  ;;  %vm1377_vm4 = vmor %vm1375_vm3, %vm1376_vm2 }
 0x1e5   : > { %v1371_v58 = vmul.f32 %v1983_v57, %v1370_v20  ;;  %v1198_v12 = vpop.xlane.xlu0 %1197  ;;  %v1262_v19 = vpop.xlane.xlu1 %1261 }
 0x1e6   : > { %1984 = vrsqrt.f32 %v1354_v60  ;;  %1283 = vadd.xlane.f32.xlu0 %v1254_v9  ;;  %v2657_v28 = vmul.f32 0.0078125, %v1198_v12  ;;  %1223 = vadd.xlane.f32.xlu1 %v2653_v62  ;;  %v1256_v11 = vmul.f32 %v2653_v62, %v2653_v62  ;;  %v1291_v46 = vmul.f32 0.0078125, %v1262_v19 }
 0x1e7   : > { %v1372_v6 = vmul.f32 0.5, %v1371_v58  ;;  %vm1385_vm6 = vweird.f32 %v1354_v60 }
 0x1e8   : > { %v1307_v2 = vmul.f32 %v2657_v28, %v2657_v28  ;;  %1287 = vadd.xlane.f32.xlu2 %v1256_v11 }
 0x1e9   : > { %v1373_v49 = vsub.f32 1.5, %v1372_v6 }
 0x1ea   : > { %v1323_v24 = vsub.f32 %v1291_v46, %v1307_v2 }
 0x1eb   : > { %v1374_v25 = vmul.f32 %v1983_v57, %v1373_v49  ;;  %v1200_v38 = vpop.xlane.xlu2 %1199 }
 0x1ec   : > { %v1985_v32 = vpop.eup %1984  ;;  %v1355_v44 = vadd.f32 1e-05, %v1323_v24  ;;  %v2673_v51 = vmul.f32 0.0078125, %v1200_v38 }
 0x1ed   : > { %v1378_v33 = vsel %vm1377_vm4, %v1983_v57, %v1374_v25  ;;  %v1380_v40 = vmul.f32 %v1985_v32, %v1354_v60  ;;  %vm1386_vm5 = vweird.f32 %v1985_v32  ;;  %v1339_v60 = vsub.f32 %v2576_v63, %v2657_v28 }
 0x1ee   : > { %v1529_v52 = vmul.f32 %v1378_v33, %v1337_v23  ;;  %1986 = vrsqrt.f32 %v1355_v44  ;;  %1285 = vadd.xlane.f32.xlu1 %v1255_v31  ;;  %v1308_v18 = vmul.f32 %v2673_v51, %v2673_v51  ;;  %vm1387_vm7 = vmor %vm1385_vm6, %vm1386_vm5  ;;  %vm1395_vm9 = vweird.f32 %v1355_v44 }
 0x1ef   : > { %v1381_v22 = vmul.f32 %v1985_v32, %v1380_v40 }
 0x1f0   : > { %1545 = vst [vmem:[%s2670_s29] sm:$0xff] %v1529_v52 }
 0x1f1   : > { %v1382_v41 = vmul.f32 0.5, %v1381_v22 }
 0x1f3   : > { %v1383_v14 = vsub.f32 1.5, %v1382_v41  ;;  %v1202_v26 = vpop.xlane.xlu1 %1201  ;;  %v1264_v17 = vpop.xlane.xlu2 %1263 }
 0x1f4   : > { %v1987_v36 = vpop.eup %1986  ;;  %v2677_v39 = vmul.f32 0.0078125, %v1202_v26  ;;  %v1292_v27 = vmul.f32 0.0078125, %v1264_v17 }
 0x1f5   : > { %v1384_v13 = vmul.f32 %v1985_v32, %v1383_v14  ;;  %v1390_v45 = vmul.f32 %v1987_v36, %v1355_v44  ;;  %v1266_v47 = vpop.xlane.xlu0 %1265  ;;  %vm1396_vm8 = vweird.f32 %v1987_v36  ;;  %v1340_v14 = vsub.f32 %v2581_v29, %v2673_v51 }
 0x1f6   : > { %v1309_v48 = vmul.f32 %v2677_v39, %v2677_v39  ;;  %v1324_v55 = vsub.f32 %v1292_v27, %v1308_v18  ;;  %v1293_v50 = vmul.f32 0.0078125, %v1266_v47  ;;  %vm1397_vm10 = vmor %vm1395_vm9, %vm1396_vm8  ;;  %v1341_v27 = vsub.f32 %v2585_v56, %v2677_v39 }
 0x1f7   : > { %v1388_v37 = vsel %vm1387_vm7, %v1985_v32, %v1384_v13  ;;  %v1391_v16 = vmul.f32 %v1987_v36, %v1390_v45 }
 0x1f8   : > { %v1530_v43 = vmul.f32 %v1388_v37, %v1338_v4  ;;  %v1356_v8 = vadd.f32 1e-05, %v1324_v55  ;;  %v1325_v54 = vsub.f32 %v1293_v50, %v1309_v48 }
 0x1f9   : > { %v1392_v42 = vmul.f32 0.5, %v1391_v16 }
 0x1fa   : > { %1546 = vst [vmem:[%s2670_s29 + $0x8] sm:$0xff] %v1530_v43  ;;  %1988 = vrsqrt.f32 %v1356_v8  ;;  %v1357_v57 = vadd.f32 1e-05, %v1325_v54  ;;  %vm1405_vm12 = vweird.f32 %v1356_v8 }
 0x1fb   : > { %v1393_v7 = vsub.f32 1.5, %v1392_v42  ;;  %v1204_v0 = vpop.xlane.xlu2 %1203 }
 0x1fc   : > { %1990 = vrsqrt.f32 %v1357_v57  ;;  %v2684_v5 = vmul.f32 0.0078125, %v1204_v0  ;;  %vm1415_vm15 = vweird.f32 %v1357_v57 }
 0x1fd   : > { %v1394_v30 = vmul.f32 %v1987_v36, %v1393_v7  ;;  %v1268_v20 = vpop.xlane.xlu1 %1267 }
 0x1fe   : > { %v1310_v9 = vmul.f32 %v2684_v5, %v2684_v5  ;;  %v1294_v58 = vmul.f32 0.0078125, %v1268_v20  ;;  %v1342_v54 = vsub.f32 %v2593_v61, %v2684_v5 }
 0x1ff   : > { %v1398_v12 = vsel %vm1397_vm10, %v1987_v36, %v1394_v30 }
 0x200   : > { %v1989_v19 = vpop.eup %1988  ;;  %v1531_v6 = vmul.f32 %v1398_v12, %v1339_v60  ;;  %v1326_v11 = vsub.f32 %v1294_v58, %v1310_v9 }
 0x201   : > { %v1400_v2 = vmul.f32 %v1989_v19, %v1356_v8  ;;  %vm1406_vm11 = vweird.f32 %v1989_v19 }
 0x202   : > { %v1991_v46 = vpop.eup %1990  ;;  %1547 = vst [vmem:[%s2670_s29 + $0x10] sm:$0xff] %v1531_v6  ;;  %v1358_v49 = vadd.f32 1e-05, %v1326_v11  ;;  %vm1407_vm14 = vmor %vm1405_vm12, %vm1406_vm11 }
 0x203   : > { %v1401_v24 = vmul.f32 %v1989_v19, %v1400_v2  ;;  %v1410_v25 = vmul.f32 %v1991_v46, %v1357_v57  ;;  %vm1416_vm13 = vweird.f32 %v1991_v46 }
 0x204   : > { %1992 = vrsqrt.f32 %v1358_v49  ;;  %vm1417_vm0 = vmor %vm1415_vm15, %vm1416_vm13  ;;  %vm1425_vm2 = vweird.f32 %v1358_v49 }
 0x205   : > { %v1402_v38 = vmul.f32 0.5, %v1401_v24  ;;  %v1411_v32 = vmul.f32 %v1991_v46, %v1410_v25  ;;  %v1206_v23 = vpop.xlane.xlu1 %1205  ;;  %v1270_v63 = vpop.xlane.xlu2 %1269 }
 0x206   : > { %v2691_v28 = vmul.f32 0.0078125, %v1206_v23  ;;  %v1295_v40 = vmul.f32 0.0078125, %v1270_v63 }
 0x207   : > { %v1403_v44 = vsub.f32 1.5, %v1402_v38  ;;  %v1412_v31 = vmul.f32 0.5, %v1411_v32 }
 0x208   : > { %v1311_v33 = vmul.f32 %v2691_v28, %v2691_v28  ;;  %v1343_v61 = vsub.f32 %v2599_v21, %v2691_v28 }
 0x209   : > { %v1404_v52 = vmul.f32 %v1989_v19, %v1403_v44  ;;  %v1413_v22 = vsub.f32 1.5, %v1412_v31 }
 0x20a   : > { %v1993_v41 = vpop.eup %1992  ;;  %v1327_v26 = vsub.f32 %v1295_v40, %v1311_v33 }
 0x20b   : > { %v1408_v17 = vsel %vm1407_vm14, %v1989_v19, %v1404_v52  ;;  %v1414_v36 = vmul.f32 %v1991_v46, %v1413_v22  ;;  %v1420_v18 = vmul.f32 %v1993_v41, %v1358_v49  ;;  %vm1426_vm1 = vweird.f32 %v1993_v41 }
 0x20c   : > { %v1532_v13 = vmul.f32 %v1408_v17, %v1340_v14  ;;  %v1359_v45 = vadd.f32 1e-05, %v1327_v26  ;;  %vm1427_vm3 = vmor %vm1425_vm2, %vm1426_vm1 }
 0x20d   : > { %v1418_v47 = vsel %vm1417_vm0, %v1991_v46, %v1414_v36  ;;  %v1421_v4 = vmul.f32 %v1993_v41, %v1420_v18  ;;  %v1208_v48 = vpop.xlane.xlu2 %1207  ;;  %v1272_v29 = vpop.xlane.xlu0 %1271 }
 0x20e   : > { %1548 = vst [vmem:[%s2670_s29 + $0x18] sm:$0xff] %v1532_v13  ;;  %v1533_v55 = vmul.f32 %v1418_v47, %v1341_v27  ;;  %1994 = vrsqrt.f32 %v1359_v45  ;;  %v1232_v50 = vmul.f32 0.0078125, %v1208_v48  ;;  %v1296_v16 = vmul.f32 0.0078125, %v1272_v29 }
 0x20f   : > { %v1422_v51 = vmul.f32 0.5, %v1421_v4  ;;  %vm1435_vm5 = vweird.f32 %v1359_v45 }
 0x210   : > { %1549 = vst [vmem:[%s2670_s29 + $0x20] sm:$0xff] %v1533_v55  ;;  %v1312_v43 = vmul.f32 %v1232_v50, %v1232_v50  ;;  %v1344_v28 = vsub.f32 %v2605_v15, %v1232_v50 }
 0x211   : > { %v1423_v37 = vsub.f32 1.5, %v1422_v51 }
 0x212   : > { %v1328_v56 = vsub.f32 %v1296_v16, %v1312_v43 }
 0x213   : > { %v1424_v8 = vmul.f32 %v1993_v41, %v1423_v37 }
 0x214   : > { %v1995_v39 = vpop.eup %1994  ;;  %v1360_v7 = vadd.f32 1e-05, %v1328_v56 }
 0x215   : > { %v1428_v42 = vsel %vm1427_vm3, %v1993_v41, %v1424_v8  ;;  %v1430_v57 = vmul.f32 %v1995_v39, %v1359_v45  ;;  %vm1436_vm4 = vweird.f32 %v1995_v39 }
 0x216   : > { %v1534_v0 = vmul.f32 %v1428_v42, %v1342_v54  ;;  %1996 = vrsqrt.f32 %v1360_v7  ;;  %vm1437_vm6 = vmor %vm1435_vm5, %vm1436_vm4  ;;  %vm1445_vm8 = vweird.f32 %v1360_v7 }
 0x217   : > { %v1431_v30 = vmul.f32 %v1995_v39, %v1430_v57 }
 0x218   : > { %1550 = vst [vmem:[%s2670_s29 + $0x28] sm:$0xff] %v1534_v0 }
 0x219   : > { %v1432_v20 = vmul.f32 0.5, %v1431_v30  ;;  %v1210_v60 = vpop.xlane.xlu0 %1209 }
 0x21a   : > { %v1233_v9 = vmul.f32 0.0078125, %v1210_v60 }
 0x21b   : > { %v1433_v58 = vsub.f32 1.5, %v1432_v20  ;;  %v1274_v12 = vpop.xlane.xlu1 %1273 }
 0x21c   : > { %v1313_v19 = vmul.f32 %v1233_v9, %v1233_v9  ;;  %v1297_v6 = vmul.f32 0.0078125, %v1274_v12  ;;  %v1997_v11 = vpop.eup %1996  ;;  %v1345_v51 = vsub.f32 %v2611_v1, %v1233_v9 }
 0x21d   : > { %v1434_v2 = vmul.f32 %v1995_v39, %v1433_v58  ;;  %v1440_v5 = vmul.f32 %v1997_v11, %v1360_v7  ;;  %vm1446_vm7 = vweird.f32 %v1997_v11 }
 0x21e   : > { %v1329_v46 = vsub.f32 %v1297_v6, %v1313_v19  ;;  %vm1447_vm9 = vmor %vm1445_vm8, %vm1446_vm7 }
 0x21f   : > { %v1438_v49 = vsel %vm1437_vm6, %v1995_v39, %v1434_v2  ;;  %v1441_v25 = vmul.f32 %v1997_v11, %v1440_v5 }
 0x220   : > { %v1535_v24 = vmul.f32 %v1438_v49, %v1343_v61  ;;  %v1361_v38 = vadd.f32 1e-05, %v1329_v46 }
 0x221   : > { %v1442_v32 = vmul.f32 0.5, %v1441_v25 }
 0x222   : > { %1551 = vst [vmem:[%s2670_s29 + $0x30] sm:$0xff] %v1535_v24  ;;  %1998 = vrsqrt.f32 %v1361_v38  ;;  %vm1455_vm11 = vweird.f32 %v1361_v38 }
 0x223   : > { %v1212_v23 = vpop.xlane.xlu1 %1211  ;;  %v1276_v63 = vpop.xlane.xlu2 %1275  ;;  %v1443_v44 = vsub.f32 1.5, %v1442_v32 }
 0x224   : > { %v1234_v31 = vmul.f32 0.0078125, %v1212_v23  ;;  %v1298_v21 = vmul.f32 0.0078125, %v1276_v63 }
 0x225   : > { %v1444_v33 = vmul.f32 %v1997_v11, %v1443_v44 }
 0x226   : > { %v1314_v40 = vmul.f32 %v1234_v31, %v1234_v31  ;;  %v1346_v9 = vsub.f32 %v2617_v35, %v1234_v31 }
 0x227   : > { %v1448_v22 = vsel %vm1447_vm9, %v1997_v11, %v1444_v33 }
 0x228   : > { %v1999_v52 = vpop.eup %1998  ;;  %v1330_v41 = vsub.f32 %v1298_v21, %v1314_v40  ;;  %v1536_v14 = vmul.f32 %v1448_v22, %v1344_v28 }
 0x229   : > { %v1450_v26 = vmul.f32 %v1999_v52, %v1361_v38  ;;  %vm1456_vm10 = vweird.f32 %v1999_v52 }
 0x22a   : > { %v1362_v17 = vadd.f32 1e-05, %v1330_v41  ;;  %1552 = vst [vmem:[%s2670_s29 + $0x38] sm:$0xff] %v1536_v14  ;;  %vm1457_vm12 = vmor %vm1455_vm11, %vm1456_vm10 }
 0x22b   : > { %v1451_v36 = vmul.f32 %v1999_v52, %v1450_v26  ;;  %v1214_v18 = vpop.xlane.xlu2 %1213 }
 0x22c   : > { %2000 = vrsqrt.f32 %v1362_v17  ;;  %v1235_v27 = vmul.f32 0.0078125, %v1214_v18  ;;  %vm1465_vm14 = vweird.f32 %v1362_v17 }
 0x22d   : > { %v1452_v13 = vmul.f32 0.5, %v1451_v36  ;;  %v1278_v45 = vpop.xlane.xlu0 %1277 }
 0x22e   : > { %v1315_v47 = vmul.f32 %v1235_v27, %v1235_v27  ;;  %v1299_v4 = vmul.f32 0.0078125, %v1278_v45  ;;  %v1347_v32 = vsub.f32 %v2623_v53, %v1235_v27 }
 0x22f   : > { %v1453_v48 = vsub.f32 1.5, %v1452_v13 }
 0x230   : > { %v1331_v15 = vsub.f32 %v1299_v4, %v1315_v47 }
 0x231   : > { %v1454_v55 = vmul.f32 %v1999_v52, %v1453_v48 }
 0x232   : > { %v2001_v29 = vpop.eup %2000  ;;  %v1363_v50 = vadd.f32 1e-05, %v1331_v15 }
 0x233   : > { %v1458_v37 = vsel %vm1457_vm12, %v1999_v52, %v1454_v55  ;;  %v1460_v16 = vmul.f32 %v2001_v29, %v1362_v17  ;;  %vm1466_vm13 = vweird.f32 %v2001_v29 }
 0x234   : > { %v1537_v43 = vmul.f32 %v1458_v37, %v1345_v51  ;;  %2002 = vrsqrt.f32 %v1363_v50  ;;  %vm1467_vm15 = vmor %vm1465_vm14, %vm1466_vm13  ;;  %vm1475_vm1 = vweird.f32 %v1363_v50 }
 0x235   : > { %v1461_v8 = vmul.f32 %v2001_v29, %v1460_v16  ;;  %v1216_v56 = vpop.xlane.xlu0 %1215  ;;  %v1280_v39 = vpop.xlane.xlu1 %1279 }
 0x236   : > { %1553 = vst [vmem:[%s2670_s29 + $0x40] sm:$0xff] %v1537_v43  ;;  %v1236_v54 = vmul.f32 0.0078125, %v1216_v56  ;;  %v1300_v7 = vmul.f32 0.0078125, %v1280_v39 }
 0x237   : > { %v1462_v42 = vmul.f32 0.5, %v1461_v8 }
 0x238   : > { %v1316_v57 = vmul.f32 %v1236_v54, %v1236_v54  ;;  %v1348_v41 = vsub.f32 %v2629_v59, %v1236_v54 }
 0x239   : > { %v1463_v0 = vsub.f32 1.5, %v1462_v42 }
 0x23a   : > { %v2003_v30 = vpop.eup %2002  ;;  %v1332_v20 = vsub.f32 %v1300_v7, %v1316_v57 }
 0x23b   : > { %v1464_v1 = vmul.f32 %v2001_v29, %v1463_v0  ;;  %v1470_v60 = vmul.f32 %v2003_v30, %v1363_v50  ;;  %vm1476_vm0 = vweird.f32 %v2003_v30 }
 0x23c   : > { %v1364_v58 = vadd.f32 1e-05, %v1332_v20  ;;  %vm1477_vm2 = vmor %vm1475_vm1, %vm1476_vm0 }
 0x23d   : > { %v1468_v12 = vsel %vm1467_vm15, %v2001_v29, %v1464_v1  ;;  %v1471_v19 = vmul.f32 %v2003_v30, %v1470_v60  ;;  %v1218_v6 = vpop.xlane.xlu1 %1217 }
 0x23e   : > { %v1538_v11 = vmul.f32 %v1468_v12, %v1346_v9  ;;  %2004 = vrsqrt.f32 %v1364_v58  ;;  %v1237_v2 = vmul.f32 0.0078125, %v1218_v6  ;;  %vm1485_vm4 = vweird.f32 %v1364_v58 }
 0x23f   : > { %v1472_v61 = vmul.f32 0.5, %v1471_v19  ;;  %v1282_v5 = vpop.xlane.xlu2 %1281 }
 0x240   : > { %1554 = vst [vmem:[%s2670_s29 + $0x48] sm:$0xff] %v1538_v11  ;;  %v1317_v46 = vmul.f32 %v1237_v2, %v1237_v2  ;;  %v1301_v49 = vmul.f32 0.0078125, %v1282_v5  ;;  %v1349_v45 = vsub.f32 %v2635_v10, %v1237_v2 }
 0x241   : > { %v1473_v24 = vsub.f32 1.5, %v1472_v61 }
 0x242   : > { %v1333_v25 = vsub.f32 %v1301_v49, %v1317_v46 }
 0x243   : > { %v1474_v38 = vmul.f32 %v2003_v30, %v1473_v24 }
 0x244   : > { %v2005_v35 = vpop.eup %2004  ;;  %v1365_v23 = vadd.f32 1e-05, %v1333_v25 }
 0x245   : > { %v1478_v63 = vsel %vm1477_vm2, %v2003_v30, %v1474_v38  ;;  %v1480_v44 = vmul.f32 %v2005_v35, %v1364_v58  ;;  %vm1486_vm3 = vweird.f32 %v2005_v35 }
 0x246   : > { %v1539_v31 = vmul.f32 %v1478_v63, %v1347_v32  ;;  %2006 = vrsqrt.f32 %v1365_v23  ;;  %vm1487_vm5 = vmor %vm1485_vm4, %vm1486_vm3  ;;  %vm1495_vm7 = vweird.f32 %v1365_v23 }
 0x247   : > { %v1481_v33 = vmul.f32 %v2005_v35, %v1480_v44  ;;  %v1220_v27 = vpop.xlane.xlu2 %1219 }
 0x248   : > { %1555 = vst [vmem:[%s2670_s29 + $0x50] sm:$0xff] %v1539_v31  ;;  %v1238_v47 = vmul.f32 0.0078125, %v1220_v27 }
 0x249   : > { %v1482_v40 = vmul.f32 0.5, %v1481_v33 }
 0x24a   : > { %v1318_v55 = vmul.f32 %v1238_v47, %v1238_v47  ;;  %v1350_v5 = vsub.f32 %v2641_v34, %v1238_v47 }
 0x24b   : > { %v1483_v21 = vsub.f32 1.5, %v1482_v40 }
 0x24c   : > { %v2007_v28 = vpop.eup %2006 }
 0x24d   : > { %v1484_v52 = vmul.f32 %v2005_v35, %v1483_v21  ;;  %v1490_v22 = vmul.f32 %v2007_v28, %v1365_v23  ;;  %vm1496_vm6 = vweird.f32 %v2007_v28 }
 0x24e   : > { %vm1497_vm8 = vmor %vm1495_vm7, %vm1496_vm6 }
 0x24f   : > { %v1488_v53 = vsel %vm1487_vm5, %v2005_v35, %v1484_v52  ;;  %v1491_v14 = vmul.f32 %v2007_v28, %v1490_v22 }
 0x250   : > { %v1540_v26 = vmul.f32 %v1488_v53, %v1348_v41 }
 0x251   : > { %v1492_v17 = vmul.f32 0.5, %v1491_v14  ;;  %v1222_v36 = vpop.xlane.xlu0 %1221 }
 0x252   : > { %1556 = vst [vmem:[%s2670_s29 + $0x58] sm:$0xff] %v1540_v26  ;;  %v1239_v8 = vmul.f32 0.0078125, %v1222_v36 }
 0x253   : > { %v1493_v18 = vsub.f32 1.5, %v1492_v17 }
 0x254   : > { %v1319_v42 = vmul.f32 %v1239_v8, %v1239_v8 }
 0x255   : > { %v1494_v13 = vmul.f32 %v2007_v28, %v1493_v18 }
 0x257   : > { %v1498_v4 = vsel %vm1497_vm8, %v2007_v28, %v1494_v13 }
 0x258   : > { %v1541_v48 = vmul.f32 %v1498_v4, %v1349_v45 }
 0x259   : > { %v1284_v59 = vpop.xlane.xlu0 %1283  ;;  %v1224_v15 = vpop.xlane.xlu1 %1223 }
 0x25a   : > { %1557 = vst [vmem:[%s2670_s29 + $0x60] sm:$0xff] %v1541_v48  ;;  %v1302_v29 = vmul.f32 0.0078125, %v1284_v59  ;;  %v1240_v51 = vmul.f32 0.0078125, %v1224_v15 }
 0x25b   : > { %v1288_v16 = vpop.xlane.xlu2 %1287 }
 0x25c   : > { %v1334_v50 = vsub.f32 %v1302_v29, %v1318_v55  ;;  %v1320_v37 = vmul.f32 %v1240_v51, %v1240_v51  ;;  %v1304_v43 = vmul.f32 0.0078125, %v1288_v16  ;;  %v1352_v35 = vsub.f32 %v2653_v62, %v1240_v51 }
 0x25d   : > { %v1351_v62 = vsub.f32 %v2646_v3, %v1239_v8 }
 0x25e   : > { %v1366_v56 = vadd.f32 1e-05, %v1334_v50  ;;  %v1336_v39 = vsub.f32 %v1304_v43, %v1320_v37 }
 0x260   : > { %2008 = vrsqrt.f32 %v1366_v56  ;;  %v1368_v54 = vadd.f32 1e-05, %v1336_v39  ;;  %vm1505_vm10 = vweird.f32 %v1366_v56 }
 0x261   : > { %v1286_v10 = vpop.xlane.xlu1 %1285 }
 0x262   : > { %v1303_v57 = vmul.f32 0.0078125, %v1286_v10  ;;  %2010 = vrsqrt.f32 %v1368_v54  ;;  %vm1525_vm13 = vweird.f32 %v1368_v54 }
 0x264   : > { %v1335_v7 = vsub.f32 %v1303_v57, %v1319_v42 }
 0x266   : > { %v2009_v0 = vpop.eup %2008  ;;  %v1367_v30 = vadd.f32 1e-05, %v1335_v7 }
 0x267   : > { %v1500_v20 = vmul.f32 %v2009_v0, %v1366_v56  ;;  %vm1506_vm9 = vweird.f32 %v2009_v0 }
 0x268   : > { %2012 = vrsqrt.f32 %v1367_v30  ;;  %v2011_v1 = vpop.eup %2010  ;;  %vm1507_vm11 = vmor %vm1505_vm10, %vm1506_vm9  ;;  %vm1515_vm0 = vweird.f32 %v1367_v30 }
 0x269   : > { %v1501_v60 = vmul.f32 %v2009_v0, %v1500_v20  ;;  %v1520_v9 = vmul.f32 %v2011_v1, %v1368_v54  ;;  %vm1526_vm12 = vweird.f32 %v2011_v1 }
 0x26a   : > { %vm1527_vm14 = vmor %vm1525_vm13, %vm1526_vm12 }
 0x26b   : > { %v1502_v58 = vmul.f32 0.5, %v1501_v60  ;;  %v1521_v12 = vmul.f32 %v2011_v1, %v1520_v9 }
 0x26d   : > { %v1503_v19 = vsub.f32 1.5, %v1502_v58  ;;  %v1522_v11 = vmul.f32 0.5, %v1521_v12 }
 0x26e   : > { %v2013_v6 = vpop.eup %2012 }
 0x26f   : > { %v1504_v2 = vmul.f32 %v2009_v0, %v1503_v19  ;;  %v1510_v61 = vmul.f32 %v2013_v6, %v1367_v30  ;;  %v1523_v46 = vsub.f32 1.5, %v1522_v11  ;;  %vm1516_vm15 = vweird.f32 %v2013_v6 }
 0x270   : > { %vm1517_vm1 = vmor %vm1515_vm0, %vm1516_vm15 }
 0x271   : > { %v1508_v49 = vsel %vm1507_vm11, %v2009_v0, %v1504_v2  ;;  %v1511_v24 = vmul.f32 %v2013_v6, %v1510_v61  ;;  %v1524_v38 = vmul.f32 %v2011_v1, %v1523_v46 }
 0x272   : > { %v1542_v25 = vmul.f32 %v1508_v49, %v1350_v5 }
 0x273   : > { %v1512_v32 = vmul.f32 0.5, %v1511_v24  ;;  %v1528_v34 = vsel %vm1527_vm14, %v2011_v1, %v1524_v38 }
 0x274   : > { %1558 = vst [vmem:[%s2670_s29 + $0x68] sm:$0xff] %v1542_v25  ;;  %v1544_v23 = vmul.f32 %v1528_v34, %v1352_v35 }
 0x275   : > { %v1513_v63 = vsub.f32 1.5, %v1512_v32 }
 0x276   : > { %1560 = vst [vmem:[%s2670_s29 + $0x78] sm:$0xff] %v1544_v23 }
 0x277   : > { %v1514_v44 = vmul.f32 %v2013_v6, %v1513_v63 }
 0x279   : > { %v1518_v31 = vsel %vm1517_vm1, %v2013_v6, %v1514_v44 }
 0x27a   : > { %v1543_v33 = vmul.f32 %v1518_v31, %v1351_v62 }
 0x27c   : > { %1559 = vst [vmem:[%s2670_s29 + $0x70] sm:$0xff] %v1543_v33 }
 0x27d   : > { %2071 = shalt.err (!%p2068_p8)
}
 0x27e   : > { %s2119_s23 = smov 128   ;;  %s2120_s27 = smov 8  }
 0x27f   : > { %1885 = dma.vmem_to_hbm [thread:$0]  (%p2184_p5), %s1575_s19, 2048, %s1577_s8, %s1562_s9, %s2119_s23, %s2119_s23, %s2120_s27  }
 0x280 PF: > { %p1897_p9 = scmp.ge.s32.totalorder %s2110_s18, 2  ;;  %s1591_s28 = sand.u32 1, %s2098_s15  }
 0x281   : > { %s1592_s29 = scalar_lea.sflag [#allocation4], %s1591_s28 }
 0x282   : > { %p1892_p10 = pnand %p1897_p9, %p2188_p6 }
 0x284   : > { %p1893_p11 = pneg %p1892_p10 }
 0x286   : > { %2093 = dma.done.wait (%p1893_p11), %s1592_s29, 2048  }
 0x287   : > { %2095 = vsyncadd (%p1893_p11), %s1592_s29, 4294965248  ;;  %p15_p12 = scmp.ge.s32.totalorder %s2171_s21, 4   ;;  %s2766_s15 = smov %s2102_s16 }
 0x288   : > { %s2767_s16 = smov %s2106_s17  ;;  %s2768_s17 = smov %s2182_s24 }
 0x289   : > { %s2769_s18 = smov %s2171_s21  ;;  %17 = sbr.rel (!%p15_p12) target bundleno = 4 (0x4), region = 79 }
 0x28e   :  { %1598 = vsyncpa [#allocation3], 1 }
 0x28f   :  { %1600 = vsyncpa [#allocation3 + $0x1], 1 }
 0x290   :  { %1601 = vsyncpa [#allocation4], 1 }
 0x291   :  { %1603 = vsyncpa [#allocation4 + $0x1], 1 }

// kernel: tpu_custom_call.1
= control target key start
LH: loop header
LB: loop body
LE: loop exit
PB: predicated region body
PF: predicated region fallthrough
CT: control target
= control target key end

     0   :  { %9 = vsyncpa [#allocation3], 0  ;;  %s2759_s0 = inlined_call_operand.vmem [shape: f32[256,128], index: 0, kind: input, shape index: {}]   ;;  %s2760_s1 = inlined_call_operand.vmem [shape: f32[256,4], index: 1, kind: input, shape index: {}]   ;;  %s2761_s2 = inlined_call_operand.hbm [shape: bf16[512,128], index: 2, kind: input, shape index: {}]   ;;  %s2762_s3 = inlined_call_operand.vmem [shape: f32[4,128], index: 3, kind: input, shape index: {}]   ;;  %s2763_s4 = inlined_call_operand.hbm [shape: f32[256,128], index: 4, kind: output, shape index: {}]  }
   0x1   :  { %10 = vsyncpa [#allocation4], 0 }
   0x2   :  { %12 = vsyncpa [#allocation4 + $0x1], 0  ;;  %s2146_s15 = smov 0   ;;  %s2148_s16 = smov 0  }
   0x3   :  { %s2150_s17 = smov 0   ;;  %s2152_s18 = smov 0  }
   0x4 LB: > { %s2167_s19 = sadd.s32 4294967295, %s2110_s18   ;;  %s1663_s20 = sadd.s32 4294967294, %s2110_s18   ;;  %s2110_s18 = sphi %s2152_s18, %s2769_s18   ;;  %s2106_s17 = sphi %s2150_s17, %s2768_s17   ;;  %s2102_s16 = sphi %s2148_s16, %s2767_s16   ;;  %s2098_s15 = sphi %s2146_s15, %s2766_s15  }
   0x5   : > { %s2171_s21 = sadd.s32 1, %s2110_s18   ;;  %s119_s22 = sadd.s32 1, %s2106_s17 }
   0x6   : > { %s116_s23 = ssub.s32 %s2110_s18, %s2171_s21  ;;  %p129_p0 = scmp.ne.s32.totalorder %s2106_s17, %s2102_s16 }
   0x7   : > { %p117_p1 = scmp.eq.s32.totalorder %s116_s23, 0  ;;  %p130_p2 = scmp.eq.s32.totalorder %s2167_s19, 1 }
   0x8   : > { %p135_p3 = scmp.ne.s32.totalorder %s2102_s16, %s2098_s15  ;;  %p136_p4 = scmp.eq.s32.totalorder %s1663_s20, 1 }
   0x9   : > { %s2182_s24 = scalar_select %p117_p1, %s2106_s17, %s119_s22  }
   0xa   : > { %p2184_p5 = por %p130_p2, %p129_p0  ;;  %p2188_p6 = por %p136_p4, %p135_p3 }
   0xb   : > { %p1664_p7 = scmp.ge.s32.totalorder %s2110_s18, 1  ;;  %p143_p8 = scmp.lt.s32.totalorder %s2110_s18, 3 }
   0xc   : > { %p1895_p9 = scmp.eq.s32.totalorder %s2167_s19, 0  ;;  %s154_s29 = sshll.u32 %s2761_s2, 4  ;;  %s155_s29 = int_to_ptr.hbm [resolvable:$true] %s154_s29 }
   0xd   : > { %p144_p10 = pnand %p1664_p7, %p143_p8  ;;  %s2112_s30 = smov [#allocation2]  }
   0xe   : > { %s156_s5 = sshll.u32 %s2112_s30, 4  ;;  %s2113_s6 = smov 64   ;;  %s157_s5 = int_to_ptr.vmem [resolvable:$true] %s156_s5 }
   0xf   : > { %p1887_p11 = pneg %p144_p10  ;;  %s2114_s7 = smov 4  }
  0x10   : > { %193 = sbr.rel (%p144_p10) target bundleno = 640 (0x280), region = 36 }
  0x11   : > { %p1888_p12 = pnand %p1895_p9, %p1887_p11 }
  0x13   : > { %1890 = dma.hbm_to_vmem [thread:$0]  (!%p1888_p12), %s155_s29, 4096, %s157_s5, [#allocation3], %s2113_s6, %s2113_s6, %s2114_s7  }
  0x15   : > { %2089 = dma.done.wait (%p1895_p9), [#allocation3], 4096  }
  0x16   : > { %2091 = vsyncadd (%p1895_p9), [#allocation3], 4294963200  ;;  %s1670_s8 = sshll.u32 %s2167_s19, 4  ;;  %v2115_v0 = vmov 0   ;;  %v2116_v17 = vmov 1   ;;  %v1831_v18 = vld [vmem:[#allocation2 + $0x38] sm:$0xff] }
  0x17   : > { %1941 = vset.pattern.permute.xlu2 %v2115_v0  ;;  %1940 = vset.pattern.permute.xlu1 %v2115_v0  ;;  %p226_p13 = scmp.lt.s32.totalorder %s1670_s8, 31  ;;  %v1830_v19 = vld [vmem:[#allocation2 + $0x30] sm:$0xff]  ;;  %v1829_v20 = vld [vmem:[#allocation2 + $0x28] sm:$0xff]  ;;  %v2117_v21 = vmov 2   ;;  %v2118_v22 = vmov 3   ;;  %v1828_v23 = vld [vmem:[#allocation2 + $0x20] sm:$0xff] }
  0x18   : > { %1939 = vset.pattern.permute.xlu0 %v2115_v0  ;;  %1857 = vmatpush.bf16.msra.mxu1 %v1831_v18  ;;  %v1827_v24 = vld [vmem:[#allocation2 + $0x18] sm:$0xff]  ;;  %v1826_v25 = vld [vmem:[#allocation2 + $0x10] sm:$0xff]  ;;  %v1825_v26 = vld [vmem:[#allocation2 + $0x8] sm:$0xff]  ;;  %vm1124_vm0 = vcmask 1043456   ;;  %vm1091_vm1 = vcmask 31744   ;;  %s222_s27 = sand.u32 1, %s2102_s16  }
  0x19   : > { %s2771_s8 = smov (!%p226_p13, %s1670_s8), 31  ;;  %895 = vmatpush.bf16.msra.mxu0 %v1831_v18  ;;  %1858 = vmatpush.bf16.msra.mxu2 %v1831_v18  ;;  %v1824_v27 = vld [vmem:[#allocation2] sm:$0xff]  ;;  %v1839_v32 = vld [vmem:[#allocation2 + $0x78] sm:$0xff]  ;;  %v1838_v36 = vld [vmem:[#allocation2 + $0x70] sm:$0xff]  ;;  %s1669_s28 = sshll.u32 %s222_s27, 7 }
  0x1a   : > { %s1671_s9 = sshll.u32 %s2771_s8, 3  ;;  %1859 = vmatpush.bf16.msra.mxu3 %v1831_v18  ;;  %v1837_v38 = vld [vmem:[#allocation2 + $0x68] sm:$0xff]  ;;  %v1836_v39 = vld [vmem:[#allocation2 + $0x60] sm:$0xff]  ;;  %v1847_v40 = vld [vmem:[#allocation2 + $0xb8] sm:$0xff]  ;;  %s2670_s29 = scalar_lea.vmem [#allocation5], %s1669_s28 }
  0x1b   : > { %s2213_s12 = scalar_lea.vmem %s2760_s1, %s1671_s9  ;;  %s2312_s20 = scalar_lea.vmem %s2759_s0, %s1671_s9  ;;  %v1835_v43 = vld [vmem:[#allocation2 + $0x58] sm:$0xff]  ;;  %v1846_v45 = vld [vmem:[#allocation2 + $0xb0] sm:$0xff]  ;;  %v1845_v48 = vld [vmem:[#allocation2 + $0xa8] sm:$0xff] }
  0x1c   : > { %v2216_v1 = vld [vmem:[%s2213_s12 + $0x20] sm:$0xff]  ;;  %v2219_v2 = vld [vmem:[%s2213_s12 + $0x10] sm:$0xff]  ;;  %v2228_v4 = vld [vmem:[%s2213_s12 + $0x28] sm:$0xff]  ;;  %1860 = vmatpush.bf16.msra.mxu1 %v1830_v19  ;;  %s1856_s30 = sshll.u32 %s2167_s19, 7  ;;  %s1574_s19 = sshll.u32 %s2670_s29, 4  ;;  %s1575_s19 = int_to_ptr.vmem [resolvable:$true] %s1574_s19 }
  0x1d   : > { %v2222_v3 = vld [vmem:[%s2213_s12] sm:$0xff]  ;;  %292 = vperm.xlu2 %1941, %v2216_v1   ;;  %282 = vperm.xlu1 %1940, %v2219_v2   ;;  %v2231_v5 = vld [vmem:[%s2213_s12 + $0x18] sm:$0xff]  ;;  %v2234_v6 = vld [vmem:[%s2213_s12 + $0x8] sm:$0xff]  ;;  %s1573_s7 = scalar_lea.hbm %s2763_s4, %s1856_s30  ;;  %s1562_s9 = scalar_lea.sflag [#allocation4], %s222_s27 }
  0x1e   : > { %272 = vperm.xlu0 %1939, %v2222_v3   ;;  %v2240_v7 = vld [vmem:[%s2213_s12 + $0x40] sm:$0xff]  ;;  %v2243_v8 = vld [vmem:[%s2213_s12 + $0x38] sm:$0xff]  ;;  %v2246_v9 = vld [vmem:[%s2213_s12 + $0x30] sm:$0xff]  ;;  %896 = vmatpush.bf16.msra.mxu0 %v1830_v19  ;;  %s1576_s8 = sshll.u32 %s1573_s7, 4  ;;  %s2064_s14 = scalar_lea.hbm %s2763_s4, 256  ;;  %s1577_s8 = int_to_ptr.hbm [resolvable:$true] %s1576_s8 }
  0x1f   : > { %v2252_v10 = vld [vmem:[%s2213_s12 + $0x58] sm:$0xff]  ;;  %v2255_v11 = vld [vmem:[%s2213_s12 + $0x50] sm:$0xff]  ;;  %v2258_v12 = vld [vmem:[%s2213_s12 + $0x48] sm:$0xff]  ;;  %1861 = vmatpush.bf16.msra.mxu2 %v1830_v19  ;;  %1862 = vmatpush.bf16.msra.mxu3 %v1830_v19  ;;  %s2058_s10 = sshra.s32 %s1577_s8, 4  ;;  %s2059_s10 = int_to_ptr.hbm [resolvable:$true] %s2058_s10 }
  0x20   : > { %v2264_v13 = vld [vmem:[%s2213_s12 + $0x70] sm:$0xff]  ;;  %v2267_v14 = vld [vmem:[%s2213_s12 + $0x68] sm:$0xff]  ;;  %v2270_v15 = vld [vmem:[%s2213_s12 + $0x60] sm:$0xff]  ;;  %1863 = vmatpush.bf16.msra.mxu1 %v1829_v20  ;;  %s2060_s11 = scalar_lea.hbm %s2059_s10, 128  ;;  %p2065_p3 = scmp.lt.s32.totalorder %s2059_s10, %s2763_s4 }
  0x21   : > { %v2276_v16 = vld [vmem:[%s2213_s12 + $0x78] sm:$0xff]  ;;  %v2317_v29 = vld [vmem:[%s2312_s20 + $0x20] sm:$0xff]  ;;  %v2324_v30 = vld [vmem:[%s2312_s20 + $0x28] sm:$0xff]  ;;  %p2061_p0 = scmp.ne.s32.totalorder %s2059_s10, %s2060_s11  ;;  %p2066_p4 = scmp.lt.s32.totalorder %s2064_s14, %s2060_s11 }
  0x22   : > { %897 = vmatpush.bf16.msra.mxu0 %v1829_v20  ;;  %v2346_v46 = vld [vmem:[%s2312_s20] sm:$0xff]  ;;  %v1834_v47 = vld [vmem:[#allocation2 + $0x50] sm:$0xff]  ;;  %v2351_v49 = vld [vmem:[%s2312_s20 + $0x8] sm:$0xff] }
  0x23   : > { %1864 = vmatpush.bf16.msra.mxu2 %v1829_v20  ;;  %1865 = vmatpush.bf16.msra.mxu3 %v1829_v20  ;;  %v1833_v54 = vld [vmem:[#allocation2 + $0x48] sm:$0xff]  ;;  %v1855_v55 = vld [vmem:[#allocation2 + $0xf8] sm:$0xff]  ;;  %v1844_v58 = vld [vmem:[#allocation2 + $0xa0] sm:$0xff]  ;;  %p2062_p1 = pnand %p2061_p0, %p2184_p5  ;;  %p2067_p7 = por %p2066_p4, %p2065_p3 }
  0x24   : > { %1866 = vmatpush.bf16.msra.mxu1 %v1828_v23  ;;  %v1854_v59 = vld [vmem:[#allocation2 + $0xf0] sm:$0xff]  ;;  %v2362_v60 = vld [vmem:[%s2312_s20 + $0x38] sm:$0xff]  ;;  %v1832_v61 = vld [vmem:[#allocation2 + $0x40] sm:$0xff] }
  0x25   : > { %297 = vperm.xlu2 %1941, %v2228_v4   ;;  %287 = vperm.xlu1 %1940, %v2231_v5   ;;  %v2365_v62 = vld [vmem:[%s2312_s20 + $0x30] sm:$0xff]  ;;  %v1843_v63 = vld [vmem:[#allocation2 + $0x98] sm:$0xff]  ;;  %v1853_v0 = vld [vmem:[#allocation2 + $0xe8] sm:$0xff]  ;;  %p2063_p2 = pneg %p2062_p1 }
  0x26   : > { %277 = vperm.xlu0 %1939, %v2234_v6   ;;  %898 = vmatpush.bf16.msra.mxu0 %v1828_v23 }
  0x27   : > { %1867 = vmatpush.bf16.msra.mxu2 %v1828_v23  ;;  %1868 = vmatpush.bf16.msra.mxu3 %v1828_v23  ;;  %p2068_p8 = pnand %p2067_p7, %p2063_p2 }
  0x28   : > { %1869 = vmatpush.bf16.msra.mxu1 %v1827_v24 }
  0x2a   : > { %899 = vmatpush.bf16.msra.mxu0 %v1827_v24 }
  0x2b   : > { %1870 = vmatpush.bf16.msra.mxu2 %v1827_v24  ;;  %1871 = vmatpush.bf16.msra.mxu3 %v1827_v24 }
  0x2c   : > { %1872 = vmatpush.bf16.msra.mxu1 %v1826_v25 }
  0x2d   : > { %312 = vperm.xlu2 %1941, %v2240_v7   ;;  %307 = vperm.xlu1 %1940, %v2243_v8  }
  0x2e   : > { %302 = vperm.xlu0 %1939, %v2246_v9   ;;  %900 = vmatpush.bf16.msra.mxu0 %v1826_v25 }
  0x2f   : > { %1873 = vmatpush.bf16.msra.mxu2 %v1826_v25  ;;  %1874 = vmatpush.bf16.msra.mxu3 %v1826_v25 }
  0x30   : > { %1875 = vmatpush.bf16.msra.mxu1 %v1825_v26 }
  0x32   : > { %901 = vmatpush.bf16.msra.mxu0 %v1825_v26 }
  0x33   : > { %1876 = vmatpush.bf16.msra.mxu2 %v1825_v26  ;;  %1877 = vmatpush.bf16.msra.mxu3 %v1825_v26  ;;  %v1842_v26 = vld [vmem:[#allocation2 + $0x90] sm:$0xff] }
  0x34   : > { %1878 = vmatpush.bf16.msra.mxu1 %v1824_v27 }
  0x35   : > { %327 = vperm.xlu2 %1941, %v2252_v10   ;;  %322 = vperm.xlu1 %1940, %v2255_v11  }
  0x36   : > { %317 = vperm.xlu0 %1939, %v2258_v12   ;;  %902 = vmatpush.bf16.msra.mxu0 %v1824_v27 }
  0x37   : > { %1879 = vmatpush.bf16.msra.mxu2 %v1824_v27  ;;  %1880 = vmatpush.bf16.msra.mxu3 %v1824_v27  ;;  %v2377_v27 = vld [vmem:[%s2312_s20 + $0x18] sm:$0xff] }
  0x38   : > { %944 = vmatpush.bf16.msrb.mxu1 %v1839_v32  ;;  %v2383_v32 = vld [vmem:[%s2312_s20 + $0x10] sm:$0xff] }
  0x3b   : > { %993 = vmatpush.bf16.msrb.mxu2 %v1847_v40  ;;  %1042 = vmatpush.bf16.msrb.mxu3 %v1855_v55  ;;  %v1849_v55 = vld [vmem:[#allocation2 + $0xc8] sm:$0xff] }
  0x3c   : > { %945 = vmatpush.bf16.msrb.mxu1 %v1838_v36 }
  0x3d   : > { %342 = vperm.xlu2 %1941, %v2264_v13   ;;  %337 = vperm.xlu1 %1940, %v2267_v14  }
  0x3e   : > { %332 = vperm.xlu0 %1939, %v2270_v15  }
  0x3f   : > { %994 = vmatpush.bf16.msrb.mxu2 %v1846_v45  ;;  %1043 = vmatpush.bf16.msrb.mxu3 %v1854_v59 }
  0x40   : > { %946 = vmatpush.bf16.msrb.mxu1 %v1837_v38 }
  0x43   : > { %995 = vmatpush.bf16.msrb.mxu2 %v1845_v48  ;;  %1044 = vmatpush.bf16.msrb.mxu3 %v1853_v0  ;;  %v1848_v0 = vld [vmem:[#allocation2 + $0xc0] sm:$0xff] }
  0x44   : > { %947 = vmatpush.bf16.msrb.mxu1 %v1836_v39 }
  0x45   : > { %1943 = vset.pattern.permute.xlu2 %v2116_v17  ;;  %1942 = vset.pattern.permute.xlu1 %v2116_v17 }
  0x46   : > { %347 = vperm.xlu0 %1939, %v2276_v16   ;;  %371 = vperm.xlu2 %1943, %v2234_v6  }
  0x47   : > { %367 = vperm.xlu1 %1942, %v2222_v3   ;;  %996 = vmatpush.bf16.msrb.mxu2 %v1844_v58 }
  0x48   : > { %948 = vmatpush.bf16.msrb.mxu1 %v1835_v43 }
  0x4b   : > { %997 = vmatpush.bf16.msrb.mxu2 %v1843_v63  ;;  %v2419_v63 = vld [vmem:[%s2312_s20 + $0x50] sm:$0xff] }
  0x4c   : > { %949 = vmatpush.bf16.msrb.mxu1 %v1834_v47 }
  0x4e   : > { %1944 = vset.pattern.permute.xlu0 %v2116_v17  ;;  %383 = vperm.xlu2 %1943, %v2216_v1  }
  0x4f   : > { %379 = vperm.xlu1 %1942, %v2231_v5   ;;  %375 = vperm.xlu0 %1944, %v2219_v2  }
  0x50   : > { %950 = vmatpush.bf16.msrb.mxu1 %v1833_v54  ;;  %998 = vmatpush.bf16.msrb.mxu2 %v1842_v26 }
  0x54   : > { %951 = vmatpush.bf16.msrb.mxu1 %v1832_v61 }
  0x56   : > { %1946 = vset.pattern.permute.xlu2 %v2117_v21 }
  0x57   : > { %1945 = vset.pattern.permute.xlu1 %v2117_v21  ;;  %1947 = vset.pattern.permute.xlu0 %v2118_v22 }
  0x58   : > { %451 = vperm.xlu2 %1946, %v2234_v6   ;;  %447 = vperm.xlu1 %1945, %v2222_v3  }
  0x59   : > { %527 = vperm.xlu0 %1947, %v2222_v3  }
  0x60   : > { %455 = vperm.xlu2 %1946, %v2219_v2   ;;  %1948 = vset.pattern.permute.xlu1 %v2118_v22 }
  0x61   : > { %539 = vperm.xlu0 %1947, %v2231_v5   ;;  %531 = vperm.xlu1 %1948, %v2234_v6  }
  0x68   : > { %1950 = vset.pattern.permute.xlu2 %v2118_v22 }
  0x69   : > { %543 = vperm.xlu0 %1947, %v2216_v1   ;;  %535 = vperm.xlu2 %1950, %v2219_v2  }
  0x6a   : > { %1949 = vset.pattern.permute.xlu1 %v2117_v21 }
  0x6b   : > { %459 = vperm.xlu1 %1949, %v2231_v5  }
  0x71   : > { %1954 = vset.pattern.permute.xlu0 %v2117_v21  ;;  %1951 = vset.pattern.permute.xlu2 %v2117_v21 }
  0x72   : > { %471 = vperm.xlu0 %1954, %v2246_v9   ;;  %467 = vperm.xlu2 %1951, %v2228_v4  }
  0x73   : > { %463 = vperm.xlu1 %1949, %v2216_v1  }
  0x77   : > { %v293_v28 = vpop.permute.xlu2 %292 }
  0x78   : > { %v354_v31 = vmul.f32 %v293_v28, %v2317_v29  ;;  %v1852_v28 = vld [vmem:[#allocation2 + $0xe0] sm:$0xff] }
  0x79   : > { %1045 = vmatpush.bf16.msrb.mxu3 %v1852_v28 }
  0x7a   : > { %1959 = vset.pattern.permute.xlu0 %v2116_v17  ;;  %1953 = vset.pattern.permute.xlu2 %v2116_v17 }
  0x7b   : > { %1952 = vset.pattern.permute.xlu1 %v2118_v22  ;;  %395 = vperm.xlu0 %1959, %v2243_v8  }
  0x7c   : > { %387 = vperm.xlu2 %1953, %v2228_v4   ;;  %547 = vperm.xlu1 %1952, %v2228_v4  }
  0x7f   : > { %v298_v33 = vpop.permute.xlu2 %297 }
  0x80   : > { %v355_v34 = vmul.f32 %v298_v33, %v2324_v30  ;;  %v2386_v33 = vld [vmem:[%s2312_s20 + $0x48] sm:$0xff] }
  0x82   : > { %v615_v35 = vpack.c.bf16 %v355_v34, %v354_v31  ;;  %v2380_v31 = vld [vmem:[%s2312_s20 + $0x40] sm:$0xff]  ;;  %v1841_v34 = vld [vmem:[#allocation2 + $0x88] sm:$0xff] }
  0x83   : > { %399 = vperm.xlu0 %1959, %v2240_v7   ;;  %999 = vmatpush.bf16.msrb.mxu2 %v1841_v34 }
  0x84   : > { %1955 = vset.pattern.permute.xlu1 %v2117_v21  ;;  %1956 = vset.pattern.permute.xlu2 %v2118_v22 }
  0x85   : > { %475 = vperm.xlu1 %1955, %v2243_v8   ;;  %551 = vperm.xlu2 %1956, %v2246_v9  }
  0x86   : > { %913 = vmatmul.bf16.vlgmr.msra.gmra.mxu1 %v615_v35  ;;  %v1851_v35 = vld [vmem:[#allocation2 + $0xd8] sm:$0xff] }
  0x87   : > { %v2333_v37 = vpop.permute.xlu2 %312  ;;  %1046 = vmatpush.bf16.msrb.mxu3 %v1851_v35 }
  0x88   : > { %v358_v43 = vmul.f32 %v2333_v37, %v2380_v31  ;;  %v606_v37 = vld [vmem:[%s2762_s3] sm:$0xf] }
  0x89   : > { %1802 = vmatpush.msk.msrb.mxu0 %vm1124_vm0, %v606_v37 }
  0x8b   : > { %1966 = vset.pattern.permute.xlu0 %v2117_v21 }
  0x8c   : > { %491 = vperm.xlu0 %1966, %v2252_v10  }
  0x8d   : > { %1957 = vset.pattern.permute.xlu1 %v2118_v22  ;;  %1958 = vset.pattern.permute.xlu2 %v2116_v17 }
  0x8e   : > { %555 = vperm.xlu1 %1957, %v2243_v8   ;;  %391 = vperm.xlu2 %1958, %v2246_v9  }
  0x8f   : > { %v2341_v41 = vpop.permute.xlu2 %327  ;;  %v2343_v42 = vpop.permute.xlu1 %282 }
  0x90   : > { %v273_v44 = vpop.permute.xlu0 %272 }
  0x91   : > { %v350_v50 = vmul.f32 %v273_v44, %v2346_v46  ;;  %v352_v44 = vmul.f32 %v2343_v42, %v2383_v32  ;;  %v2408_v42 = vld [vmem:[%s2312_s20 + $0x60] sm:$0xff] }
  0x94   : > { %495 = vperm.xlu0 %1966, %v2270_v15  }
  0x96   : > { %1960 = vset.pattern.permute.xlu1 %v2117_v21  ;;  %1961 = vset.pattern.permute.xlu2 %v2117_v21 }
  0x97   : > { %479 = vperm.xlu1 %1960, %v2240_v7   ;;  %v288_v51 = vpop.permute.xlu1 %287  ;;  %483 = vperm.xlu2 %1961, %v2258_v12   ;;  %v2357_v52 = vpop.permute.xlu2 %342 }
  0x98   : > { %v278_v53 = vpop.permute.xlu0 %277  ;;  %v353_v36 = vmul.f32 %v288_v51, %v2377_v27  ;;  %v1850_v51 = vld [vmem:[#allocation2 + $0xd0] sm:$0xff] }
  0x99   : > { %v351_v56 = vmul.f32 %v278_v53, %v2351_v49  ;;  %v2402_v53 = vld [vmem:[%s2312_s20 + $0x68] sm:$0xff]  ;;  %1047 = vmatpush.bf16.msrb.mxu3 %v1850_v51 }
  0x9a   : > { %v611_v47 = vpack.c.bf16 %v353_v36, %v352_v44 }
  0x9b   : > { %v607_v57 = vpack.c.bf16 %v351_v56, %v350_v50  ;;  %v1840_v50 = vld [vmem:[#allocation2 + $0x80] sm:$0xff] }
  0x9c   : > { %1973 = vset.pattern.permute.xlu0 %v2118_v22  ;;  %1000 = vmatpush.bf16.msrb.mxu2 %v1840_v50 }
  0x9d   : > { %903 = vmatmul.bf16.vlgmr.msra.gmra.mxu0 %v607_v57  ;;  %579 = vperm.xlu0 %1973, %v2267_v14  }
  0x9e   : > { %1048 = vmatpush.bf16.msrb.mxu3 %v1849_v55 }
  0x9f   : > { %1962 = vset.pattern.permute.xlu1 %v2118_v22  ;;  %v308_v18 = vpop.permute.xlu1 %307  ;;  %1963 = vset.pattern.permute.xlu2 %v2118_v22 }
  0xa0   : > { %559 = vperm.xlu1 %1962, %v2240_v7   ;;  %v357_v19 = vmul.f32 %v308_v18, %v2362_v60  ;;  %v303_v20 = vpop.permute.xlu0 %302  ;;  %v2372_v23 = vpop.permute.xlu2 %371  ;;  %563 = vperm.xlu2 %1963, %v2258_v12   ;;  %v2422_v18 = vld [vmem:[%s2312_s20 + $0x58] sm:$0xff] }
  0xa1   : > { %v356_v24 = vmul.f32 %v303_v20, %v2365_v62  ;;  %v431_v20 = vmul.f32 %v2372_v23, %v2351_v49  ;;  %v2436_v23 = vld [vmem:[%s2312_s20 + $0x78] sm:$0xff] }
  0xa2   : > { %1049 = vmatpush.bf16.msrb.mxu3 %v1848_v0 }
  0xa3   : > { %v619_v25 = vpack.c.bf16 %v357_v19, %v356_v24  ;;  %v361_v24 = vmul.f32 %v2341_v41, %v2422_v18 }
  0xa5   : > { %918 = vmatmul.bf16.gmra.mxu1 %v619_v25  ;;  %583 = vperm.xlu0 %1973, %v2264_v13  }
  0xa7   : > { %v323_v38 = vpop.permute.xlu1 %322 }
  0xa8   : > { %1964 = vset.pattern.permute.xlu1 %v2116_v17  ;;  %v318_v39 = vpop.permute.xlu0 %317  ;;  %v2391_v40 = vpop.permute.xlu2 %383  ;;  %1965 = vset.pattern.permute.xlu2 %v2117_v21  ;;  %v360_v19 = vmul.f32 %v323_v38, %v2419_v63  ;;  %v2439_v38 = vld [vmem:[%s2312_s20 + $0x70] sm:$0xff] }
  0xa9   : > { %403 = vperm.xlu1 %1964, %v2258_v12   ;;  %v359_v45 = vmul.f32 %v318_v39, %v2386_v33  ;;  %487 = vperm.xlu2 %1965, %v2255_v11   ;;  %v364_v39 = vmul.f32 %v2357_v52, %v2439_v38 }
  0xaa   : > { %v627_v35 = vpack.c.bf16 %v361_v24, %v360_v19 }
  0xab   : > { %v623_v48 = vpack.c.bf16 %v359_v45, %v358_v43 }
  0xad   : > { %908 = vmatmul.bf16.gmra.mxu0 %v611_v47  ;;  %923 = vmatmul.bf16.vlgmr.msra.gmra.mxu2 %v623_v48 }
  0xae   : > { %1980 = vset.pattern.permute.xlu0 %v2116_v17 }
  0xaf   : > { %v338_v54 = vpop.permute.xlu1 %337  ;;  %427 = vperm.xlu0 %1980, %v2276_v16  }
  0xb0   : > { %v363_v56 = vmul.f32 %v338_v54, %v2402_v53  ;;  %v333_v57 = vpop.permute.xlu0 %332 }
  0xb1   : > { %1967 = vset.pattern.permute.xlu1 %v2118_v22  ;;  %v362_v58 = vmul.f32 %v333_v57, %v2408_v42  ;;  %1968 = vset.pattern.permute.xlu2 %v2118_v22 }
  0xb2   : > { %567 = vperm.xlu1 %1967, %v2255_v11   ;;  %v452_v59 = vpop.permute.xlu2 %451  ;;  %571 = vperm.xlu2 %1968, %v2252_v10  }
  0xb3   : > { %v631_v61 = vpack.c.bf16 %v363_v56, %v362_v58  ;;  %v511_v52 = vmul.f32 %v452_v59, %v2351_v49 }
  0xb5   : > { %933 = vmatmul.bf16.vlgmr.msra.gmra.mxu3 %v631_v61 }
  0xb7   : > { %1981 = vset.pattern.permute.xlu0 %v2118_v22 }
  0xb8   : > { %v348_v25 = vpop.permute.xlu0 %347 }
  0xb9   : > { %v368_v26 = vpop.permute.xlu1 %367  ;;  %v365_v41 = vmul.f32 %v348_v25, %v2436_v23 }
  0xba   : > { %1969 = vset.pattern.permute.xlu1 %v2116_v17  ;;  %v430_v28 = vmul.f32 %v368_v26, %v2346_v46  ;;  %v456_v34 = vpop.permute.xlu2 %455  ;;  %1970 = vset.pattern.permute.xlu2 %v2116_v17 }
  0xbb   : > { %407 = vperm.xlu1 %1969, %v2255_v11   ;;  %411 = vperm.xlu2 %1970, %v2252_v10   ;;  %v635_v47 = vpack.c.bf16 %v365_v41, %v364_v39 }
  0xbc   : > { %v608_v36 = vpack.c.bf16 %v431_v20, %v430_v28 }
  0xbd   : > { %928 = vmatmul.bf16.gmra.mxu2 %v627_v35  ;;  %1803 = vmatmul.msk.f32.vlgmr.msrb.gmra.mxu0 %vm1091_vm1, %v2222_v3 }
  0xbe   : > { %952 = vmatmul.bf16.vlgmr.msrb.gmra.mxu1 %v608_v36 }
  0xc1   : > { %v380_v43 = vpop.permute.xlu1 %379  ;;  %v376_v44 = vpop.permute.xlu0 %375 }
  0xc2   : > { %v433_v48 = vmul.f32 %v380_v43, %v2377_v27  ;;  %v432_v3 = vmul.f32 %v376_v44, %v2383_v32 }
  0xc3   : > { %1971 = vset.pattern.permute.xlu1 %v2117_v21  ;;  %v536_v45 = vpop.permute.xlu2 %535  ;;  %1972 = vset.pattern.permute.xlu2 %v2118_v22 }
  0xc4   : > { %499 = vperm.xlu1 %1971, %v2267_v14   ;;  %575 = vperm.xlu2 %1972, %v2270_v15   ;;  %v612_v55 = vpack.c.bf16 %v433_v48, %v432_v3 }
  0xc5   : > { %938 = vmatmul.bf16.gmra.mxu3 %v635_v47  ;;  %1804 = vmatmul.msk.f32.gmra.mxu0 %vm1091_vm1, %v2234_v6 }
  0xca   : > { %v448_v50 = vpop.permute.xlu1 %447 }
  0xcb   : > { %v510_v51 = vmul.f32 %v448_v50, %v2346_v46  ;;  %v528_v37 = vpop.permute.xlu0 %527 }
  0xcc   : > { %1974 = vset.pattern.permute.xlu1 %v2116_v17  ;;  %v468_v54 = vpop.permute.xlu2 %467  ;;  %1975 = vset.pattern.permute.xlu2 %v2116_v17  ;;  %v590_v6 = vmul.f32 %v528_v37, %v2346_v46 }
  0xcd   : > { %v609_v56 = vpack.c.bf16 %v511_v52, %v510_v51  ;;  %415 = vperm.xlu1 %1974, %v2270_v15   ;;  %419 = vperm.xlu2 %1975, %v2267_v14  }
  0xce   : > { %957 = vmatmul.bf16.gmra.mxu1 %v612_v55  ;;  %1805 = vmatmul.msk.f32.gmra.mxu0 %vm1091_vm1, %v2219_v2  ;;  %v434_v2 = vmul.f32 %v2391_v40, %v2317_v29 }
  0xcf   : > { %1001 = vmatmul.bf16.vlgmr.msrb.gmra.mxu2 %v609_v56 }
  0xd3   : > { %v532_v57 = vpop.permute.xlu1 %531  ;;  %v540_v58 = vpop.permute.xlu0 %539 }
  0xd4   : > { %v591_v59 = vmul.f32 %v532_v57, %v2351_v49  ;;  %v593_v40 = vmul.f32 %v540_v58, %v2377_v27 }
  0xd5   : > { %1976 = vset.pattern.permute.xlu1 %v2117_v21  ;;  %1977 = vset.pattern.permute.xlu2 %v2117_v21  ;;  %v512_v21 = vmul.f32 %v456_v34, %v2383_v32 }
  0xd6   : > { %v610_v61 = vpack.c.bf16 %v591_v59, %v590_v6  ;;  %v388_v0 = vpop.permute.xlu2 %387  ;;  %503 = vperm.xlu1 %1976, %v2264_v13   ;;  %507 = vperm.xlu2 %1977, %v2276_v16  }
  0xd7   : > { %v435_v19 = vmul.f32 %v388_v0, %v2324_v30  ;;  %1806 = vmatmul.msk.f32.gmra.mxu0 %vm1091_vm1, %v2231_v5  ;;  %v592_v5 = vmul.f32 %v536_v45, %v2383_v32 }
  0xd8   : > { %1050 = vmatmul.bf16.vlgmr.msrb.gmra.mxu3 %v610_v61 }
  0xd9   : > { %v616_v49 = vpack.c.bf16 %v435_v19, %v434_v2 }
  0xdb   : > { %v544_v46 = vpop.permute.xlu0 %543 }
  0xdd   : > { %v460_v20 = vpop.permute.xlu1 %459 }
  0xde   : > { %v513_v24 = vmul.f32 %v460_v20, %v2377_v27  ;;  %1978 = vset.pattern.permute.xlu1 %v2118_v22  ;;  %962 = vmatmul.bf16.gmra.mxu1 %v616_v49  ;;  %v614_v22 = vpack.c.bf16 %v593_v40, %v592_v5 }
  0xdf   : > { %587 = vperm.xlu1 %1978, %v2276_v16   ;;  %v552_v25 = vpop.permute.xlu2 %551  ;;  %1979 = vset.pattern.permute.xlu2 %v2116_v17  ;;  %v515_v17 = vmul.f32 %v468_v54, %v2324_v30 }
  0xe0   : > { %v613_v26 = vpack.c.bf16 %v513_v24, %v512_v21  ;;  %423 = vperm.xlu2 %1979, %v2264_v13   ;;  %1807 = vmatmul.msk.f32.gmra.mxu0 %vm1091_vm1, %v2216_v1 }
  0xe2   : > { %1006 = vmatmul.bf16.gmra.mxu2 %v613_v26 }
  0xe4   : > { %v472_v28 = vpop.permute.xlu0 %471 }
  0xe5   : > { %v464_v34 = vpop.permute.xlu1 %463  ;;  %v516_v48 = vmul.f32 %v472_v28, %v2365_v62 }
  0xe6   : > { %v514_v36 = vmul.f32 %v464_v34, %v2317_v29 }
  0xe8   : > { %1055 = vmatmul.bf16.gmra.mxu3 %v614_v22  ;;  %1808 = vmatmul.msk.f32.gmra.mxu0 %vm1091_vm1, %v2228_v4  ;;  %v392_v35 = vpop.permute.xlu2 %391  ;;  %v617_v43 = vpack.c.bf16 %v515_v17, %v514_v36  ;;  %v594_v4 = vmul.f32 %v544_v46, %v2317_v29  ;;  %v596_v29 = vmul.f32 %v552_v25, %v2365_v62 }
  0xe9   : > { %v436_v41 = vmul.f32 %v392_v35, %v2365_v62 }
  0xed   : > { %v396_v1 = vpop.permute.xlu0 %395 }
  0xee   : > { %v437_v32 = vmul.f32 %v396_v1, %v2362_v60  ;;  %v548_v39 = vpop.permute.xlu1 %547 }
  0xef   : > { %v595_v44 = vmul.f32 %v548_v39, %v2324_v30 }
  0xf0   : > { %v620_v27 = vpack.c.bf16 %v437_v32, %v436_v41  ;;  %1809 = vmatmul.msk.f32.gmra.mxu0 %vm1091_vm1, %v2246_v9 }
  0xf1   : > { %v618_v45 = vpack.c.bf16 %v595_v44, %v594_v4  ;;  %v484_v52 = vpop.permute.xlu2 %483 }
  0xf2   : > { %967 = vmatmul.bf16.gmra.mxu1 %v620_v27  ;;  %1011 = vmatmul.bf16.gmra.mxu2 %v617_v43  ;;  %v519_v54 = vmul.f32 %v484_v52, %v2386_v33 }
  0xf5   : > { %v400_v56 = vpop.permute.xlu0 %399 }
  0xf7   : > { %v476_v47 = vpop.permute.xlu1 %475 }
  0xf8   : > { %1060 = vmatmul.bf16.gmra.mxu3 %v618_v45  ;;  %1810 = vmatmul.msk.f32.gmra.mxu0 %vm1091_vm1, %v2243_v8  ;;  %v517_v3 = vmul.f32 %v476_v47, %v2362_v60 }
  0xfa   : > { %v621_v51 = vpack.c.bf16 %v517_v3, %v516_v48  ;;  %v564_v37 = vpop.permute.xlu2 %563 }
  0xfe   : > { %v492_v59 = vpop.permute.xlu0 %491 }
  0xff   : > { %v521_v0 = vmul.f32 %v492_v59, %v2422_v18 }
 0x100   : > { %v556_v50 = vpop.permute.xlu1 %555  ;;  %1811 = vmatmul.msk.f32.gmra.mxu0 %vm1091_vm1, %v2240_v7  ;;  %v599_v7 = vmul.f32 %v564_v37, %v2386_v33 }
 0x101   : > { %v597_v9 = vmul.f32 %v556_v50, %v2362_v60 }
 0x102   : > { %1016 = vmatmul.bf16.gmra.mxu2 %v621_v51 }
 0x103   : > { %v622_v30 = vpack.c.bf16 %v597_v9, %v596_v29  ;;  %v488_v6 = vpop.permute.xlu2 %487  ;;  %v2517_v20 = vpop.f32.mrf.mxu1 }
 0x104   : > { %v520_v61 = vmul.f32 %v488_v6, %v2419_v63 }
 0x106   : > { %v629_v49 = vpack.c.bf16 %v521_v0, %v520_v61  ;;  %v496_v25 = vpop.permute.xlu0 %495 }
 0x108   : > { %1065 = vmatmul.bf16.gmra.mxu3 %v622_v30  ;;  %1812 = vmatmul.msk.f32.gmra.mxu0 %vm1091_vm1, %v2258_v12 }
 0x109   : > { %v480_v8 = vpop.permute.xlu1 %479 }
 0x10a   : > { %v518_v55 = vmul.f32 %v480_v8, %v2380_v31 }
 0x10b   : > { %v2526_v28 = vpop.f32.mrf.mxu1 }
 0x10c   : > { %v625_v57 = vpack.c.bf16 %v519_v54, %v518_v55  ;;  %v572_v12 = vpop.permute.xlu2 %571 }
 0x10f   : > { %v580_v22 = vpop.permute.xlu0 %579 }
 0x110   : > { %1813 = vmatmul.msk.f32.gmra.mxu0 %vm1091_vm1, %v2255_v11  ;;  %v438_v11 = vmul.f32 %v400_v56, %v2380_v31 }
 0x112   : > { %v560_v60 = vpop.permute.xlu1 %559  ;;  %1021 = vmatmul.bf16.gmra.mxu2 %v625_v57 }
 0x113   : > { %v598_v62 = vmul.f32 %v560_v60, %v2380_v31 }
 0x115   : > { %v626_v58 = vpack.c.bf16 %v599_v7, %v598_v62  ;;  %v412_v21 = vpop.permute.xlu2 %411 }
 0x117   : > { %v584_v47 = vpop.permute.xlu0 %583 }
 0x118   : > { %1070 = vmatmul.bf16.gmra.mxu3 %v626_v58  ;;  %1814 = vmatmul.msk.f32.gmra.mxu0 %vm1091_vm1, %v2252_v10  ;;  %v601_v10 = vmul.f32 %v572_v12, %v2422_v18  ;;  %v604_v59 = vmul.f32 %v584_v47, %v2439_v38 }
 0x11a   : > { %v2521_v5 = vpop.f32.mrf.mxu0 }
 0x11b   : > { %v404_v19 = vpop.permute.xlu1 %403 }
 0x11c   : > { %v439_v2 = vmul.f32 %v404_v19, %v2386_v33  ;;  %v441_v33 = vmul.f32 %v412_v21, %v2422_v18 }
 0x11e   : > { %v624_v46 = vpack.c.bf16 %v439_v2, %v438_v11  ;;  %v576_v40 = vpop.permute.xlu2 %575 }
 0x11f   : > { %v602_v41 = vmul.f32 %v576_v40, %v2408_v42 }
 0x120   : > { %972 = vmatmul.bf16.gmra.mxu1 %v624_v46  ;;  %1815 = vmatmul.msk.f32.gmra.mxu0 %vm1091_vm1, %v2270_v15 }
 0x121   : > { %v428_v37 = vpop.permute.xlu0 %427 }
 0x122   : > { %1026 = vmatmul.bf16.gmra.mxu2 %v629_v49  ;;  %v906_v36 = vpop.f32.mrf.mxu0  ;;  %v2535_v32 = vpop.f32.mrf.mxu1  ;;  %v445_v7 = vmul.f32 %v428_v37, %v2436_v23 }
 0x124   : > { %v568_v24 = vpop.permute.xlu1 %567 }
 0x125   : > { %v600_v26 = vmul.f32 %v568_v24, %v2419_v63 }
 0x127   : > { %v630_v31 = vpack.c.bf16 %v601_v10, %v600_v26  ;;  %v420_v1 = vpop.permute.xlu2 %419 }
 0x128   : > { %1816 = vmatmul.msk.f32.gmra.mxu0 %vm1091_vm1, %v2267_v14  ;;  %v603_v14 = vmul.f32 %v580_v22, %v2402_v53  ;;  %v443_v45 = vmul.f32 %v420_v1, %v2402_v53 }
 0x129   : > { %1075 = vmatmul.bf16.gmra.mxu3 %v630_v31 }
 0x12a   : > { %v634_v18 = vpack.c.bf16 %v603_v14, %v602_v41  ;;  %v909_v4 = vpop.f32.mrf.mxu0  ;;  %v2546_v52 = vpop.f32.mrf.mxu1 }
 0x12d   : > { %v408_v15 = vpop.permute.xlu1 %407 }
 0x12e   : > { %v440_v34 = vmul.f32 %v408_v15, %v2419_v63  ;;  %v522_v63 = vmul.f32 %v496_v25, %v2408_v42 }
 0x130   : > { %v2529_v35 = vpop.f32.mrf.mxu2  ;;  %v628_v17 = vpack.c.bf16 %v441_v33, %v440_v34  ;;  %1817 = vmatmul.msk.f32.gmra.mxu0 %vm1091_vm1, %v2264_v13  ;;  %v508_v3 = vpop.permute.xlu2 %507 }
 0x131   : > { %v525_v30 = vmul.f32 %v508_v3, %v2436_v23 }
 0x132   : > { %977 = vmatmul.bf16.gmra.mxu1 %v628_v17 }
 0x136   : > { %v500_v39 = vpop.permute.xlu1 %499 }
 0x137   : > { %v523_v27 = vmul.f32 %v500_v39, %v2402_v53 }
 0x138   : > { %v2539_v43 = vpop.f32.mrf.mxu2  ;;  %v2541_v44 = vpop.f32.mrf.mxu3  ;;  %1818 = vmatmul.msk.f32.gmra.mxu0 %vm1091_vm1, %v2276_v16 }
 0x139   : > { %1080 = vmatmul.bf16.gmra.mxu3 %v634_v18  ;;  %v633_v13 = vpack.c.bf16 %v523_v27, %v522_v63  ;;  %v911_v16 = vpop.f32.mrf.mxu0 }
 0x13a   : > { %v424_v56 = vpop.permute.xlu2 %423 }
 0x13b   : > { %1031 = vmatmul.bf16.gmra.mxu2 %v633_v13  ;;  %v953_v8 = vpop.f32.mrf.mxu1  ;;  %v444_v57 = vmul.f32 %v424_v56, %v2439_v38 }
 0x13c   : > { %v954_v46 = vadd.f32 %v953_v8, %v2521_v5 }
 0x13d   : > { %v636_v62 = vpack.c.bf16 %v445_v7, %v444_v57 }
 0x13f   : > { %v416_v48 = vpop.permute.xlu1 %415 }
 0x140   : > { %v442_v50 = vmul.f32 %v416_v48, %v2408_v42  ;;  %v2549_v51 = vpop.f32.mrf.mxu3  ;;  %v2551_v9 = vpop.f32.mrf.mxu2 }
 0x141   : > { %v1145_v60 = vpop.f32.mrf.mxu0 }
 0x142   : > { %v632_v29 = vpack.c.bf16 %v443_v45, %v442_v50 }
 0x143   : > { %v955_v12 = vpop.f32.mrf.mxu1 }
 0x144   : > { %982 = vmatmul.bf16.gmra.mxu1 %v632_v29 }
 0x148   : > { %v504_v54 = vpop.permute.xlu1 %503  ;;  %v2555_v55 = vpop.f32.mrf.mxu3 }
 0x149   : > { %v524_v53 = vmul.f32 %v504_v54, %v2439_v38  ;;  %v2557_v6 = vpop.f32.mrf.mxu2  ;;  %v1148_v2 = vpop.f32.mrf.mxu0  ;;  %v956_v38 = vadd.f32 %v955_v12, %v906_v36 }
 0x14b   : > { %v637_v42 = vpack.c.bf16 %v525_v30, %v524_v53  ;;  %v958_v24 = vpop.f32.mrf.mxu1 }
 0x14c   : > { %v959_v17 = vadd.f32 %v958_v24, %v909_v4 }
 0x14d   : > { %1036 = vmatmul.bf16.gmra.mxu2 %v637_v42 }
 0x150   : > { %v2563_v0 = vpop.f32.mrf.mxu3 }
 0x151   : > { %v588_v58 = vpop.permute.xlu1 %587  ;;  %v1151_v31 = vpop.f32.mrf.mxu0 }
 0x152   : > { %v605_v61 = vmul.f32 %v588_v58, %v2436_v23  ;;  %v1002_v19 = vpop.f32.mrf.mxu2 }
 0x153   : > { %v1003_v49 = vadd.f32 %v1002_v19, %v954_v46  ;;  %v960_v22 = vpop.f32.mrf.mxu1 }
 0x154   : > { %987 = vmatmul.bf16.gmra.mxu1 %v636_v62  ;;  %v638_v11 = vpack.c.bf16 %v605_v61, %v604_v59  ;;  %v961_v27 = vadd.f32 %v960_v22, %v911_v16 }
 0x156   : > { %1085 = vmatmul.bf16.gmra.mxu3 %v638_v11 }
 0x159   : > { %v1154_v18 = vpop.f32.mrf.mxu0 }
 0x15a   : > { %v1004_v25 = vpop.f32.mrf.mxu2 }
 0x15b   : > { %v1051_v10 = vpop.f32.mrf.mxu3  ;;  %v1005_v33 = vadd.f32 %v1004_v25, %v956_v38  ;;  %v963_v45 = vpop.f32.mrf.mxu1 }
 0x15c   : > { %v1052_v21 = vadd.f32 %v1051_v10, %v1003_v49  ;;  %v964_v30 = vadd.f32 %v963_v45, %v2517_v20 }
 0x15e   : > { %v2566_v26 = vadd.f32 %v1145_v60, %v1052_v21 }
 0x160   : > { %1193 = vadd.xlane.f32.xlu1 %v2566_v26  ;;  %v1241_v23 = vmul.f32 %v2566_v26, %v2566_v26 }
 0x161   : > { %v1157_v50 = vpop.f32.mrf.mxu0 }
 0x162   : > { %1257 = vadd.xlane.f32.xlu2 %v1241_v23 }
 0x163   : > { %v1053_v15 = vpop.f32.mrf.mxu3  ;;  %v965_v16 = vpop.f32.mrf.mxu1 }
 0x164   : > { %v1054_v40 = vadd.f32 %v1053_v15, %v1005_v33  ;;  %v966_v7 = vadd.f32 %v965_v16, %v2526_v28 }
 0x165   : > { %v1007_v34 = vpop.f32.mrf.mxu2 }
 0x166   : > { %v2571_v5 = vadd.f32 %v1148_v2, %v1054_v40  ;;  %v1008_v14 = vadd.f32 %v1007_v34, %v959_v17 }
 0x168   : > { %v1242_v41 = vmul.f32 %v2571_v5, %v2571_v5 }
 0x169   : > { %v1160_v57 = vpop.f32.mrf.mxu0 }
 0x16a   : > { %1259 = vadd.xlane.f32.xlu0 %v1242_v41  ;;  %1195 = vadd.xlane.f32.xlu2 %v2571_v5 }
 0x16b   : > { %v1056_v36 = vpop.f32.mrf.mxu3 }
 0x16c   : > { %v1057_v1 = vadd.f32 %v1056_v36, %v1008_v14 }
 0x16d   : > { %v1009_v39 = vpop.f32.mrf.mxu2 }
 0x16e   : > { %v2576_v63 = vadd.f32 %v1151_v31, %v1057_v1  ;;  %v1010_v47 = vadd.f32 %v1009_v39, %v961_v27 }
 0x16f   : > { %v968_v62 = vpop.f32.mrf.mxu1 }
 0x170   : > { %v1243_v13 = vmul.f32 %v2576_v63, %v2576_v63  ;;  %v969_v19 = vadd.f32 %v968_v62, %v2535_v32 }
 0x171   : > { %v1163_v11 = vpop.f32.mrf.mxu0 }
 0x172   : > { %1197 = vadd.xlane.f32.xlu0 %v2576_v63  ;;  %1261 = vadd.xlane.f32.xlu1 %v1243_v13 }
 0x173   : > { %v1058_v4 = vpop.f32.mrf.mxu3 }
 0x174   : > { %v1059_v48 = vadd.f32 %v1058_v4, %v1010_v47 }
 0x175   : > { %v1012_v3 = vpop.f32.mrf.mxu2 }
 0x176   : > { %v2581_v29 = vadd.f32 %v1154_v18, %v1059_v48  ;;  %v1013_v37 = vadd.f32 %v1012_v3, %v964_v30 }
 0x177   : > { %v970_v10 = vpop.f32.mrf.mxu1 }
 0x178   : > { %1199 = vadd.xlane.f32.xlu2 %v2581_v29  ;;  %v1244_v42 = vmul.f32 %v2581_v29, %v2581_v29  ;;  %v971_v25 = vadd.f32 %v970_v10, %v2546_v52 }
 0x179   : > { %v1166_v31 = vpop.f32.mrf.mxu0 }
 0x17b   : > { %v1061_v8 = vpop.f32.mrf.mxu3 }
 0x17c   : > { %v1062_v54 = vadd.f32 %v1061_v8, %v1013_v37 }
 0x17d   : > { %v1014_v53 = vpop.f32.mrf.mxu2 }
 0x17e   : > { %v2585_v56 = vadd.f32 %v1157_v50, %v1062_v54  ;;  %v1015_v60 = vadd.f32 %v1014_v53, %v966_v7 }
 0x180   : > { %1201 = vadd.xlane.f32.xlu1 %v2585_v56  ;;  %1263 = vadd.xlane.f32.xlu2 %v1244_v42  ;;  %v1245_v20 = vmul.f32 %v2585_v56, %v2585_v56 }
 0x181   : > { %v1169_v41 = vpop.f32.mrf.mxu0 }
 0x182   : > { %1265 = vadd.xlane.f32.xlu0 %v1245_v20 }
 0x183   : > { %v1063_v58 = vpop.f32.mrf.mxu3 }
 0x184   : > { %v1064_v59 = vadd.f32 %v1063_v58, %v1015_v60 }
 0x185   : > { %v1017_v12 = vpop.f32.mrf.mxu2 }
 0x186   : > { %v2593_v61 = vadd.f32 %v1160_v57, %v1064_v59  ;;  %v1018_v2 = vadd.f32 %v1017_v12, %v969_v19 }
 0x188   : > { %1203 = vadd.xlane.f32.xlu2 %v2593_v61  ;;  %v1246_v28 = vmul.f32 %v2593_v61, %v2593_v61 }
 0x189   : > { %v1172_v4 = vpop.f32.mrf.mxu0 }
 0x18a   : > { %1267 = vadd.xlane.f32.xlu1 %v1246_v28 }
 0x18b   : > { %v1066_v46 = vpop.f32.mrf.mxu3 }
 0x18c   : > { %v1067_v49 = vadd.f32 %v1066_v46, %v1018_v2 }
 0x18d   : > { %v1019_v24 = vpop.f32.mrf.mxu2 }
 0x18e   : > { %v2599_v21 = vadd.f32 %v1163_v11, %v1067_v49  ;;  %v1020_v32 = vadd.f32 %v1019_v24, %v971_v25 }
 0x190   : > { %v1247_v38 = vmul.f32 %v2599_v21, %v2599_v21 }
 0x192   : > { %1205 = vadd.xlane.f32.xlu1 %v2599_v21  ;;  %1269 = vadd.xlane.f32.xlu2 %v1247_v38 }
 0x193   : > { %v1068_v23 = vpop.f32.mrf.mxu3 }
 0x194   : > { %v1069_v33 = vadd.f32 %v1068_v23, %v1020_v32 }
 0x195   : > { %v1022_v34 = vpop.f32.mrf.mxu2 }
 0x196   : > { %v2605_v15 = vadd.f32 %v1166_v31, %v1069_v33 }
 0x198   : > { %v1248_v40 = vmul.f32 %v2605_v15, %v2605_v15 }
 0x19a   : > { %1271 = vadd.xlane.f32.xlu0 %v1248_v40  ;;  %1207 = vadd.xlane.f32.xlu2 %v2605_v15 }
 0x19b   : > { %v1071_v52 = vpop.f32.mrf.mxu3 }
 0x19d   : > { %v973_v22 = vpop.f32.mrf.mxu1  ;;  %v1024_v18 = vpop.f32.mrf.mxu2 }
 0x19e   : > { %v974_v17 = vadd.f32 %v973_v22, %v2529_v35 }
 0x1a0   : > { %v1023_v14 = vadd.f32 %v1022_v34, %v974_v17 }
 0x1a2   : > { %v1072_v36 = vadd.f32 %v1071_v52, %v1023_v14 }
 0x1a3   : > { %v1073_v39 = vpop.f32.mrf.mxu3 }
 0x1a4   : > { %v2611_v1 = vadd.f32 %v1169_v41, %v1072_v36 }
 0x1a5   : > { %v975_v27 = vpop.f32.mrf.mxu1  ;;  %v1027_v3 = vpop.f32.mrf.mxu2 }
 0x1a6   : > { %v976_v13 = vadd.f32 %v975_v27, %v2539_v43  ;;  %1209 = vadd.xlane.f32.xlu0 %v2611_v1  ;;  %v1249_v45 = vmul.f32 %v2611_v1, %v2611_v1  ;;  %v1175_v43 = vpop.f32.mrf.mxu0 }
 0x1a8   : > { %v1025_v47 = vadd.f32 %v1024_v18, %v976_v13  ;;  %1273 = vadd.xlane.f32.xlu1 %v1249_v45 }
 0x1aa   : > { %v1074_v48 = vadd.f32 %v1073_v39, %v1025_v47 }
 0x1ac   : > { %v2617_v35 = vadd.f32 %v1172_v4, %v1074_v48  ;;  %v1076_v30 = vpop.f32.mrf.mxu3 }
 0x1ad   : > { %v1029_v20 = vpop.f32.mrf.mxu2 }
 0x1ae   : > { %v1250_v50 = vmul.f32 %v2617_v35, %v2617_v35 }
 0x1af   : > { %v978_v37 = vpop.f32.mrf.mxu1 }
 0x1b0   : > { %v979_v16 = vadd.f32 %v978_v37, %v2551_v9  ;;  %1211 = vadd.xlane.f32.xlu1 %v2617_v35  ;;  %1275 = vadd.xlane.f32.xlu2 %v1250_v50  ;;  %v1178_v9 = vpop.f32.mrf.mxu0 }
 0x1b2   : > { %v1028_v8 = vadd.f32 %v1027_v3, %v979_v16 }
 0x1b4   : > { %v1077_v54 = vadd.f32 %v1076_v30, %v1028_v8  ;;  %v1078_v60 = vpop.f32.mrf.mxu3 }
 0x1b6   : > { %v2623_v53 = vadd.f32 %v1175_v43, %v1077_v54 }
 0x1b7   : > { %v980_v42 = vpop.f32.mrf.mxu1 }
 0x1b8   : > { %v981_v57 = vadd.f32 %v980_v42, %v2557_v6  ;;  %1213 = vadd.xlane.f32.xlu2 %v2623_v53  ;;  %v1251_v7 = vmul.f32 %v2623_v53, %v2623_v53  ;;  %v1181_v46 = vpop.f32.mrf.mxu0 }
 0x1ba   : > { %v1030_v62 = vadd.f32 %v1029_v20, %v981_v57  ;;  %1277 = vadd.xlane.f32.xlu0 %v1251_v7 }
 0x1bc   : > { %v1079_v58 = vadd.f32 %v1078_v60, %v1030_v62  ;;  %v1081_v11 = vpop.f32.mrf.mxu3 }
 0x1be   : > { %v2629_v59 = vadd.f32 %v1178_v9, %v1079_v58  ;;  %v1032_v19 = vpop.f32.mrf.mxu2 }
 0x1c0   : > { %v1252_v12 = vmul.f32 %v2629_v59, %v2629_v59  ;;  %v1184_v33 = vpop.f32.mrf.mxu0 }
 0x1c1   : > { %v983_v28 = vpop.f32.mrf.mxu1 }
 0x1c2   : > { %v984_v6 = vadd.f32 %v983_v28, %v2541_v44  ;;  %1215 = vadd.xlane.f32.xlu0 %v2629_v59  ;;  %1279 = vadd.xlane.f32.xlu1 %v1252_v12 }
 0x1c4   : > { %v1033_v2 = vadd.f32 %v1032_v19, %v984_v6  ;;  %v1083_v44 = vpop.f32.mrf.mxu3 }
 0x1c6   : > { %v1082_v49 = vadd.f32 %v1081_v11, %v1033_v2  ;;  %v1034_v32 = vpop.f32.mrf.mxu2 }
 0x1c8   : > { %v2635_v10 = vadd.f32 %v1181_v46, %v1082_v49  ;;  %v1187_v18 = vpop.f32.mrf.mxu0 }
 0x1c9   : > { %v985_v24 = vpop.f32.mrf.mxu1 }
 0x1ca   : > { %v986_v25 = vadd.f32 %v985_v24, %v2549_v51  ;;  %1217 = vadd.xlane.f32.xlu1 %v2635_v10  ;;  %v1253_v38 = vmul.f32 %v2635_v10, %v2635_v10 }
 0x1cc   : > { %v1035_v23 = vadd.f32 %v1034_v32, %v986_v25  ;;  %1281 = vadd.xlane.f32.xlu2 %v1253_v38 }
 0x1ce   : > { %v1084_v31 = vadd.f32 %v1083_v44, %v1035_v23 }
 0x1d0   : > { %v2641_v34 = vadd.f32 %v1184_v33, %v1084_v31  ;;  %v1037_v51 = vpop.f32.mrf.mxu2  ;;  %v1190_v42 = vpop.f32.mrf.mxu0 }
 0x1d1   : > { %v988_v40 = vpop.f32.mrf.mxu1 }
 0x1d2   : > { %v989_v22 = vadd.f32 %v988_v40, %v2555_v55  ;;  %v1254_v9 = vmul.f32 %v2641_v34, %v2641_v34 }
 0x1d3   : > { %v1194_v52 = vpop.xlane.xlu1 %1193 }
 0x1d4   : > { %v1225_v17 = vmul.f32 0.0078125, %v1194_v52  ;;  %1219 = vadd.xlane.f32.xlu2 %v2641_v34  ;;  %v1038_v27 = vadd.f32 %v1037_v51, %v989_v22 }
 0x1d5   : > { %v1258_v41 = vpop.xlane.xlu2 %1257 }
 0x1d6   : > { %v1305_v14 = vmul.f32 %v1225_v17, %v1225_v17  ;;  %v1289_v36 = vmul.f32 0.0078125, %v1258_v41  ;;  %v1337_v23 = vsub.f32 %v2566_v26, %v1225_v17 }
 0x1d8   : > { %v1321_v39 = vsub.f32 %v1289_v36, %v1305_v14  ;;  %v1039_v37 = vpop.f32.mrf.mxu2 }
 0x1d9   : > { %v990_v13 = vpop.f32.mrf.mxu1  ;;  %v1086_v45 = vpop.f32.mrf.mxu3 }
 0x1da   : > { %v1353_v47 = vadd.f32 1e-05, %v1321_v39  ;;  %v1087_v4 = vadd.f32 %v1086_v45, %v1038_v27  ;;  %v991_v48 = vadd.f32 %v990_v13, %v2563_v0 }
 0x1dc   : > { %1982 = vrsqrt.f32 %v1353_v47  ;;  %v2646_v3 = vadd.f32 %v1187_v18, %v1087_v4  ;;  %v1040_v8 = vadd.f32 %v1039_v37, %v991_v48  ;;  %vm1375_vm3 = vweird.f32 %v1353_v47 }
 0x1dd   : > { %v1260_v55 = vpop.xlane.xlu0 %1259  ;;  %v1196_v50 = vpop.xlane.xlu2 %1195 }
 0x1de   : > { %1221 = vadd.xlane.f32.xlu0 %v2646_v3  ;;  %v2649_v30 = vmul.f32 0.0078125, %v1196_v50  ;;  %v1290_v16 = vmul.f32 0.0078125, %v1260_v55  ;;  %v1255_v31 = vmul.f32 %v2646_v3, %v2646_v3 }
 0x1e0   : > { %v1306_v43 = vmul.f32 %v2649_v30, %v2649_v30  ;;  %v1338_v4 = vsub.f32 %v2571_v5, %v2649_v30 }
 0x1e1   : > { %v1088_v54 = vpop.f32.mrf.mxu3 }
 0x1e2   : > { %v1983_v57 = vpop.eup %1982  ;;  %v1322_v7 = vsub.f32 %v1290_v16, %v1306_v43  ;;  %v1089_v0 = vadd.f32 %v1088_v54, %v1040_v8 }
 0x1e3   : > { %v1370_v20 = vmul.f32 %v1983_v57, %v1353_v47  ;;  %vm1376_vm2 = vweird.f32 %v1983_v57 }
 0x1e4   : > { %v1354_v60 = vadd.f32 1e-05, %v1322_v7  ;;  %v2653_v62 = vadd.f32 %v1190_v42, %v1089_v0  ;;  %vm1377_vm4 = vmor %vm1375_vm3, %vm1376_vm2 }
 0x1e5   : > { %v1371_v58 = vmul.f32 %v1983_v57, %v1370_v20  ;;  %v1198_v12 = vpop.xlane.xlu0 %1197  ;;  %v1262_v19 = vpop.xlane.xlu1 %1261 }
 0x1e6   : > { %1984 = vrsqrt.f32 %v1354_v60  ;;  %1283 = vadd.xlane.f32.xlu0 %v1254_v9  ;;  %v2657_v28 = vmul.f32 0.0078125, %v1198_v12  ;;  %1223 = vadd.xlane.f32.xlu1 %v2653_v62  ;;  %v1256_v11 = vmul.f32 %v2653_v62, %v2653_v62  ;;  %v1291_v46 = vmul.f32 0.0078125, %v1262_v19 }
 0x1e7   : > { %v1372_v6 = vmul.f32 0.5, %v1371_v58  ;;  %vm1385_vm6 = vweird.f32 %v1354_v60 }
 0x1e8   : > { %v1307_v2 = vmul.f32 %v2657_v28, %v2657_v28  ;;  %1287 = vadd.xlane.f32.xlu2 %v1256_v11 }
 0x1e9   : > { %v1373_v49 = vsub.f32 1.5, %v1372_v6 }
 0x1ea   : > { %v1323_v24 = vsub.f32 %v1291_v46, %v1307_v2 }
 0x1eb   : > { %v1374_v25 = vmul.f32 %v1983_v57, %v1373_v49  ;;  %v1200_v38 = vpop.xlane.xlu2 %1199 }
 0x1ec   : > { %v1985_v32 = vpop.eup %1984  ;;  %v1355_v44 = vadd.f32 1e-05, %v1323_v24  ;;  %v2673_v51 = vmul.f32 0.0078125, %v1200_v38 }
 0x1ed   : > { %v1378_v33 = vsel %vm1377_vm4, %v1983_v57, %v1374_v25  ;;  %v1380_v40 = vmul.f32 %v1985_v32, %v1354_v60  ;;  %vm1386_vm5 = vweird.f32 %v1985_v32  ;;  %v1339_v60 = vsub.f32 %v2576_v63, %v2657_v28 }
 0x1ee   : > { %v1529_v52 = vmul.f32 %v1378_v33, %v1337_v23  ;;  %1986 = vrsqrt.f32 %v1355_v44  ;;  %1285 = vadd.xlane.f32.xlu1 %v1255_v31  ;;  %v1308_v18 = vmul.f32 %v2673_v51, %v2673_v51  ;;  %vm1387_vm7 = vmor %vm1385_vm6, %vm1386_vm5  ;;  %vm1395_vm9 = vweird.f32 %v1355_v44 }
 0x1ef   : > { %v1381_v22 = vmul.f32 %v1985_v32, %v1380_v40 }
 0x1f0   : > { %1545 = vst [vmem:[%s2670_s29] sm:$0xff] %v1529_v52 }
 0x1f1   : > { %v1382_v41 = vmul.f32 0.5, %v1381_v22 }
 0x1f3   : > { %v1383_v14 = vsub.f32 1.5, %v1382_v41  ;;  %v1202_v26 = vpop.xlane.xlu1 %1201  ;;  %v1264_v17 = vpop.xlane.xlu2 %1263 }
 0x1f4   : > { %v1987_v36 = vpop.eup %1986  ;;  %v2677_v39 = vmul.f32 0.0078125, %v1202_v26  ;;  %v1292_v27 = vmul.f32 0.0078125, %v1264_v17 }
 0x1f5   : > { %v1384_v13 = vmul.f32 %v1985_v32, %v1383_v14  ;;  %v1390_v45 = vmul.f32 %v1987_v36, %v1355_v44  ;;  %v1266_v47 = vpop.xlane.xlu0 %1265  ;;  %vm1396_vm8 = vweird.f32 %v1987_v36  ;;  %v1340_v14 = vsub.f32 %v2581_v29, %v2673_v51 }
 0x1f6   : > { %v1309_v48 = vmul.f32 %v2677_v39, %v2677_v39  ;;  %v1324_v55 = vsub.f32 %v1292_v27, %v1308_v18  ;;  %v1293_v50 = vmul.f32 0.0078125, %v1266_v47  ;;  %vm1397_vm10 = vmor %vm1395_vm9, %vm1396_vm8  ;;  %v1341_v27 = vsub.f32 %v2585_v56, %v2677_v39 }
 0x1f7   : > { %v1388_v37 = vsel %vm1387_vm7, %v1985_v32, %v1384_v13  ;;  %v1391_v16 = vmul.f32 %v1987_v36, %v1390_v45 }
 0x1f8   : > { %v1530_v43 = vmul.f32 %v1388_v37, %v1338_v4  ;;  %v1356_v8 = vadd.f32 1e-05, %v1324_v55  ;;  %v1325_v54 = vsub.f32 %v1293_v50, %v1309_v48 }
 0x1f9   : > { %v1392_v42 = vmul.f32 0.5, %v1391_v16 }
 0x1fa   : > { %1546 = vst [vmem:[%s2670_s29 + $0x8] sm:$0xff] %v1530_v43  ;;  %1988 = vrsqrt.f32 %v1356_v8  ;;  %v1357_v57 = vadd.f32 1e-05, %v1325_v54  ;;  %vm1405_vm12 = vweird.f32 %v1356_v8 }
 0x1fb   : > { %v1393_v7 = vsub.f32 1.5, %v1392_v42  ;;  %v1204_v0 = vpop.xlane.xlu2 %1203 }
 0x1fc   : > { %1990 = vrsqrt.f32 %v1357_v57  ;;  %v2684_v5 = vmul.f32 0.0078125, %v1204_v0  ;;  %vm1415_vm15 = vweird.f32 %v1357_v57 }
 0x1fd   : > { %v1394_v30 = vmul.f32 %v1987_v36, %v1393_v7  ;;  %v1268_v20 = vpop.xlane.xlu1 %1267 }
 0x1fe   : > { %v1310_v9 = vmul.f32 %v2684_v5, %v2684_v5  ;;  %v1294_v58 = vmul.f32 0.0078125, %v1268_v20  ;;  %v1342_v54 = vsub.f32 %v2593_v61, %v2684_v5 }
 0x1ff   : > { %v1398_v12 = vsel %vm1397_vm10, %v1987_v36, %v1394_v30 }
 0x200   : > { %v1989_v19 = vpop.eup %1988  ;;  %v1531_v6 = vmul.f32 %v1398_v12, %v1339_v60  ;;  %v1326_v11 = vsub.f32 %v1294_v58, %v1310_v9 }
 0x201   : > { %v1400_v2 = vmul.f32 %v1989_v19, %v1356_v8  ;;  %vm1406_vm11 = vweird.f32 %v1989_v19 }
 0x202   : > { %v1991_v46 = vpop.eup %1990  ;;  %1547 = vst [vmem:[%s2670_s29 + $0x10] sm:$0xff] %v1531_v6  ;;  %v1358_v49 = vadd.f32 1e-05, %v1326_v11  ;;  %vm1407_vm14 = vmor %vm1405_vm12, %vm1406_vm11 }
 0x203   : > { %v1401_v24 = vmul.f32 %v1989_v19, %v1400_v2  ;;  %v1410_v25 = vmul.f32 %v1991_v46, %v1357_v57  ;;  %vm1416_vm13 = vweird.f32 %v1991_v46 }
 0x204   : > { %1992 = vrsqrt.f32 %v1358_v49  ;;  %vm1417_vm0 = vmor %vm1415_vm15, %vm1416_vm13  ;;  %vm1425_vm2 = vweird.f32 %v1358_v49 }
 0x205   : > { %v1402_v38 = vmul.f32 0.5, %v1401_v24  ;;  %v1411_v32 = vmul.f32 %v1991_v46, %v1410_v25  ;;  %v1206_v23 = vpop.xlane.xlu1 %1205  ;;  %v1270_v63 = vpop.xlane.xlu2 %1269 }
 0x206   : > { %v2691_v28 = vmul.f32 0.0078125, %v1206_v23  ;;  %v1295_v40 = vmul.f32 0.0078125, %v1270_v63 }
 0x207   : > { %v1403_v44 = vsub.f32 1.5, %v1402_v38  ;;  %v1412_v31 = vmul.f32 0.5, %v1411_v32 }
 0x208   : > { %v1311_v33 = vmul.f32 %v2691_v28, %v2691_v28  ;;  %v1343_v61 = vsub.f32 %v2599_v21, %v2691_v28 }
 0x209   : > { %v1404_v52 = vmul.f32 %v1989_v19, %v1403_v44  ;;  %v1413_v22 = vsub.f32 1.5, %v1412_v31 }
 0x20a   : > { %v1993_v41 = vpop.eup %1992  ;;  %v1327_v26 = vsub.f32 %v1295_v40, %v1311_v33 }
 0x20b   : > { %v1408_v17 = vsel %vm1407_vm14, %v1989_v19, %v1404_v52  ;;  %v1414_v36 = vmul.f32 %v1991_v46, %v1413_v22  ;;  %v1420_v18 = vmul.f32 %v1993_v41, %v1358_v49  ;;  %vm1426_vm1 = vweird.f32 %v1993_v41 }
 0x20c   : > { %v1532_v13 = vmul.f32 %v1408_v17, %v1340_v14  ;;  %v1359_v45 = vadd.f32 1e-05, %v1327_v26  ;;  %vm1427_vm3 = vmor %vm1425_vm2, %vm1426_vm1 }
 0x20d   : > { %v1418_v47 = vsel %vm1417_vm0, %v1991_v46, %v1414_v36  ;;  %v1421_v4 = vmul.f32 %v1993_v41, %v1420_v18  ;;  %v1208_v48 = vpop.xlane.xlu2 %1207  ;;  %v1272_v29 = vpop.xlane.xlu0 %1271 }
 0x20e   : > { %1548 = vst [vmem:[%s2670_s29 + $0x18] sm:$0xff] %v1532_v13  ;;  %v1533_v55 = vmul.f32 %v1418_v47, %v1341_v27  ;;  %1994 = vrsqrt.f32 %v1359_v45  ;;  %v1232_v50 = vmul.f32 0.0078125, %v1208_v48  ;;  %v1296_v16 = vmul.f32 0.0078125, %v1272_v29 }
 0x20f   : > { %v1422_v51 = vmul.f32 0.5, %v1421_v4  ;;  %vm1435_vm5 = vweird.f32 %v1359_v45 }
 0x210   : > { %1549 = vst [vmem:[%s2670_s29 + $0x20] sm:$0xff] %v1533_v55  ;;  %v1312_v43 = vmul.f32 %v1232_v50, %v1232_v50  ;;  %v1344_v28 = vsub.f32 %v2605_v15, %v1232_v50 }
 0x211   : > { %v1423_v37 = vsub.f32 1.5, %v1422_v51 }
 0x212   : > { %v1328_v56 = vsub.f32 %v1296_v16, %v1312_v43 }
 0x213   : > { %v1424_v8 = vmul.f32 %v1993_v41, %v1423_v37 }
 0x214   : > { %v1995_v39 = vpop.eup %1994  ;;  %v1360_v7 = vadd.f32 1e-05, %v1328_v56 }
 0x215   : > { %v1428_v42 = vsel %vm1427_vm3, %v1993_v41, %v1424_v8  ;;  %v1430_v57 = vmul.f32 %v1995_v39, %v1359_v45  ;;  %vm1436_vm4 = vweird.f32 %v1995_v39 }
 0x216   : > { %v1534_v0 = vmul.f32 %v1428_v42, %v1342_v54  ;;  %1996 = vrsqrt.f32 %v1360_v7  ;;  %vm1437_vm6 = vmor %vm1435_vm5, %vm1436_vm4  ;;  %vm1445_vm8 = vweird.f32 %v1360_v7 }
 0x217   : > { %v1431_v30 = vmul.f32 %v1995_v39, %v1430_v57 }
 0x218   : > { %1550 = vst [vmem:[%s2670_s29 + $0x28] sm:$0xff] %v1534_v0 }
 0x219   : > { %v1432_v20 = vmul.f32 0.5, %v1431_v30  ;;  %v1210_v60 = vpop.xlane.xlu0 %1209 }
 0x21a   : > { %v1233_v9 = vmul.f32 0.0078125, %v1210_v60 }
 0x21b   : > { %v1433_v58 = vsub.f32 1.5, %v1432_v20  ;;  %v1274_v12 = vpop.xlane.xlu1 %1273 }
 0x21c   : > { %v1313_v19 = vmul.f32 %v1233_v9, %v1233_v9  ;;  %v1297_v6 = vmul.f32 0.0078125, %v1274_v12  ;;  %v1997_v11 = vpop.eup %1996  ;;  %v1345_v51 = vsub.f32 %v2611_v1, %v1233_v9 }
 0x21d   : > { %v1434_v2 = vmul.f32 %v1995_v39, %v1433_v58  ;;  %v1440_v5 = vmul.f32 %v1997_v11, %v1360_v7  ;;  %vm1446_vm7 = vweird.f32 %v1997_v11 }
 0x21e   : > { %v1329_v46 = vsub.f32 %v1297_v6, %v1313_v19  ;;  %vm1447_vm9 = vmor %vm1445_vm8, %vm1446_vm7 }
 0x21f   : > { %v1438_v49 = vsel %vm1437_vm6, %v1995_v39, %v1434_v2  ;;  %v1441_v25 = vmul.f32 %v1997_v11, %v1440_v5 }
 0x220   : > { %v1535_v24 = vmul.f32 %v1438_v49, %v1343_v61  ;;  %v1361_v38 = vadd.f32 1e-05, %v1329_v46 }
 0x221   : > { %v1442_v32 = vmul.f32 0.5, %v1441_v25 }
 0x222   : > { %1551 = vst [vmem:[%s2670_s29 + $0x30] sm:$0xff] %v1535_v24  ;;  %1998 = vrsqrt.f32 %v1361_v38  ;;  %vm1455_vm11 = vweird.f32 %v1361_v38 }
 0x223   : > { %v1212_v23 = vpop.xlane.xlu1 %1211  ;;  %v1276_v63 = vpop.xlane.xlu2 %1275  ;;  %v1443_v44 = vsub.f32 1.5, %v1442_v32 }
 0x224   : > { %v1234_v31 = vmul.f32 0.0078125, %v1212_v23  ;;  %v1298_v21 = vmul.f32 0.0078125, %v1276_v63 }
 0x225   : > { %v1444_v33 = vmul.f32 %v1997_v11, %v1443_v44 }
 0x226   : > { %v1314_v40 = vmul.f32 %v1234_v31, %v1234_v31  ;;  %v1346_v9 = vsub.f32 %v2617_v35, %v1234_v31 }
 0x227   : > { %v1448_v22 = vsel %vm1447_vm9, %v1997_v11, %v1444_v33 }
 0x228   : > { %v1999_v52 = vpop.eup %1998  ;;  %v1330_v41 = vsub.f32 %v1298_v21, %v1314_v40  ;;  %v1536_v14 = vmul.f32 %v1448_v22, %v1344_v28 }
 0x229   : > { %v1450_v26 = vmul.f32 %v1999_v52, %v1361_v38  ;;  %vm1456_vm10 = vweird.f32 %v1999_v52 }
 0x22a   : > { %v1362_v17 = vadd.f32 1e-05, %v1330_v41  ;;  %1552 = vst [vmem:[%s2670_s29 + $0x38] sm:$0xff] %v1536_v14  ;;  %vm1457_vm12 = vmor %vm1455_vm11, %vm1456_vm10 }
 0x22b   : > { %v1451_v36 = vmul.f32 %v1999_v52, %v1450_v26  ;;  %v1214_v18 = vpop.xlane.xlu2 %1213 }
 0x22c   : > { %2000 = vrsqrt.f32 %v1362_v17  ;;  %v1235_v27 = vmul.f32 0.0078125, %v1214_v18  ;;  %vm1465_vm14 = vweird.f32 %v1362_v17 }
 0x22d   : > { %v1452_v13 = vmul.f32 0.5, %v1451_v36  ;;  %v1278_v45 = vpop.xlane.xlu0 %1277 }
 0x22e   : > { %v1315_v47 = vmul.f32 %v1235_v27, %v1235_v27  ;;  %v1299_v4 = vmul.f32 0.0078125, %v1278_v45  ;;  %v1347_v32 = vsub.f32 %v2623_v53, %v1235_v27 }
 0x22f   : > { %v1453_v48 = vsub.f32 1.5, %v1452_v13 }
 0x230   : > { %v1331_v15 = vsub.f32 %v1299_v4, %v1315_v47 }
 0x231   : > { %v1454_v55 = vmul.f32 %v1999_v52, %v1453_v48 }
 0x232   : > { %v2001_v29 = vpop.eup %2000  ;;  %v1363_v50 = vadd.f32 1e-05, %v1331_v15 }
 0x233   : > { %v1458_v37 = vsel %vm1457_vm12, %v1999_v52, %v1454_v55  ;;  %v1460_v16 = vmul.f32 %v2001_v29, %v1362_v17  ;;  %vm1466_vm13 = vweird.f32 %v2001_v29 }
 0x234   : > { %v1537_v43 = vmul.f32 %v1458_v37, %v1345_v51  ;;  %2002 = vrsqrt.f32 %v1363_v50  ;;  %vm1467_vm15 = vmor %vm1465_vm14, %vm1466_vm13  ;;  %vm1475_vm1 = vweird.f32 %v1363_v50 }
 0x235   : > { %v1461_v8 = vmul.f32 %v2001_v29, %v1460_v16  ;;  %v1216_v56 = vpop.xlane.xlu0 %1215  ;;  %v1280_v39 = vpop.xlane.xlu1 %1279 }
 0x236   : > { %1553 = vst [vmem:[%s2670_s29 + $0x40] sm:$0xff] %v1537_v43  ;;  %v1236_v54 = vmul.f32 0.0078125, %v1216_v56  ;;  %v1300_v7 = vmul.f32 0.0078125, %v1280_v39 }
 0x237   : > { %v1462_v42 = vmul.f32 0.5, %v1461_v8 }
 0x238   : > { %v1316_v57 = vmul.f32 %v1236_v54, %v1236_v54  ;;  %v1348_v41 = vsub.f32 %v2629_v59, %v1236_v54 }
 0x239   : > { %v1463_v0 = vsub.f32 1.5, %v1462_v42 }
 0x23a   : > { %v2003_v30 = vpop.eup %2002  ;;  %v1332_v20 = vsub.f32 %v1300_v7, %v1316_v57 }
 0x23b   : > { %v1464_v1 = vmul.f32 %v2001_v29, %v1463_v0  ;;  %v1470_v60 = vmul.f32 %v2003_v30, %v1363_v50  ;;  %vm1476_vm0 = vweird.f32 %v2003_v30 }
 0x23c   : > { %v1364_v58 = vadd.f32 1e-05, %v1332_v20  ;;  %vm1477_vm2 = vmor %vm1475_vm1, %vm1476_vm0 }
 0x23d   : > { %v1468_v12 = vsel %vm1467_vm15, %v2001_v29, %v1464_v1  ;;  %v1471_v19 = vmul.f32 %v2003_v30, %v1470_v60  ;;  %v1218_v6 = vpop.xlane.xlu1 %1217 }
 0x23e   : > { %v1538_v11 = vmul.f32 %v1468_v12, %v1346_v9  ;;  %2004 = vrsqrt.f32 %v1364_v58  ;;  %v1237_v2 = vmul.f32 0.0078125, %v1218_v6  ;;  %vm1485_vm4 = vweird.f32 %v1364_v58 }
 0x23f   : > { %v1472_v61 = vmul.f32 0.5, %v1471_v19  ;;  %v1282_v5 = vpop.xlane.xlu2 %1281 }
 0x240   : > { %1554 = vst [vmem:[%s2670_s29 + $0x48] sm:$0xff] %v1538_v11  ;;  %v1317_v46 = vmul.f32 %v1237_v2, %v1237_v2  ;;  %v1301_v49 = vmul.f32 0.0078125, %v1282_v5  ;;  %v1349_v45 = vsub.f32 %v2635_v10, %v1237_v2 }
 0x241   : > { %v1473_v24 = vsub.f32 1.5, %v1472_v61 }
 0x242   : > { %v1333_v25 = vsub.f32 %v1301_v49, %v1317_v46 }
 0x243   : > { %v1474_v38 = vmul.f32 %v2003_v30, %v1473_v24 }
 0x244   : > { %v2005_v35 = vpop.eup %2004  ;;  %v1365_v23 = vadd.f32 1e-05, %v1333_v25 }
 0x245   : > { %v1478_v63 = vsel %vm1477_vm2, %v2003_v30, %v1474_v38  ;;  %v1480_v44 = vmul.f32 %v2005_v35, %v1364_v58  ;;  %vm1486_vm3 = vweird.f32 %v2005_v35 }
 0x246   : > { %v1539_v31 = vmul.f32 %v1478_v63, %v1347_v32  ;;  %2006 = vrsqrt.f32 %v1365_v23  ;;  %vm1487_vm5 = vmor %vm1485_vm4, %vm1486_vm3  ;;  %vm1495_vm7 = vweird.f32 %v1365_v23 }
 0x247   : > { %v1481_v33 = vmul.f32 %v2005_v35, %v1480_v44  ;;  %v1220_v27 = vpop.xlane.xlu2 %1219 }
 0x248   : > { %1555 = vst [vmem:[%s2670_s29 + $0x50] sm:$0xff] %v1539_v31  ;;  %v1238_v47 = vmul.f32 0.0078125, %v1220_v27 }
 0x249   : > { %v1482_v40 = vmul.f32 0.5, %v1481_v33 }
 0x24a   : > { %v1318_v55 = vmul.f32 %v1238_v47, %v1238_v47  ;;  %v1350_v5 = vsub.f32 %v2641_v34, %v1238_v47 }
 0x24b   : > { %v1483_v21 = vsub.f32 1.5, %v1482_v40 }
 0x24c   : > { %v2007_v28 = vpop.eup %2006 }
 0x24d   : > { %v1484_v52 = vmul.f32 %v2005_v35, %v1483_v21  ;;  %v1490_v22 = vmul.f32 %v2007_v28, %v1365_v23  ;;  %vm1496_vm6 = vweird.f32 %v2007_v28 }
 0x24e   : > { %vm1497_vm8 = vmor %vm1495_vm7, %vm1496_vm6 }
 0x24f   : > { %v1488_v53 = vsel %vm1487_vm5, %v2005_v35, %v1484_v52  ;;  %v1491_v14 = vmul.f32 %v2007_v28, %v1490_v22 }
 0x250   : > { %v1540_v26 = vmul.f32 %v1488_v53, %v1348_v41 }
 0x251   : > { %v1492_v17 = vmul.f32 0.5, %v1491_v14  ;;  %v1222_v36 = vpop.xlane.xlu0 %1221 }
 0x252   : > { %1556 = vst [vmem:[%s2670_s29 + $0x58] sm:$0xff] %v1540_v26  ;;  %v1239_v8 = vmul.f32 0.0078125, %v1222_v36 }
 0x253   : > { %v1493_v18 = vsub.f32 1.5, %v1492_v17 }
 0x254   : > { %v1319_v42 = vmul.f32 %v1239_v8, %v1239_v8 }
 0x255   : > { %v1494_v13 = vmul.f32 %v2007_v28, %v1493_v18 }
 0x257   : > { %v1498_v4 = vsel %vm1497_vm8, %v2007_v28, %v1494_v13 }
 0x258   : > { %v1541_v48 = vmul.f32 %v1498_v4, %v1349_v45 }
 0x259   : > { %v1284_v59 = vpop.xlane.xlu0 %1283  ;;  %v1224_v15 = vpop.xlane.xlu1 %1223 }
 0x25a   : > { %1557 = vst [vmem:[%s2670_s29 + $0x60] sm:$0xff] %v1541_v48  ;;  %v1302_v29 = vmul.f32 0.0078125, %v1284_v59  ;;  %v1240_v51 = vmul.f32 0.0078125, %v1224_v15 }
 0x25b   : > { %v1288_v16 = vpop.xlane.xlu2 %1287 }
 0x25c   : > { %v1334_v50 = vsub.f32 %v1302_v29, %v1318_v55  ;;  %v1320_v37 = vmul.f32 %v1240_v51, %v1240_v51  ;;  %v1304_v43 = vmul.f32 0.0078125, %v1288_v16  ;;  %v1352_v35 = vsub.f32 %v2653_v62, %v1240_v51 }
 0x25d   : > { %v1351_v62 = vsub.f32 %v2646_v3, %v1239_v8 }
 0x25e   : > { %v1366_v56 = vadd.f32 1e-05, %v1334_v50  ;;  %v1336_v39 = vsub.f32 %v1304_v43, %v1320_v37 }
 0x260   : > { %2008 = vrsqrt.f32 %v1366_v56  ;;  %v1368_v54 = vadd.f32 1e-05, %v1336_v39  ;;  %vm1505_vm10 = vweird.f32 %v1366_v56 }
 0x261   : > { %v1286_v10 = vpop.xlane.xlu1 %1285 }
 0x262   : > { %v1303_v57 = vmul.f32 0.0078125, %v1286_v10  ;;  %2010 = vrsqrt.f32 %v1368_v54  ;;  %vm1525_vm13 = vweird.f32 %v1368_v54 }
 0x264   : > { %v1335_v7 = vsub.f32 %v1303_v57, %v1319_v42 }
 0x266   : > { %v2009_v0 = vpop.eup %2008  ;;  %v1367_v30 = vadd.f32 1e-05, %v1335_v7 }
 0x267   : > { %v1500_v20 = vmul.f32 %v2009_v0, %v1366_v56  ;;  %vm1506_vm9 = vweird.f32 %v2009_v0 }
 0x268   : > { %2012 = vrsqrt.f32 %v1367_v30  ;;  %v2011_v1 = vpop.eup %2010  ;;  %vm1507_vm11 = vmor %vm1505_vm10, %vm1506_vm9  ;;  %vm1515_vm0 = vweird.f32 %v1367_v30 }
 0x269   : > { %v1501_v60 = vmul.f32 %v2009_v0, %v1500_v20  ;;  %v1520_v9 = vmul.f32 %v2011_v1, %v1368_v54  ;;  %vm1526_vm12 = vweird.f32 %v2011_v1 }
 0x26a   : > { %vm1527_vm14 = vmor %vm1525_vm13, %vm1526_vm12 }
 0x26b   : > { %v1502_v58 = vmul.f32 0.5, %v1501_v60  ;;  %v1521_v12 = vmul.f32 %v2011_v1, %v1520_v9 }
 0x26d   : > { %v1503_v19 = vsub.f32 1.5, %v1502_v58  ;;  %v1522_v11 = vmul.f32 0.5, %v1521_v12 }
 0x26e   : > { %v2013_v6 = vpop.eup %2012 }
 0x26f   : > { %v1504_v2 = vmul.f32 %v2009_v0, %v1503_v19  ;;  %v1510_v61 = vmul.f32 %v2013_v6, %v1367_v30  ;;  %v1523_v46 = vsub.f32 1.5, %v1522_v11  ;;  %vm1516_vm15 = vweird.f32 %v2013_v6 }
 0x270   : > { %vm1517_vm1 = vmor %vm1515_vm0, %vm1516_vm15 }
 0x271   : > { %v1508_v49 = vsel %vm1507_vm11, %v2009_v0, %v1504_v2  ;;  %v1511_v24 = vmul.f32 %v2013_v6, %v1510_v61  ;;  %v1524_v38 = vmul.f32 %v2011_v1, %v1523_v46 }
 0x272   : > { %v1542_v25 = vmul.f32 %v1508_v49, %v1350_v5 }
 0x273   : > { %v1512_v32 = vmul.f32 0.5, %v1511_v24  ;;  %v1528_v34 = vsel %vm1527_vm14, %v2011_v1, %v1524_v38 }
 0x274   : > { %1558 = vst [vmem:[%s2670_s29 + $0x68] sm:$0xff] %v1542_v25  ;;  %v1544_v23 = vmul.f32 %v1528_v34, %v1352_v35 }
 0x275   : > { %v1513_v63 = vsub.f32 1.5, %v1512_v32 }
 0x276   : > { %1560 = vst [vmem:[%s2670_s29 + $0x78] sm:$0xff] %v1544_v23 }
 0x277   : > { %v1514_v44 = vmul.f32 %v2013_v6, %v1513_v63 }
 0x279   : > { %v1518_v31 = vsel %vm1517_vm1, %v2013_v6, %v1514_v44 }
 0x27a   : > { %v1543_v33 = vmul.f32 %v1518_v31, %v1351_v62 }
 0x27c   : > { %1559 = vst [vmem:[%s2670_s29 + $0x70] sm:$0xff] %v1543_v33 }
 0x27d   : > { %2071 = shalt.err (!%p2068_p8)
}
 0x27e   : > { %s2119_s23 = smov 128   ;;  %s2120_s27 = smov 8  }
 0x27f   : > { %1885 = dma.vmem_to_hbm [thread:$0]  (%p2184_p5), %s1575_s19, 2048, %s1577_s8, %s1562_s9, %s2119_s23, %s2119_s23, %s2120_s27  }
 0x280 PF: > { %p1897_p9 = scmp.ge.s32.totalorder %s2110_s18, 2  ;;  %s1591_s28 = sand.u32 1, %s2098_s15  }
 0x281   : > { %s1592_s29 = scalar_lea.sflag [#allocation4], %s1591_s28 }
 0x282   : > { %p1892_p10 = pnand %p1897_p9, %p2188_p6 }
 0x284   : > { %p1893_p11 = pneg %p1892_p10 }
 0x286   : > { %2093 = dma.done.wait (%p1893_p11), %s1592_s29, 2048  }
 0x287   : > { %2095 = vsyncadd (%p1893_p11), %s1592_s29, 4294965248  ;;  %p15_p12 = scmp.ge.s32.totalorder %s2171_s21, 4   ;;  %s2766_s15 = smov %s2102_s16 }
 0x288   : > { %s2767_s16 = smov %s2106_s17  ;;  %s2768_s17 = smov %s2182_s24 }
 0x289   : > { %s2769_s18 = smov %s2171_s21  ;;  %17 = sbr.rel (!%p15_p12) target bundleno = 4 (0x4), region = 79 }
 0x28e   :  { %1598 = vsyncpa [#allocation3], 1 }
 0x28f   :  { %1600 = vsyncpa [#allocation3 + $0x1], 1 }
 0x290   :  { %1601 = vsyncpa [#allocation4], 1 }
 0x291   :  { %1603 = vsyncpa [#allocation4 + $0x1], 1 }

</bundles_post_ra>
